<compile_context>
chip_gen: v5e
topology: v5e:2x2
jax: 0.10.0
libtpu: 0.0.40
codegen_flags: <defaults>
</compile_context>

<pallas_src>
import jax
import jax.numpy as jnp
from jax.experimental import pallas as pl
from jax.experimental.pallas import tpu as pltpu

MAX_LENGTH = 10       # L
HIDDEN_SIZE = 32      # H  (spec uses 256; small shape for the test)
OUTPUT_SIZE = 16      # V
BATCH = 8             # B : fills the 8 vreg sublanes (scale to 128+ for MXU util)
DECODE_STEPS = 6      # T : decode steps fused into one kernel invocation
OUT_LANES = 128       # packed output slab width (lane-dense store)


def _attn_decoder_kernel(
    emb_ref,    # (T, Bb, H) bf16  embedded input tokens (teacher forcing)
    h0_ref,     # (Bb, H)   f32    initial hidden state
    encT_ref,   # (Bb, H, L) f32   encoder outputs, pre-transposed (L on lanes)
    wa_e_ref,   # (H, L) bf16      attn:    emb-side weights
    wa_h_ref,   # (H, L) bf16      attn:    hidden-side weights
    wc_e_ref,   # (H, H) bf16      combine: emb-side weights
    wc_c_ref,   # (H, H) bf16      combine: context-side weights
    wg_x_ref,   # (H, 4H) bf16     GRU gates, x-side:   [Wir | Wiz | Win | 0 ]
    wg_h_ref,   # (H, 4H) bf16     GRU gates, hid-side: [Whr | Whz | 0   | Whn]
    wout_ref,   # (H, V) bf16      output projection
    bias_ref,   # (4, 4H) f32      rows: [b_gates | b_combine | b_out | b_attn]
    out_ref,    # (T, Bb, OUT_LANES) f32  packed per step: [logp | h | attn_w | 0]
):
    f32 = jnp.float32
    bf16 = jnp.bfloat16
    T, Bb, H = emb_ref.shape
    L = wa_e_ref.shape[1]
    V = wout_ref.shape[1]

    # --- hoist all loads / constants out of the unrolled recurrence ---------
    bias = bias_ref[...]               # (4, 4H)
    b_gates = bias[0:1, :]             # (1, 4H)
    b_comb = bias[1:2, 0:H]            # (1, H)
    b_out = bias[2:3, 0:V]             # (1, V)
    b_attn = bias[3:4, 0:L]            # (1, L)

    encT = encT_ref[...]               # (Bb, H, L) f32
    wa_e = wa_e_ref[...]
    wa_h = wa_h_ref[...]
    wc_e = wc_e_ref[...]
    wc_c = wc_c_ref[...]
    wg_x = wg_x_ref[...]
    wg_h = wg_h_ref[...]
    wout = wout_ref[...]
    pad = jnp.zeros((Bb, OUT_LANES - V - H - L), f32)

    hid = h0_ref[...]                  # (Bb, H) f32, carried in vregs

    # Fully unrolled decode loop: only `hid` is a serial dependency, everything
    # else can be overlapped by the scheduler across steps.
    for t in range(T):
        emb_t = emb_ref[t]                           # (Bb, H) bf16
        hid_b = hid.astype(bf16)

        # --- attention scores + softmax over L (two K=H matmuls, no concat)
        scores = (jnp.dot(emb_t, wa_e, preferred_element_type=f32)
                  + jnp.dot(hid_b, wa_h, preferred_element_type=f32)
                  + b_attn)                           # (Bb, L)
        m = jnp.max(scores, axis=-1, keepdims=True)
        e = jnp.exp(scores - m)
        inv = pl.reciprocal(jnp.sum(e, axis=-1, keepdims=True), approx=True)
        aw = e * inv                                  # (Bb, L)

        # --- context vector c_i = sum_l a_il * h_l.  encT is (Bb, H, L) so aw
        #     broadcasts over sublanes (stride-0) and the reduce is a lane reduce.
        ctx = jnp.sum(aw[:, None, :] * encT, axis=-1)  # (Bb, H) f32

        # --- attn_combine + ReLU   (dropout = eval-mode identity)
        x = jnp.maximum(
            jnp.dot(emb_t, wc_e, preferred_element_type=f32)
            + jnp.dot(ctx.astype(bf16), wc_c, preferred_element_type=f32)
            + b_comb, 0.0)                            # (Bb, H)

        # --- single GRU step: fused lane-dense (Bb, 4H=128) gate slab,
        #     split into x-side + hid-side matmuls (no lane concat of inputs).
        g = (jnp.dot(x.astype(bf16), wg_x, preferred_element_type=f32)
             + jnp.dot(hid_b, wg_h, preferred_element_type=f32)
             + b_gates)                               # (Bb, 4H)
        r = jax.nn.sigmoid(g[:, 0:H])                 # i_r + h_r (+ both biases)
        z = jax.nn.sigmoid(g[:, H:2 * H])             # i_z + h_z
        n = jnp.tanh(g[:, 2 * H:3 * H] + r * g[:, 3 * H:4 * H])  # i_n + r*h_n
        hid = (1.0 - z) * n + z * hid                 # (Bb, H) f32

        # --- output projection + log_softmax
        logits = jnp.dot(hid.astype(bf16), wout, preferred_element_type=f32) + b_out
        m2 = jnp.max(logits, axis=-1, keepdims=True)
        s = logits - m2
        logp = s - jnp.log(jnp.sum(jnp.exp(s), axis=-1, keepdims=True))  # (Bb, V)

        # --- one lane-dense 128-wide store of all three per-step results
        out_ref[t] = jnp.concatenate([logp, hid, aw, pad], axis=-1)


def make_params(key, hidden_size=HIDDEN_SIZE, output_size=OUTPUT_SIZE,
                max_length=MAX_LENGTH):
    """PyTorch-layout params (x @ W form), all independent keys."""
    H, L, V = hidden_size, max_length, output_size
    ks = jax.random.split(key, 20)
    f = lambda k, shape: (0.1 * jax.random.normal(k, shape)).astype(jnp.float32)
    return dict(
        embedding=f(ks[0], (V, H)),
        wa=f(ks[1], (2 * H, L)), ba=f(ks[2], (L,)),          # attn: Linear(2H->L)
        wc=f(ks[3], (2 * H, H)), bc=f(ks[4], (H,)),          # attn_combine: Linear(2H->H)
        wir=f(ks[5], (H, H)), wiz=f(ks[6], (H, H)), win=f(ks[7], (H, H)),
        bir=f(ks[8], (H,)), biz=f(ks[9], (H,)), bin=f(ks[10], (H,)),
        whr=f(ks[11], (H, H)), whz=f(ks[12], (H, H)), whn=f(ks[13], (H, H)),
        bhr=f(ks[14], (H,)), bhz=f(ks[15], (H,)), bhn=f(ks[16], (H,)),
        wout=f(ks[17], (H, V)), bout=f(ks[18], (V,)),        # out: Linear(H->V)
    )


def _pack_params(p):
    """Split/fuse per-layer tensors into bf16 matmul slabs + one f32 bias slab."""
    H = p["wir"].shape[0]
    L = p["wa"].shape[1]
    V = p["wout"].shape[1]
    bf16 = jnp.bfloat16
    zero = jnp.zeros((H, H), jnp.float32)
    wa_e = p["wa"][0:H].astype(bf16)          # emb-side attn weights
    wa_h = p["wa"][H:2 * H].astype(bf16)      # hidden-side attn weights
    wc_e = p["wc"][0:H].astype(bf16)          # emb-side combine weights
    wc_c = p["wc"][H:2 * H].astype(bf16)      # context-side combine weights
    wg_x = jnp.concatenate([p["wir"], p["wiz"], p["win"], zero], axis=1).astype(bf16)
    wg_h = jnp.concatenate([p["whr"], p["whz"], zero, p["whn"]], axis=1).astype(bf16)
    wout = p["wout"].astype(bf16)
    b_gates = jnp.concatenate(
        [p["bir"] + p["bhr"], p["biz"] + p["bhz"], p["bin"], p["bhn"]])
    bias = jnp.zeros((4, 4 * H), jnp.float32)
    bias = bias.at[0, :].set(b_gates)
    bias = bias.at[1, 0:H].set(p["bc"])
    bias = bias.at[2, 0:V].set(p["bout"])
    bias = bias.at[3, 0:L].set(p["ba"])
    return wa_e, wa_h, wc_e, wc_c, wg_x, wg_h, wout, bias


@jax.jit
def attn_decoder_decode(params, tokens, hidden0, encoder_outputs):
    """Run T decode steps of the attention decoder in ONE pallas_call.

    tokens:          (T, B) int32 input token ids (teacher forcing)
    hidden0:         (B, H) initial decoder hidden state
    encoder_outputs: (B, L, H)
    Returns (log_probs (T,B,V), hidden_seq (T,B,H), attn_weights (T,B,L));
    hidden_seq[-1] is the final hidden state.
    """
    T, B = tokens.shape
    H = params["embedding"].shape[1]
    L = params["wa"].shape[1]
    V = params["wout"].shape[1]
    assert 4 * H == 128 and V + H + L <= OUT_LANES
    Bb = min(B, 128)                   # batch block (parallel grid axis)
    assert B % Bb == 0
    nb = B // Bb

    # Glue (one-time XLA ops): embedding gather in bf16, encoder transpose.
    emb_seq = params["embedding"].astype(jnp.bfloat16)[tokens]      # (T, B, H)
    encT = jnp.swapaxes(encoder_outputs, 1, 2)                      # (B, H, L)
    wa_e, wa_h, wc_e, wc_c, wg_x, wg_h, wout, bias = _pack_params(params)

    packed = pl.pallas_call(
        _attn_decoder_kernel,
        out_shape=jax.ShapeDtypeStruct((T, B, OUT_LANES), jnp.float32),
        grid_spec=pltpu.PrefetchScalarGridSpec(
            num_scalar_prefetch=0,
            grid=(nb,),
            in_specs=[
                pl.BlockSpec((T, Bb, H), lambda b: (0, b, 0)),      # embedded tokens
                pl.BlockSpec((Bb, H), lambda b: (b, 0)),            # h0
                pl.BlockSpec((Bb, H, L), lambda b: (b, 0, 0)),      # encoder outputs^T
                pl.BlockSpec((H, L), lambda b: (0, 0)),             # Wa (emb side)
                pl.BlockSpec((H, L), lambda b: (0, 0)),             # Wa (hid side)
                pl.BlockSpec((H, H), lambda b: (0, 0)),             # Wc (emb side)
                pl.BlockSpec((H, H), lambda b: (0, 0)),             # Wc (ctx side)
                pl.BlockSpec((H, 4 * H), lambda b: (0, 0)),         # GRU gates (x side)
                pl.BlockSpec((H, 4 * H), lambda b: (0, 0)),         # GRU gates (hid side)
                pl.BlockSpec((H, V), lambda b: (0, 0)),             # Wout
                pl.BlockSpec((4, 4 * H), lambda b: (0, 0)),         # packed biases
            ],
            out_specs=pl.BlockSpec((T, Bb, OUT_LANES), lambda b: (0, b, 0)),
        ),
        compiler_params=pltpu.CompilerParams(
            dimension_semantics=("parallel",)),  # batch blocks are independent
    )(emb_seq, hidden0, encT, wa_e, wa_h, wc_e, wc_c, wg_x, wg_h, wout, bias)

    logp = packed[:, :, 0:V]
    hidden_seq = packed[:, :, V:V + H]
    attn_w = packed[:, :, V + H:V + H + L]
    return logp, hidden_seq, attn_w


def _reference_decode(params, tokens, hidden0, encoder_outputs):
    """Pure-JAX f32 reference mirroring the PyTorch forward, looped over T steps."""
    T = tokens.shape[0]
    hid = hidden0
    logps, hids, aws = [], [], []
    for t in range(T):
        emb = params["embedding"][tokens[t]]                                # (B, H)
        scores = jnp.concatenate([emb, hid], -1) @ params["wa"] + params["ba"]
        aw = jax.nn.softmax(scores, axis=-1)
        ctx = jnp.einsum("bl,blh->bh", aw, encoder_outputs)
        x = jax.nn.relu(jnp.concatenate([emb, ctx], -1) @ params["wc"] + params["bc"])
        r = jax.nn.sigmoid(x @ params["wir"] + params["bir"]
                           + hid @ params["whr"] + params["bhr"])
        z = jax.nn.sigmoid(x @ params["wiz"] + params["biz"]
                           + hid @ params["whz"] + params["bhz"])
        n = jnp.tanh(x @ params["win"] + params["bin"]
                     + r * (hid @ params["whn"] + params["bhn"]))
        hid = (1.0 - z) * n + z * hid
        logp = jax.nn.log_softmax(hid @ params["wout"] + params["bout"], axis=-1)
        logps.append(logp); hids.append(hid); aws.append(aw)
    return jnp.stack(logps), jnp.stack(hids), jnp.stack(aws)


if __name__ == "__main__":
    key = jax.random.PRNGKey(0)
    k_par, k_hid, k_enc, k_tok = jax.random.split(key, 4)

    params = make_params(k_par)
    tokens = jax.random.randint(k_tok, (DECODE_STEPS, BATCH), 0, OUTPUT_SIZE,
                                dtype=jnp.int32)
    hidden0 = 0.1 * jax.random.normal(k_hid, (BATCH, HIDDEN_SIZE), jnp.float32)
    encoder_outputs = 0.1 * jax.random.normal(
        k_enc, (BATCH, MAX_LENGTH, HIDDEN_SIZE), jnp.float32)

    logp, hidden_seq, attn_w = attn_decoder_decode(
        params, tokens, hidden0, encoder_outputs)
    jax.block_until_ready((logp, hidden_seq, attn_w))

    r_logp, r_hid, r_aw = _reference_decode(params, tokens, hidden0, encoder_outputs)

    assert logp.shape == (DECODE_STEPS, BATCH, OUTPUT_SIZE)
    assert hidden_seq.shape == (DECODE_STEPS, BATCH, HIDDEN_SIZE)
    assert attn_w.shape == (DECODE_STEPS, BATCH, MAX_LENGTH)
    # atol=3e-2: bf16 matmul operands (f32 accumulate) + approx softmax
    # reciprocal vs the f32 reference, compounded over 6 recurrent steps.
    assert jnp.allclose(logp, r_logp, atol=3e-2), "log-probs mismatch"
    assert jnp.allclose(hidden_seq, r_hid, atol=3e-2), "hidden mismatch"
    assert jnp.allclose(attn_w, r_aw, atol=3e-2), "attn weights mismatch"

    print("KERNEL_OK")
</pallas_src>

<mosaic_0001>
module attributes {stable_mosaic.version = 11 : i64} {
  func.func @_attn_decoder_kernel(%arg0: i32, %arg1: memref<6x8x32xbf16, #tpu.memory_space<vmem>>, %arg2: memref<8x32xf32, #tpu.memory_space<vmem>>, %arg3: memref<8x32x10xf32, #tpu.memory_space<vmem>>, %arg4: memref<32x10xbf16, #tpu.memory_space<vmem>>, %arg5: memref<32x10xbf16, #tpu.memory_space<vmem>>, %arg6: memref<32x32xbf16, #tpu.memory_space<vmem>>, %arg7: memref<32x32xbf16, #tpu.memory_space<vmem>>, %arg8: memref<32x128xbf16, #tpu.memory_space<vmem>>, %arg9: memref<32x128xbf16, #tpu.memory_space<vmem>>, %arg10: memref<32x16xbf16, #tpu.memory_space<vmem>>, %arg11: memref<4x128xf32, #tpu.memory_space<vmem>>, %arg12: memref<6x8x128xf32, #tpu.memory_space<vmem>>) attributes {dimension_semantics = [#tpu.dimension_semantics<parallel>], iteration_bounds = array<i64: 1>, scalar_prefetch = 0 : i64, scratch_operands = 0 : i64, tpu.core_type = #tpu.core_type<tc>, window_params = [{transform_indices = @transform_0, window_bounds = array<i64: 6, 8, 32>}, {transform_indices = @transform_1, window_bounds = array<i64: 8, 32>}, {transform_indices = @transform_2, window_bounds = array<i64: 8, 32, 10>}, {pipeline_mode = #tpu.pipeline_mode<synchronous>, transform_indices = @transform_3, window_bounds = array<i64: 32, 10>}, {pipeline_mode = #tpu.pipeline_mode<synchronous>, transform_indices = @transform_4, window_bounds = array<i64: 32, 10>}, {pipeline_mode = #tpu.pipeline_mode<synchronous>, transform_indices = @transform_5, window_bounds = array<i64: 32, 32>}, {pipeline_mode = #tpu.pipeline_mode<synchronous>, transform_indices = @transform_6, window_bounds = array<i64: 32, 32>}, {pipeline_mode = #tpu.pipeline_mode<synchronous>, transform_indices = @transform_7, window_bounds = array<i64: 32, 128>}, {pipeline_mode = #tpu.pipeline_mode<synchronous>, transform_indices = @transform_8, window_bounds = array<i64: 32, 128>}, {pipeline_mode = #tpu.pipeline_mode<synchronous>, transform_indices = @transform_9, window_bounds = array<i64: 32, 16>}, {pipeline_mode = #tpu.pipeline_mode<synchronous>, transform_indices = @transform_10, window_bounds = array<i64: 4, 128>}, {transform_indices = @transform_11, window_bounds = array<i64: 6, 8, 128>}]} {
    %c0 = arith.constant 0 : index
    %c0_0 = arith.constant 0 : index
    %0 = vector.load %arg11[%c0, %c0_0] : memref<4x128xf32, #tpu.memory_space<vmem>>, vector<4x128xf32>
    %1 = vector.extract_strided_slice %0 {offsets = [0, 0], sizes = [1, 128], strides = [1, 1]} : vector<4x128xf32> to vector<1x128xf32>
    %2 = vector.extract_strided_slice %0 {offsets = [1, 0], sizes = [1, 32], strides = [1, 1]} : vector<4x128xf32> to vector<1x32xf32>
    %3 = vector.extract_strided_slice %0 {offsets = [2, 0], sizes = [1, 16], strides = [1, 1]} : vector<4x128xf32> to vector<1x16xf32>
    %4 = vector.extract_strided_slice %0 {offsets = [3, 0], sizes = [1, 10], strides = [1, 1]} : vector<4x128xf32> to vector<1x10xf32>
    %c0_1 = arith.constant 0 : index
    %c0_2 = arith.constant 0 : index
    %c0_3 = arith.constant 0 : index
    %5 = vector.load %arg3[%c0_1, %c0_2, %c0_3] : memref<8x32x10xf32, #tpu.memory_space<vmem>>, vector<8x32x10xf32>
    %c0_4 = arith.constant 0 : index
    %c0_5 = arith.constant 0 : index
    %6 = vector.load %arg4[%c0_4, %c0_5] : memref<32x10xbf16, #tpu.memory_space<vmem>>, vector<32x10xbf16>
    %c0_6 = arith.constant 0 : index
    %c0_7 = arith.constant 0 : index
    %7 = vector.load %arg5[%c0_6, %c0_7] : memref<32x10xbf16, #tpu.memory_space<vmem>>, vector<32x10xbf16>
    %c0_8 = arith.constant 0 : index
    %c0_9 = arith.constant 0 : index
    %8 = vector.load %arg6[%c0_8, %c0_9] : memref<32x32xbf16, #tpu.memory_space<vmem>>, vector<32x32xbf16>
    %c0_10 = arith.constant 0 : index
    %c0_11 = arith.constant 0 : index
    %9 = vector.load %arg7[%c0_10, %c0_11] : memref<32x32xbf16, #tpu.memory_space<vmem>>, vector<32x32xbf16>
    %c0_12 = arith.constant 0 : index
    %c0_13 = arith.constant 0 : index
    %10 = vector.load %arg8[%c0_12, %c0_13] : memref<32x128xbf16, #tpu.memory_space<vmem>>, vector<32x128xbf16>
    %c0_14 = arith.constant 0 : index
    %c0_15 = arith.constant 0 : index
    %11 = vector.load %arg9[%c0_14, %c0_15] : memref<32x128xbf16, #tpu.memory_space<vmem>>, vector<32x128xbf16>
    %c0_16 = arith.constant 0 : index
    %c0_17 = arith.constant 0 : index
    %12 = vector.load %arg10[%c0_16, %c0_17] : memref<32x16xbf16, #tpu.memory_space<vmem>>, vector<32x16xbf16>
    %cst = arith.constant 0.000000e+00 : f32
    %13 = vector.broadcast %cst : f32 to vector<8x70xf32>
    %c0_18 = arith.constant 0 : index
    %c0_19 = arith.constant 0 : index
    %14 = vector.load %arg2[%c0_18, %c0_19] : memref<8x32xf32, #tpu.memory_space<vmem>>, vector<8x32xf32>
    %c0_20 = arith.constant 0 : index
    %c0_21 = arith.constant 0 : index
    %c0_22 = arith.constant 0 : index
    %15 = vector.load %arg1[%c0_20, %c0_21, %c0_22] : memref<6x8x32xbf16, #tpu.memory_space<vmem>>, vector<1x8x32xbf16>
    %16 = vector.shape_cast %15 : vector<1x8x32xbf16> to vector<8x32xbf16>
    %17 = arith.truncf %14 : vector<8x32xf32> to vector<8x32xbf16>
    %cst_23 = arith.constant dense<0.000000e+00> : vector<8x10xf32>
    %18 = tpu.matmul %16, %6, %cst_23 {dimension_numbers = #tpu.dot_dimension_numbers<[1], [0], [0], [1], [0, 0, 1, 1], [], []>} : vector<8x32xbf16>, vector<32x10xbf16>, vector<8x10xf32> -> vector<8x10xf32>
    %cst_24 = arith.constant dense<0.000000e+00> : vector<8x10xf32>
    %19 = tpu.matmul %17, %7, %cst_24 {dimension_numbers = #tpu.dot_dimension_numbers<[1], [0], [0], [1], [0, 0, 1, 1], [], []>} : vector<8x32xbf16>, vector<32x10xbf16>, vector<8x10xf32> -> vector<8x10xf32>
    %20 = arith.addf %18, %19 : vector<8x10xf32>
    %21 = vector.broadcast %4 : vector<1x10xf32> to vector<8x10xf32>
    %22 = arith.addf %20, %21 : vector<8x10xf32>
    %cst_25 = arith.constant dense<0xFF800000> : vector<8xf32>
    %23 = vector.multi_reduction <maximumf>, %22, %cst_25 [1] : vector<8x10xf32> to vector<8xf32>
    %24 = vector.shape_cast %23 : vector<8xf32> to vector<8x1xf32>
    %25 = vector.broadcast %24 : vector<8x1xf32> to vector<8x10xf32>
    %26 = arith.subf %22, %25 : vector<8x10xf32>
    %27 = math.exp %26 : vector<8x10xf32>
    %cst_26 = arith.constant dense<0.000000e+00> : vector<8xf32>
    %28 = vector.multi_reduction <add>, %27, %cst_26 [1] : vector<8x10xf32> to vector<8xf32>
    %29 = vector.shape_cast %28 : vector<8xf32> to vector<8x1xf32>
    %30 = tpu.reciprocal %29 {approx = true} : vector<8x1xf32> -> vector<8x1xf32>
    %31 = vector.broadcast %30 : vector<8x1xf32> to vector<8x10xf32>
    %32 = arith.mulf %27, %31 : vector<8x10xf32>
    %33 = vector.shape_cast %32 : vector<8x10xf32> to vector<8x1x10xf32>
    %34 = vector.broadcast %33 : vector<8x1x10xf32> to vector<8x32x10xf32>
    %35 = arith.mulf %34, %5 : vector<8x32x10xf32>
    %cst_27 = arith.constant dense<0.000000e+00> : vector<8x32xf32>
    %36 = vector.multi_reduction <add>, %35, %cst_27 [2] : vector<8x32x10xf32> to vector<8x32xf32>
    %cst_28 = arith.constant dense<0.000000e+00> : vector<8x32xf32>
    %37 = tpu.matmul %16, %8, %cst_28 {dimension_numbers = #tpu.dot_dimension_numbers<[1], [0], [0], [1], [0, 0, 1, 1], [], []>} : vector<8x32xbf16>, vector<32x32xbf16>, vector<8x32xf32> -> vector<8x32xf32>
    %38 = arith.truncf %36 : vector<8x32xf32> to vector<8x32xbf16>
    %cst_29 = arith.constant dense<0.000000e+00> : vector<8x32xf32>
    %39 = tpu.matmul %38, %9, %cst_29 {dimension_numbers = #tpu.dot_dimension_numbers<[1], [0], [0], [1], [0, 0, 1, 1], [], []>} : vector<8x32xbf16>, vector<32x32xbf16>, vector<8x32xf32> -> vector<8x32xf32>
    %40 = arith.addf %37, %39 : vector<8x32xf32>
    %41 = vector.broadcast %2 : vector<1x32xf32> to vector<8x32xf32>
    %42 = arith.addf %40, %41 : vector<8x32xf32>
    %cst_30 = arith.constant 0.000000e+00 : f32
    %43 = vector.broadcast %cst_30 : f32 to vector<8x32xf32>
    %44 = arith.maximumf %42, %43 : vector<8x32xf32>
    %45 = arith.truncf %44 : vector<8x32xf32> to vector<8x32xbf16>
    %cst_31 = arith.constant dense<0.000000e+00> : vector<8x128xf32>
    %46 = tpu.matmul %45, %10, %cst_31 {dimension_numbers = #tpu.dot_dimension_numbers<[1], [0], [0], [1], [0, 0, 1, 1], [], []>} : vector<8x32xbf16>, vector<32x128xbf16>, vector<8x128xf32> -> vector<8x128xf32>
    %cst_32 = arith.constant dense<0.000000e+00> : vector<8x128xf32>
    %47 = tpu.matmul %17, %11, %cst_32 {dimension_numbers = #tpu.dot_dimension_numbers<[1], [0], [0], [1], [0, 0, 1, 1], [], []>} : vector<8x32xbf16>, vector<32x128xbf16>, vector<8x128xf32> -> vector<8x128xf32>
    %48 = arith.addf %46, %47 : vector<8x128xf32>
    %49 = vector.broadcast %1 : vector<1x128xf32> to vector<8x128xf32>
    %50 = arith.addf %48, %49 : vector<8x128xf32>
    %51 = vector.extract_strided_slice %50 {offsets = [0, 0], sizes = [8, 32], strides = [1, 1]} : vector<8x128xf32> to vector<8x32xf32>
    %52 = arith.negf %51 : vector<8x32xf32>
    %53 = math.exp %52 : vector<8x32xf32>
    %cst_33 = arith.constant 1.000000e+00 : f32
    %54 = vector.broadcast %cst_33 : f32 to vector<8x32xf32>
    %55 = arith.addf %54, %53 : vector<8x32xf32>
    %56 = arith.divf %54, %55 : vector<8x32xf32>
    %57 = vector.extract_strided_slice %50 {offsets = [0, 32], sizes = [8, 32], strides = [1, 1]} : vector<8x128xf32> to vector<8x32xf32>
    %58 = arith.negf %57 : vector<8x32xf32>
    %59 = math.exp %58 : vector<8x32xf32>
    %cst_34 = arith.constant 1.000000e+00 : f32
    %60 = vector.broadcast %cst_34 : f32 to vector<8x32xf32>
    %61 = arith.addf %60, %59 : vector<8x32xf32>
    %62 = arith.divf %60, %61 : vector<8x32xf32>
    %63 = vector.extract_strided_slice %50 {offsets = [0, 64], sizes = [8, 32], strides = [1, 1]} : vector<8x128xf32> to vector<8x32xf32>
    %64 = vector.extract_strided_slice %50 {offsets = [0, 96], sizes = [8, 32], strides = [1, 1]} : vector<8x128xf32> to vector<8x32xf32>
    %65 = arith.mulf %56, %64 : vector<8x32xf32>
    %66 = arith.addf %63, %65 : vector<8x32xf32>
    %67 = math.tanh %66 : vector<8x32xf32>
    %cst_35 = arith.constant 1.000000e+00 : f32
    %68 = vector.broadcast %cst_35 : f32 to vector<8x32xf32>
    %69 = arith.subf %68, %62 : vector<8x32xf32>
    %70 = arith.mulf %69, %67 : vector<8x32xf32>
    %71 = arith.mulf %62, %14 : vector<8x32xf32>
    %72 = arith.addf %70, %71 : vector<8x32xf32>
    %73 = arith.truncf %72 : vector<8x32xf32> to vector<8x32xbf16>
    %cst_36 = arith.constant dense<0.000000e+00> : vector<8x16xf32>
    %74 = tpu.matmul %73, %12, %cst_36 {dimension_numbers = #tpu.dot_dimension_numbers<[1], [0], [0], [1], [0, 0, 1, 1], [], []>} : vector<8x32xbf16>, vector<32x16xbf16>, vector<8x16xf32> -> vector<8x16xf32>
    %75 = vector.broadcast %3 : vector<1x16xf32> to vector<8x16xf32>
    %76 = arith.addf %74, %75 : vector<8x16xf32>
    %cst_37 = arith.constant dense<0xFF800000> : vector<8xf32>
    %77 = vector.multi_reduction <maximumf>, %76, %cst_37 [1] : vector<8x16xf32> to vector<8xf32>
    %78 = vector.shape_cast %77 : vector<8xf32> to vector<8x1xf32>
    %79 = vector.broadcast %78 : vector<8x1xf32> to vector<8x16xf32>
    %80 = arith.subf %76, %79 : vector<8x16xf32>
    %81 = math.exp %80 : vector<8x16xf32>
    %cst_38 = arith.constant dense<0.000000e+00> : vector<8xf32>
    %82 = vector.multi_reduction <add>, %81, %cst_38 [1] : vector<8x16xf32> to vector<8xf32>
    %83 = vector.shape_cast %82 : vector<8xf32> to vector<8x1xf32>
    %84 = math.log %83 : vector<8x1xf32>
    %85 = vector.broadcast %84 : vector<8x1xf32> to vector<8x16xf32>
    %86 = arith.subf %80, %85 : vector<8x16xf32>
    %87 = tpu.concatenate %86, %72, %32, %13 in 1 : vector<8x16xf32>, vector<8x32xf32>, vector<8x10xf32>, vector<8x70xf32> -> vector<8x128xf32>
    %c0_39 = arith.constant 0 : index
    %c0_40 = arith.constant 0 : index
    %c0_41 = arith.constant 0 : index
    %88 = vector.load %arg12[%c0_39, %c0_40, %c0_41] : memref<6x8x128xf32, #tpu.memory_space<vmem>>, vector<1x8x128xf32>
    %89 = vector.shape_cast %88 : vector<1x8x128xf32> to vector<8x128xf32>
    %90 = vector.shape_cast %87 : vector<8x128xf32> to vector<1x8x128xf32>
    tpu.vector_store %arg12[%c0_39, %c0_40, %c0_41], %90 {strides = array<i32>} : memref<6x8x128xf32, #tpu.memory_space<vmem>>, vector<1x8x128xf32>,
    %c1 = arith.constant 1 : index
    %c0_42 = arith.constant 0 : index
    %c0_43 = arith.constant 0 : index
    %91 = vector.load %arg1[%c1, %c0_42, %c0_43] : memref<6x8x32xbf16, #tpu.memory_space<vmem>>, vector<1x8x32xbf16>
    %92 = vector.shape_cast %91 : vector<1x8x32xbf16> to vector<8x32xbf16>
    %93 = arith.truncf %72 : vector<8x32xf32> to vector<8x32xbf16>
    %cst_44 = arith.constant dense<0.000000e+00> : vector<8x10xf32>
    %94 = tpu.matmul %92, %6, %cst_44 {dimension_numbers = #tpu.dot_dimension_numbers<[1], [0], [0], [1], [0, 0, 1, 1], [], []>} : vector<8x32xbf16>, vector<32x10xbf16>, vector<8x10xf32> -> vector<8x10xf32>
    %cst_45 = arith.constant dense<0.000000e+00> : vector<8x10xf32>
    %95 = tpu.matmul %93, %7, %cst_45 {dimension_numbers = #tpu.dot_dimension_numbers<[1], [0], [0], [1], [0, 0, 1, 1], [], []>} : vector<8x32xbf16>, vector<32x10xbf16>, vector<8x10xf32> -> vector<8x10xf32>
    %96 = arith.addf %94, %95 : vector<8x10xf32>
    %97 = vector.broadcast %4 : vector<1x10xf32> to vector<8x10xf32>
    %98 = arith.addf %96, %97 : vector<8x10xf32>
    %cst_46 = arith.constant dense<0xFF800000> : vector<8xf32>
    %99 = vector.multi_reduction <maximumf>, %98, %cst_46 [1] : vector<8x10xf32> to vector<8xf32>
    %100 = vector.shape_cast %99 : vector<8xf32> to vector<8x1xf32>
    %101 = vector.broadcast %100 : vector<8x1xf32> to vector<8x10xf32>
    %102 = arith.subf %98, %101 : vector<8x10xf32>
    %103 = math.exp %102 : vector<8x10xf32>
    %cst_47 = arith.constant dense<0.000000e+00> : vector<8xf32>
    %104 = vector.multi_reduction <add>, %103, %cst_47 [1] : vector<8x10xf32> to vector<8xf32>
    %105 = vector.shape_cast %104 : vector<8xf32> to vector<8x1xf32>
    %106 = tpu.reciprocal %105 {approx = true} : vector<8x1xf32> -> vector<8x1xf32>
    %107 = vector.broadcast %106 : vector<8x1xf32> to vector<8x10xf32>
    %108 = arith.mulf %103, %107 : vector<8x10xf32>
    %109 = vector.shape_cast %108 : vector<8x10xf32> to vector<8x1x10xf32>
    %110 = vector.broadcast %109 : vector<8x1x10xf32> to vector<8x32x10xf32>
    %111 = arith.mulf %110, %5 : vector<8x32x10xf32>
    %cst_48 = arith.constant dense<0.000000e+00> : vector<8x32xf32>
    %112 = vector.multi_reduction <add>, %111, %cst_48 [2] : vector<8x32x10xf32> to vector<8x32xf32>
    %cst_49 = arith.constant dense<0.000000e+00> : vector<8x32xf32>
    %113 = tpu.matmul %92, %8, %cst_49 {dimension_numbers = #tpu.dot_dimension_numbers<[1], [0], [0], [1], [0, 0, 1, 1], [], []>} : vector<8x32xbf16>, vector<32x32xbf16>, vector<8x32xf32> -> vector<8x32xf32>
    %114 = arith.truncf %112 : vector<8x32xf32> to vector<8x32xbf16>
    %cst_50 = arith.constant dense<0.000000e+00> : vector<8x32xf32>
    %115 = tpu.matmul %114, %9, %cst_50 {dimension_numbers = #tpu.dot_dimension_numbers<[1], [0], [0], [1], [0, 0, 1, 1], [], []>} : vector<8x32xbf16>, vector<32x32xbf16>, vector<8x32xf32> -> vector<8x32xf32>
    %116 = arith.addf %113, %115 : vector<8x32xf32>
    %117 = vector.broadcast %2 : vector<1x32xf32> to vector<8x32xf32>
    %118 = arith.addf %116, %117 : vector<8x32xf32>
    %cst_51 = arith.constant 0.000000e+00 : f32
    %119 = vector.broadcast %cst_51 : f32 to vector<8x32xf32>
    %120 = arith.maximumf %118, %119 : vector<8x32xf32>
    %121 = arith.truncf %120 : vector<8x32xf32> to vector<8x32xbf16>
    %cst_52 = arith.constant dense<0.000000e+00> : vector<8x128xf32>
    %122 = tpu.matmul %121, %10, %cst_52 {dimension_numbers = #tpu.dot_dimension_numbers<[1], [0], [0], [1], [0, 0, 1, 1], [], []>} : vector<8x32xbf16>, vector<32x128xbf16>, vector<8x128xf32> -> vector<8x128xf32>
    %cst_53 = arith.constant dense<0.000000e+00> : vector<8x128xf32>
    %123 = tpu.matmul %93, %11, %cst_53 {dimension_numbers = #tpu.dot_dimension_numbers<[1], [0], [0], [1], [0, 0, 1, 1], [], []>} : vector<8x32xbf16>, vector<32x128xbf16>, vector<8x128xf32> -> vector<8x128xf32>
    %124 = arith.addf %122, %123 : vector<8x128xf32>
    %125 = vector.broadcast %1 : vector<1x128xf32> to vector<8x128xf32>
    %126 = arith.addf %124, %125 : vector<8x128xf32>
    %127 = vector.extract_strided_slice %126 {offsets = [0, 0], sizes = [8, 32], strides = [1, 1]} : vector<8x128xf32> to vector<8x32xf32>
    %128 = arith.negf %127 : vector<8x32xf32>
    %129 = math.exp %128 : vector<8x32xf32>
    %cst_54 = arith.constant 1.000000e+00 : f32
    %130 = vector.broadcast %cst_54 : f32 to vector<8x32xf32>
    %131 = arith.addf %130, %129 : vector<8x32xf32>
    %132 = arith.divf %130, %131 : vector<8x32xf32>
    %133 = vector.extract_strided_slice %126 {offsets = [0, 32], sizes = [8, 32], strides = [1, 1]} : vector<8x128xf32> to vector<8x32xf32>
    %134 = arith.negf %133 : vector<8x32xf32>
    %135 = math.exp %134 : vector<8x32xf32>
    %cst_55 = arith.constant 1.000000e+00 : f32
    %136 = vector.broadcast %cst_55 : f32 to vector<8x32xf32>
    %137 = arith.addf %136, %135 : vector<8x32xf32>
    %138 = arith.divf %136, %137 : vector<8x32xf32>
    %139 = vector.extract_strided_slice %126 {offsets = [0, 64], sizes = [8, 32], strides = [1, 1]} : vector<8x128xf32> to vector<8x32xf32>
    %140 = vector.extract_strided_slice %126 {offsets = [0, 96], sizes = [8, 32], strides = [1, 1]} : vector<8x128xf32> to vector<8x32xf32>
    %141 = arith.mulf %132, %140 : vector<8x32xf32>
    %142 = arith.addf %139, %141 : vector<8x32xf32>
    %143 = math.tanh %142 : vector<8x32xf32>
    %cst_56 = arith.constant 1.000000e+00 : f32
    %144 = vector.broadcast %cst_56 : f32 to vector<8x32xf32>
    %145 = arith.subf %144, %138 : vector<8x32xf32>
    %146 = arith.mulf %145, %143 : vector<8x32xf32>
    %147 = arith.mulf %138, %72 : vector<8x32xf32>
    %148 = arith.addf %146, %147 : vector<8x32xf32>
    %149 = arith.truncf %148 : vector<8x32xf32> to vector<8x32xbf16>
    %cst_57 = arith.constant dense<0.000000e+00> : vector<8x16xf32>
    %150 = tpu.matmul %149, %12, %cst_57 {dimension_numbers = #tpu.dot_dimension_numbers<[1], [0], [0], [1], [0, 0, 1, 1], [], []>} : vector<8x32xbf16>, vector<32x16xbf16>, vector<8x16xf32> -> vector<8x16xf32>
    %151 = vector.broadcast %3 : vector<1x16xf32> to vector<8x16xf32>
    %152 = arith.addf %150, %151 : vector<8x16xf32>
    %cst_58 = arith.constant dense<0xFF800000> : vector<8xf32>
    %153 = vector.multi_reduction <maximumf>, %152, %cst_58 [1] : vector<8x16xf32> to vector<8xf32>
    %154 = vector.shape_cast %153 : vector<8xf32> to vector<8x1xf32>
    %155 = vector.broadcast %154 : vector<8x1xf32> to vector<8x16xf32>
    %156 = arith.subf %152, %155 : vector<8x16xf32>
    %157 = math.exp %156 : vector<8x16xf32>
    %cst_59 = arith.constant dense<0.000000e+00> : vector<8xf32>
    %158 = vector.multi_reduction <add>, %157, %cst_59 [1] : vector<8x16xf32> to vector<8xf32>
    %159 = vector.shape_cast %158 : vector<8xf32> to vector<8x1xf32>
    %160 = math.log %159 : vector<8x1xf32>
    %161 = vector.broadcast %160 : vector<8x1xf32> to vector<8x16xf32>
    %162 = arith.subf %156, %161 : vector<8x16xf32>
    %163 = tpu.concatenate %162, %148, %108, %13 in 1 : vector<8x16xf32>, vector<8x32xf32>, vector<8x10xf32>, vector<8x70xf32> -> vector<8x128xf32>
    %c1_60 = arith.constant 1 : index
    %c0_61 = arith.constant 0 : index
    %c0_62 = arith.constant 0 : index
    %164 = vector.load %arg12[%c1_60, %c0_61, %c0_62] : memref<6x8x128xf32, #tpu.memory_space<vmem>>, vector<1x8x128xf32>
    %165 = vector.shape_cast %164 : vector<1x8x128xf32> to vector<8x128xf32>
    %166 = vector.shape_cast %163 : vector<8x128xf32> to vector<1x8x128xf32>
    tpu.vector_store %arg12[%c1_60, %c0_61, %c0_62], %166 {strides = array<i32>} : memref<6x8x128xf32, #tpu.memory_space<vmem>>, vector<1x8x128xf32>,
    %c2 = arith.constant 2 : index
    %c0_63 = arith.constant 0 : index
    %c0_64 = arith.constant 0 : index
    %167 = vector.load %arg1[%c2, %c0_63, %c0_64] : memref<6x8x32xbf16, #tpu.memory_space<vmem>>, vector<1x8x32xbf16>
    %168 = vector.shape_cast %167 : vector<1x8x32xbf16> to vector<8x32xbf16>
    %169 = arith.truncf %148 : vector<8x32xf32> to vector<8x32xbf16>
    %cst_65 = arith.constant dense<0.000000e+00> : vector<8x10xf32>
    %170 = tpu.matmul %168, %6, %cst_65 {dimension_numbers = #tpu.dot_dimension_numbers<[1], [0], [0], [1], [0, 0, 1, 1], [], []>} : vector<8x32xbf16>, vector<32x10xbf16>, vector<8x10xf32> -> vector<8x10xf32>
    %cst_66 = arith.constant dense<0.000000e+00> : vector<8x10xf32>
    %171 = tpu.matmul %169, %7, %cst_66 {dimension_numbers = #tpu.dot_dimension_numbers<[1], [0], [0], [1], [0, 0, 1, 1], [], []>} : vector<8x32xbf16>, vector<32x10xbf16>, vector<8x10xf32> -> vector<8x10xf32>
    %172 = arith.addf %170, %171 : vector<8x10xf32>
    %173 = vector.broadcast %4 : vector<1x10xf32> to vector<8x10xf32>
    %174 = arith.addf %172, %173 : vector<8x10xf32>
    %cst_67 = arith.constant dense<0xFF800000> : vector<8xf32>
    %175 = vector.multi_reduction <maximumf>, %174, %cst_67 [1] : vector<8x10xf32> to vector<8xf32>
    %176 = vector.shape_cast %175 : vector<8xf32> to vector<8x1xf32>
    %177 = vector.broadcast %176 : vector<8x1xf32> to vector<8x10xf32>
    %178 = arith.subf %174, %177 : vector<8x10xf32>
    %179 = math.exp %178 : vector<8x10xf32>
    %cst_68 = arith.constant dense<0.000000e+00> : vector<8xf32>
    %180 = vector.multi_reduction <add>, %179, %cst_68 [1] : vector<8x10xf32> to vector<8xf32>
    %181 = vector.shape_cast %180 : vector<8xf32> to vector<8x1xf32>
    %182 = tpu.reciprocal %181 {approx = true} : vector<8x1xf32> -> vector<8x1xf32>
    %183 = vector.broadcast %182 : vector<8x1xf32> to vector<8x10xf32>
    %184 = arith.mulf %179, %183 : vector<8x10xf32>
    %185 = vector.shape_cast %184 : vector<8x10xf32> to vector<8x1x10xf32>
    %186 = vector.broadcast %185 : vector<8x1x10xf32> to vector<8x32x10xf32>
    %187 = arith.mulf %186, %5 : vector<8x32x10xf32>
    %cst_69 = arith.constant dense<0.000000e+00> : vector<8x32xf32>
    %188 = vector.multi_reduction <add>, %187, %cst_69 [2] : vector<8x32x10xf32> to vector<8x32xf32>
    %cst_70 = arith.constant dense<0.000000e+00> : vector<8x32xf32>
    %189 = tpu.matmul %168, %8, %cst_70 {dimension_numbers = #tpu.dot_dimension_numbers<[1], [0], [0], [1], [0, 0, 1, 1], [], []>} : vector<8x32xbf16>, vector<32x32xbf16>, vector<8x32xf32> -> vector<8x32xf32>
    %190 = arith.truncf %188 : vector<8x32xf32> to vector<8x32xbf16>
    %cst_71 = arith.constant dense<0.000000e+00> : vector<8x32xf32>
    %191 = tpu.matmul %190, %9, %cst_71 {dimension_numbers = #tpu.dot_dimension_numbers<[1], [0], [0], [1], [0, 0, 1, 1], [], []>} : vector<8x32xbf16>, vector<32x32xbf16>, vector<8x32xf32> -> vector<8x32xf32>
    %192 = arith.addf %189, %191 : vector<8x32xf32>
    %193 = vector.broadcast %2 : vector<1x32xf32> to vector<8x32xf32>
    %194 = arith.addf %192, %193 : vector<8x32xf32>
    %cst_72 = arith.constant 0.000000e+00 : f32
    %195 = vector.broadcast %cst_72 : f32 to vector<8x32xf32>
    %196 = arith.maximumf %194, %195 : vector<8x32xf32>
    %197 = arith.truncf %196 : vector<8x32xf32> to vector<8x32xbf16>
    %cst_73 = arith.constant dense<0.000000e+00> : vector<8x128xf32>
    %198 = tpu.matmul %197, %10, %cst_73 {dimension_numbers = #tpu.dot_dimension_numbers<[1], [0], [0], [1], [0, 0, 1, 1], [], []>} : vector<8x32xbf16>, vector<32x128xbf16>, vector<8x128xf32> -> vector<8x128xf32>
    %cst_74 = arith.constant dense<0.000000e+00> : vector<8x128xf32>
    %199 = tpu.matmul %169, %11, %cst_74 {dimension_numbers = #tpu.dot_dimension_numbers<[1], [0], [0], [1], [0, 0, 1, 1], [], []>} : vector<8x32xbf16>, vector<32x128xbf16>, vector<8x128xf32> -> vector<8x128xf32>
    %200 = arith.addf %198, %199 : vector<8x128xf32>
    %201 = vector.broadcast %1 : vector<1x128xf32> to vector<8x128xf32>
    %202 = arith.addf %200, %201 : vector<8x128xf32>
    %203 = vector.extract_strided_slice %202 {offsets = [0, 0], sizes = [8, 32], strides = [1, 1]} : vector<8x128xf32> to vector<8x32xf32>
    %204 = arith.negf %203 : vector<8x32xf32>
    %205 = math.exp %204 : vector<8x32xf32>
    %cst_75 = arith.constant 1.000000e+00 : f32
    %206 = vector.broadcast %cst_75 : f32 to vector<8x32xf32>
    %207 = arith.addf %206, %205 : vector<8x32xf32>
    %208 = arith.divf %206, %207 : vector<8x32xf32>
    %209 = vector.extract_strided_slice %202 {offsets = [0, 32], sizes = [8, 32], strides = [1, 1]} : vector<8x128xf32> to vector<8x32xf32>
    %210 = arith.negf %209 : vector<8x32xf32>
    %211 = math.exp %210 : vector<8x32xf32>
    %cst_76 = arith.constant 1.000000e+00 : f32
    %212 = vector.broadcast %cst_76 : f32 to vector<8x32xf32>
    %213 = arith.addf %212, %211 : vector<8x32xf32>
    %214 = arith.divf %212, %213 : vector<8x32xf32>
    %215 = vector.extract_strided_slice %202 {offsets = [0, 64], sizes = [8, 32], strides = [1, 1]} : vector<8x128xf32> to vector<8x32xf32>
    %216 = vector.extract_strided_slice %202 {offsets = [0, 96], sizes = [8, 32], strides = [1, 1]} : vector<8x128xf32> to vector<8x32xf32>
    %217 = arith.mulf %208, %216 : vector<8x32xf32>
    %218 = arith.addf %215, %217 : vector<8x32xf32>
    %219 = math.tanh %218 : vector<8x32xf32>
    %cst_77 = arith.constant 1.000000e+00 : f32
    %220 = vector.broadcast %cst_77 : f32 to vector<8x32xf32>
    %221 = arith.subf %220, %214 : vector<8x32xf32>
    %222 = arith.mulf %221, %219 : vector<8x32xf32>
    %223 = arith.mulf %214, %148 : vector<8x32xf32>
    %224 = arith.addf %222, %223 : vector<8x32xf32>
    %225 = arith.truncf %224 : vector<8x32xf32> to vector<8x32xbf16>
    %cst_78 = arith.constant dense<0.000000e+00> : vector<8x16xf32>
    %226 = tpu.matmul %225, %12, %cst_78 {dimension_numbers = #tpu.dot_dimension_numbers<[1], [0], [0], [1], [0, 0, 1, 1], [], []>} : vector<8x32xbf16>, vector<32x16xbf16>, vector<8x16xf32> -> vector<8x16xf32>
    %227 = vector.broadcast %3 : vector<1x16xf32> to vector<8x16xf32>
    %228 = arith.addf %226, %227 : vector<8x16xf32>
    %cst_79 = arith.constant dense<0xFF800000> : vector<8xf32>
    %229 = vector.multi_reduction <maximumf>, %228, %cst_79 [1] : vector<8x16xf32> to vector<8xf32>
    %230 = vector.shape_cast %229 : vector<8xf32> to vector<8x1xf32>
    %231 = vector.broadcast %230 : vector<8x1xf32> to vector<8x16xf32>
    %232 = arith.subf %228, %231 : vector<8x16xf32>
    %233 = math.exp %232 : vector<8x16xf32>
    %cst_80 = arith.constant dense<0.000000e+00> : vector<8xf32>
    %234 = vector.multi_reduction <add>, %233, %cst_80 [1] : vector<8x16xf32> to vector<8xf32>
    %235 = vector.shape_cast %234 : vector<8xf32> to vector<8x1xf32>
    %236 = math.log %235 : vector<8x1xf32>
    %237 = vector.broadcast %236 : vector<8x1xf32> to vector<8x16xf32>
    %238 = arith.subf %232, %237 : vector<8x16xf32>
    %239 = tpu.concatenate %238, %224, %184, %13 in 1 : vector<8x16xf32>, vector<8x32xf32>, vector<8x10xf32>, vector<8x70xf32> -> vector<8x128xf32>
    %c2_81 = arith.constant 2 : index
    %c0_82 = arith.constant 0 : index
    %c0_83 = arith.constant 0 : index
    %240 = vector.load %arg12[%c2_81, %c0_82, %c0_83] : memref<6x8x128xf32, #tpu.memory_space<vmem>>, vector<1x8x128xf32>
    %241 = vector.shape_cast %240 : vector<1x8x128xf32> to vector<8x128xf32>
    %242 = vector.shape_cast %239 : vector<8x128xf32> to vector<1x8x128xf32>
    tpu.vector_store %arg12[%c2_81, %c0_82, %c0_83], %242 {strides = array<i32>} : memref<6x8x128xf32, #tpu.memory_space<vmem>>, vector<1x8x128xf32>,
    %c3 = arith.constant 3 : index
    %c0_84 = arith.constant 0 : index
    %c0_85 = arith.constant 0 : index
    %243 = vector.load %arg1[%c3, %c0_84, %c0_85] : memref<6x8x32xbf16, #tpu.memory_space<vmem>>, vector<1x8x32xbf16>
    %244 = vector.shape_cast %243 : vector<1x8x32xbf16> to vector<8x32xbf16>
    %245 = arith.truncf %224 : vector<8x32xf32> to vector<8x32xbf16>
    %cst_86 = arith.constant dense<0.000000e+00> : vector<8x10xf32>
    %246 = tpu.matmul %244, %6, %cst_86 {dimension_numbers = #tpu.dot_dimension_numbers<[1], [0], [0], [1], [0, 0, 1, 1], [], []>} : vector<8x32xbf16>, vector<32x10xbf16>, vector<8x10xf32> -> vector<8x10xf32>
    %cst_87 = arith.constant dense<0.000000e+00> : vector<8x10xf32>
    %247 = tpu.matmul %245, %7, %cst_87 {dimension_numbers = #tpu.dot_dimension_numbers<[1], [0], [0], [1], [0, 0, 1, 1], [], []>} : vector<8x32xbf16>, vector<32x10xbf16>, vector<8x10xf32> -> vector<8x10xf32>
    %248 = arith.addf %246, %247 : vector<8x10xf32>
    %249 = vector.broadcast %4 : vector<1x10xf32> to vector<8x10xf32>
    %250 = arith.addf %248, %249 : vector<8x10xf32>
    %cst_88 = arith.constant dense<0xFF800000> : vector<8xf32>
    %251 = vector.multi_reduction <maximumf>, %250, %cst_88 [1] : vector<8x10xf32> to vector<8xf32>
    %252 = vector.shape_cast %251 : vector<8xf32> to vector<8x1xf32>
    %253 = vector.broadcast %252 : vector<8x1xf32> to vector<8x10xf32>
    %254 = arith.subf %250, %253 : vector<8x10xf32>
    %255 = math.exp %254 : vector<8x10xf32>
    %cst_89 = arith.constant dense<0.000000e+00> : vector<8xf32>
    %256 = vector.multi_reduction <add>, %255, %cst_89 [1] : vector<8x10xf32> to vector<8xf32>
    %257 = vector.shape_cast %256 : vector<8xf32> to vector<8x1xf32>
    %258 = tpu.reciprocal %257 {approx = true} : vector<8x1xf32> -> vector<8x1xf32>
    %259 = vector.broadcast %258 : vector<8x1xf32> to vector<8x10xf32>
    %260 = arith.mulf %255, %259 : vector<8x10xf32>
    %261 = vector.shape_cast %260 : vector<8x10xf32> to vector<8x1x10xf32>
    %262 = vector.broadcast %261 : vector<8x1x10xf32> to vector<8x32x10xf32>
    %263 = arith.mulf %262, %5 : vector<8x32x10xf32>
    %cst_90 = arith.constant dense<0.000000e+00> : vector<8x32xf32>
    %264 = vector.multi_reduction <add>, %263, %cst_90 [2] : vector<8x32x10xf32> to vector<8x32xf32>
    %cst_91 = arith.constant dense<0.000000e+00> : vector<8x32xf32>
    %265 = tpu.matmul %244, %8, %cst_91 {dimension_numbers = #tpu.dot_dimension_numbers<[1], [0], [0], [1], [0, 0, 1, 1], [], []>} : vector<8x32xbf16>, vector<32x32xbf16>, vector<8x32xf32> -> vector<8x32xf32>
    %266 = arith.truncf %264 : vector<8x32xf32> to vector<8x32xbf16>
    %cst_92 = arith.constant dense<0.000000e+00> : vector<8x32xf32>
    %267 = tpu.matmul %266, %9, %cst_92 {dimension_numbers = #tpu.dot_dimension_numbers<[1], [0], [0], [1], [0, 0, 1, 1], [], []>} : vector<8x32xbf16>, vector<32x32xbf16>, vector<8x32xf32> -> vector<8x32xf32>
    %268 = arith.addf %265, %267 : vector<8x32xf32>
    %269 = vector.broadcast %2 : vector<1x32xf32> to vector<8x32xf32>
    %270 = arith.addf %268, %269 : vector<8x32xf32>
    %cst_93 = arith.constant 0.000000e+00 : f32
    %271 = vector.broadcast %cst_93 : f32 to vector<8x32xf32>
    %272 = arith.maximumf %270, %271 : vector<8x32xf32>
    %273 = arith.truncf %272 : vector<8x32xf32> to vector<8x32xbf16>
    %cst_94 = arith.constant dense<0.000000e+00> : vector<8x128xf32>
    %274 = tpu.matmul %273, %10, %cst_94 {dimension_numbers = #tpu.dot_dimension_numbers<[1], [0], [0], [1], [0, 0, 1, 1], [], []>} : vector<8x32xbf16>, vector<32x128xbf16>, vector<8x128xf32> -> vector<8x128xf32>
    %cst_95 = arith.constant dense<0.000000e+00> : vector<8x128xf32>
    %275 = tpu.matmul %245, %11, %cst_95 {dimension_numbers = #tpu.dot_dimension_numbers<[1], [0], [0], [1], [0, 0, 1, 1], [], []>} : vector<8x32xbf16>, vector<32x128xbf16>, vector<8x128xf32> -> vector<8x128xf32>
    %276 = arith.addf %274, %275 : vector<8x128xf32>
    %277 = vector.broadcast %1 : vector<1x128xf32> to vector<8x128xf32>
    %278 = arith.addf %276, %277 : vector<8x128xf32>
    %279 = vector.extract_strided_slice %278 {offsets = [0, 0], sizes = [8, 32], strides = [1, 1]} : vector<8x128xf32> to vector<8x32xf32>
    %280 = arith.negf %279 : vector<8x32xf32>
    %281 = math.exp %280 : vector<8x32xf32>
    %cst_96 = arith.constant 1.000000e+00 : f32
    %282 = vector.broadcast %cst_96 : f32 to vector<8x32xf32>
    %283 = arith.addf %282, %281 : vector<8x32xf32>
    %284 = arith.divf %282, %283 : vector<8x32xf32>
    %285 = vector.extract_strided_slice %278 {offsets = [0, 32], sizes = [8, 32], strides = [1, 1]} : vector<8x128xf32> to vector<8x32xf32>
    %286 = arith.negf %285 : vector<8x32xf32>
    %287 = math.exp %286 : vector<8x32xf32>
    %cst_97 = arith.constant 1.000000e+00 : f32
    %288 = vector.broadcast %cst_97 : f32 to vector<8x32xf32>
    %289 = arith.addf %288, %287 : vector<8x32xf32>
    %290 = arith.divf %288, %289 : vector<8x32xf32>
    %291 = vector.extract_strided_slice %278 {offsets = [0, 64], sizes = [8, 32], strides = [1, 1]} : vector<8x128xf32> to vector<8x32xf32>
    %292 = vector.extract_strided_slice %278 {offsets = [0, 96], sizes = [8, 32], strides = [1, 1]} : vector<8x128xf32> to vector<8x32xf32>
    %293 = arith.mulf %284, %292 : vector<8x32xf32>
    %294 = arith.addf %291, %293 : vector<8x32xf32>
    %295 = math.tanh %294 : vector<8x32xf32>
    %cst_98 = arith.constant 1.000000e+00 : f32
    %296 = vector.broadcast %cst_98 : f32 to vector<8x32xf32>
    %297 = arith.subf %296, %290 : vector<8x32xf32>
    %298 = arith.mulf %297, %295 : vector<8x32xf32>
    %299 = arith.mulf %290, %224 : vector<8x32xf32>
    %300 = arith.addf %298, %299 : vector<8x32xf32>
    %301 = arith.truncf %300 : vector<8x32xf32> to vector<8x32xbf16>
    %cst_99 = arith.constant dense<0.000000e+00> : vector<8x16xf32>
    %302 = tpu.matmul %301, %12, %cst_99 {dimension_numbers = #tpu.dot_dimension_numbers<[1], [0], [0], [1], [0, 0, 1, 1], [], []>} : vector<8x32xbf16>, vector<32x16xbf16>, vector<8x16xf32> -> vector<8x16xf32>
    %303 = vector.broadcast %3 : vector<1x16xf32> to vector<8x16xf32>
    %304 = arith.addf %302, %303 : vector<8x16xf32>
    %cst_100 = arith.constant dense<0xFF800000> : vector<8xf32>
    %305 = vector.multi_reduction <maximumf>, %304, %cst_100 [1] : vector<8x16xf32> to vector<8xf32>
    %306 = vector.shape_cast %305 : vector<8xf32> to vector<8x1xf32>
    %307 = vector.broadcast %306 : vector<8x1xf32> to vector<8x16xf32>
    %308 = arith.subf %304, %307 : vector<8x16xf32>
    %309 = math.exp %308 : vector<8x16xf32>
    %cst_101 = arith.constant dense<0.000000e+00> : vector<8xf32>
    %310 = vector.multi_reduction <add>, %309, %cst_101 [1] : vector<8x16xf32> to vector<8xf32>
    %311 = vector.shape_cast %310 : vector<8xf32> to vector<8x1xf32>
    %312 = math.log %311 : vector<8x1xf32>
    %313 = vector.broadcast %312 : vector<8x1xf32> to vector<8x16xf32>
    %314 = arith.subf %308, %313 : vector<8x16xf32>
    %315 = tpu.concatenate %314, %300, %260, %13 in 1 : vector<8x16xf32>, vector<8x32xf32>, vector<8x10xf32>, vector<8x70xf32> -> vector<8x128xf32>
    %c3_102 = arith.constant 3 : index
    %c0_103 = arith.constant 0 : index
    %c0_104 = arith.constant 0 : index
    %316 = vector.load %arg12[%c3_102, %c0_103, %c0_104] : memref<6x8x128xf32, #tpu.memory_space<vmem>>, vector<1x8x128xf32>
    %317 = vector.shape_cast %316 : vector<1x8x128xf32> to vector<8x128xf32>
    %318 = vector.shape_cast %315 : vector<8x128xf32> to vector<1x8x128xf32>
    tpu.vector_store %arg12[%c3_102, %c0_103, %c0_104], %318 {strides = array<i32>} : memref<6x8x128xf32, #tpu.memory_space<vmem>>, vector<1x8x128xf32>,
    %c4 = arith.constant 4 : index
    %c0_105 = arith.constant 0 : index
    %c0_106 = arith.constant 0 : index
    %319 = vector.load %arg1[%c4, %c0_105, %c0_106] : memref<6x8x32xbf16, #tpu.memory_space<vmem>>, vector<1x8x32xbf16>
    %320 = vector.shape_cast %319 : vector<1x8x32xbf16> to vector<8x32xbf16>
    %321 = arith.truncf %300 : vector<8x32xf32> to vector<8x32xbf16>
    %cst_107 = arith.constant dense<0.000000e+00> : vector<8x10xf32>
    %322 = tpu.matmul %320, %6, %cst_107 {dimension_numbers = #tpu.dot_dimension_numbers<[1], [0], [0], [1], [0, 0, 1, 1], [], []>} : vector<8x32xbf16>, vector<32x10xbf16>, vector<8x10xf32> -> vector<8x10xf32>
    %cst_108 = arith.constant dense<0.000000e+00> : vector<8x10xf32>
    %323 = tpu.matmul %321, %7, %cst_108 {dimension_numbers = #tpu.dot_dimension_numbers<[1], [0], [0], [1], [0, 0, 1, 1], [], []>} : vector<8x32xbf16>, vector<32x10xbf16>, vector<8x10xf32> -> vector<8x10xf32>
    %324 = arith.addf %322, %323 : vector<8x10xf32>
    %325 = vector.broadcast %4 : vector<1x10xf32> to vector<8x10xf32>
    %326 = arith.addf %324, %325 : vector<8x10xf32>
    %cst_109 = arith.constant dense<0xFF800000> : vector<8xf32>
    %327 = vector.multi_reduction <maximumf>, %326, %cst_109 [1] : vector<8x10xf32> to vector<8xf32>
    %328 = vector.shape_cast %327 : vector<8xf32> to vector<8x1xf32>
    %329 = vector.broadcast %328 : vector<8x1xf32> to vector<8x10xf32>
    %330 = arith.subf %326, %329 : vector<8x10xf32>
    %331 = math.exp %330 : vector<8x10xf32>
    %cst_110 = arith.constant dense<0.000000e+00> : vector<8xf32>
    %332 = vector.multi_reduction <add>, %331, %cst_110 [1] : vector<8x10xf32> to vector<8xf32>
    %333 = vector.shape_cast %332 : vector<8xf32> to vector<8x1xf32>
    %334 = tpu.reciprocal %333 {approx = true} : vector<8x1xf32> -> vector<8x1xf32>
    %335 = vector.broadcast %334 : vector<8x1xf32> to vector<8x10xf32>
    %336 = arith.mulf %331, %335 : vector<8x10xf32>
    %337 = vector.shape_cast %336 : vector<8x10xf32> to vector<8x1x10xf32>
    %338 = vector.broadcast %337 : vector<8x1x10xf32> to vector<8x32x10xf32>
    %339 = arith.mulf %338, %5 : vector<8x32x10xf32>
    %cst_111 = arith.constant dense<0.000000e+00> : vector<8x32xf32>
    %340 = vector.multi_reduction <add>, %339, %cst_111 [2] : vector<8x32x10xf32> to vector<8x32xf32>
    %cst_112 = arith.constant dense<0.000000e+00> : vector<8x32xf32>
    %341 = tpu.matmul %320, %8, %cst_112 {dimension_numbers = #tpu.dot_dimension_numbers<[1], [0], [0], [1], [0, 0, 1, 1], [], []>} : vector<8x32xbf16>, vector<32x32xbf16>, vector<8x32xf32> -> vector<8x32xf32>
    %342 = arith.truncf %340 : vector<8x32xf32> to vector<8x32xbf16>
    %cst_113 = arith.constant dense<0.000000e+00> : vector<8x32xf32>
    %343 = tpu.matmul %342, %9, %cst_113 {dimension_numbers = #tpu.dot_dimension_numbers<[1], [0], [0], [1], [0, 0, 1, 1], [], []>} : vector<8x32xbf16>, vector<32x32xbf16>, vector<8x32xf32> -> vector<8x32xf32>
    %344 = arith.addf %341, %343 : vector<8x32xf32>
    %345 = vector.broadcast %2 : vector<1x32xf32> to vector<8x32xf32>
    %346 = arith.addf %344, %345 : vector<8x32xf32>
    %cst_114 = arith.constant 0.000000e+00 : f32
    %347 = vector.broadcast %cst_114 : f32 to vector<8x32xf32>
    %348 = arith.maximumf %346, %347 : vector<8x32xf32>
    %349 = arith.truncf %348 : vector<8x32xf32> to vector<8x32xbf16>
    %cst_115 = arith.constant dense<0.000000e+00> : vector<8x128xf32>
    %350 = tpu.matmul %349, %10, %cst_115 {dimension_numbers = #tpu.dot_dimension_numbers<[1], [0], [0], [1], [0, 0, 1, 1], [], []>} : vector<8x32xbf16>, vector<32x128xbf16>, vector<8x128xf32> -> vector<8x128xf32>
    %cst_116 = arith.constant dense<0.000000e+00> : vector<8x128xf32>
    %351 = tpu.matmul %321, %11, %cst_116 {dimension_numbers = #tpu.dot_dimension_numbers<[1], [0], [0], [1], [0, 0, 1, 1], [], []>} : vector<8x32xbf16>, vector<32x128xbf16>, vector<8x128xf32> -> vector<8x128xf32>
    %352 = arith.addf %350, %351 : vector<8x128xf32>
    %353 = vector.broadcast %1 : vector<1x128xf32> to vector<8x128xf32>
    %354 = arith.addf %352, %353 : vector<8x128xf32>
    %355 = vector.extract_strided_slice %354 {offsets = [0, 0], sizes = [8, 32], strides = [1, 1]} : vector<8x128xf32> to vector<8x32xf32>
    %356 = arith.negf %355 : vector<8x32xf32>
    %357 = math.exp %356 : vector<8x32xf32>
    %cst_117 = arith.constant 1.000000e+00 : f32
    %358 = vector.broadcast %cst_117 : f32 to vector<8x32xf32>
    %359 = arith.addf %358, %357 : vector<8x32xf32>
    %360 = arith.divf %358, %359 : vector<8x32xf32>
    %361 = vector.extract_strided_slice %354 {offsets = [0, 32], sizes = [8, 32], strides = [1, 1]} : vector<8x128xf32> to vector<8x32xf32>
    %362 = arith.negf %361 : vector<8x32xf32>
    %363 = math.exp %362 : vector<8x32xf32>
    %cst_118 = arith.constant 1.000000e+00 : f32
    %364 = vector.broadcast %cst_118 : f32 to vector<8x32xf32>
    %365 = arith.addf %364, %363 : vector<8x32xf32>
    %366 = arith.divf %364, %365 : vector<8x32xf32>
    %367 = vector.extract_strided_slice %354 {offsets = [0, 64], sizes = [8, 32], strides = [1, 1]} : vector<8x128xf32> to vector<8x32xf32>
    %368 = vector.extract_strided_slice %354 {offsets = [0, 96], sizes = [8, 32], strides = [1, 1]} : vector<8x128xf32> to vector<8x32xf32>
    %369 = arith.mulf %360, %368 : vector<8x32xf32>
    %370 = arith.addf %367, %369 : vector<8x32xf32>
    %371 = math.tanh %370 : vector<8x32xf32>
    %cst_119 = arith.constant 1.000000e+00 : f32
    %372 = vector.broadcast %cst_119 : f32 to vector<8x32xf32>
    %373 = arith.subf %372, %366 : vector<8x32xf32>
    %374 = arith.mulf %373, %371 : vector<8x32xf32>
    %375 = arith.mulf %366, %300 : vector<8x32xf32>
    %376 = arith.addf %374, %375 : vector<8x32xf32>
    %377 = arith.truncf %376 : vector<8x32xf32> to vector<8x32xbf16>
    %cst_120 = arith.constant dense<0.000000e+00> : vector<8x16xf32>
    %378 = tpu.matmul %377, %12, %cst_120 {dimension_numbers = #tpu.dot_dimension_numbers<[1], [0], [0], [1], [0, 0, 1, 1], [], []>} : vector<8x32xbf16>, vector<32x16xbf16>, vector<8x16xf32> -> vector<8x16xf32>
    %379 = vector.broadcast %3 : vector<1x16xf32> to vector<8x16xf32>
    %380 = arith.addf %378, %379 : vector<8x16xf32>
    %cst_121 = arith.constant dense<0xFF800000> : vector<8xf32>
    %381 = vector.multi_reduction <maximumf>, %380, %cst_121 [1] : vector<8x16xf32> to vector<8xf32>
    %382 = vector.shape_cast %381 : vector<8xf32> to vector<8x1xf32>
    %383 = vector.broadcast %382 : vector<8x1xf32> to vector<8x16xf32>
    %384 = arith.subf %380, %383 : vector<8x16xf32>
    %385 = math.exp %384 : vector<8x16xf32>
    %cst_122 = arith.constant dense<0.000000e+00> : vector<8xf32>
    %386 = vector.multi_reduction <add>, %385, %cst_122 [1] : vector<8x16xf32> to vector<8xf32>
    %387 = vector.shape_cast %386 : vector<8xf32> to vector<8x1xf32>
    %388 = math.log %387 : vector<8x1xf32>
    %389 = vector.broadcast %388 : vector<8x1xf32> to vector<8x16xf32>
    %390 = arith.subf %384, %389 : vector<8x16xf32>
    %391 = tpu.concatenate %390, %376, %336, %13 in 1 : vector<8x16xf32>, vector<8x32xf32>, vector<8x10xf32>, vector<8x70xf32> -> vector<8x128xf32>
    %c4_123 = arith.constant 4 : index
    %c0_124 = arith.constant 0 : index
    %c0_125 = arith.constant 0 : index
    %392 = vector.load %arg12[%c4_123, %c0_124, %c0_125] : memref<6x8x128xf32, #tpu.memory_space<vmem>>, vector<1x8x128xf32>
    %393 = vector.shape_cast %392 : vector<1x8x128xf32> to vector<8x128xf32>
    %394 = vector.shape_cast %391 : vector<8x128xf32> to vector<1x8x128xf32>
    tpu.vector_store %arg12[%c4_123, %c0_124, %c0_125], %394 {strides = array<i32>} : memref<6x8x128xf32, #tpu.memory_space<vmem>>, vector<1x8x128xf32>,
    %c5 = arith.constant 5 : index
    %c0_126 = arith.constant 0 : index
    %c0_127 = arith.constant 0 : index
    %395 = vector.load %arg1[%c5, %c0_126, %c0_127] : memref<6x8x32xbf16, #tpu.memory_space<vmem>>, vector<1x8x32xbf16>
    %396 = vector.shape_cast %395 : vector<1x8x32xbf16> to vector<8x32xbf16>
    %397 = arith.truncf %376 : vector<8x32xf32> to vector<8x32xbf16>
    %cst_128 = arith.constant dense<0.000000e+00> : vector<8x10xf32>
    %398 = tpu.matmul %396, %6, %cst_128 {dimension_numbers = #tpu.dot_dimension_numbers<[1], [0], [0], [1], [0, 0, 1, 1], [], []>} : vector<8x32xbf16>, vector<32x10xbf16>, vector<8x10xf32> -> vector<8x10xf32>
    %cst_129 = arith.constant dense<0.000000e+00> : vector<8x10xf32>
    %399 = tpu.matmul %397, %7, %cst_129 {dimension_numbers = #tpu.dot_dimension_numbers<[1], [0], [0], [1], [0, 0, 1, 1], [], []>} : vector<8x32xbf16>, vector<32x10xbf16>, vector<8x10xf32> -> vector<8x10xf32>
    %400 = arith.addf %398, %399 : vector<8x10xf32>
    %401 = vector.broadcast %4 : vector<1x10xf32> to vector<8x10xf32>
    %402 = arith.addf %400, %401 : vector<8x10xf32>
    %cst_130 = arith.constant dense<0xFF800000> : vector<8xf32>
    %403 = vector.multi_reduction <maximumf>, %402, %cst_130 [1] : vector<8x10xf32> to vector<8xf32>
    %404 = vector.shape_cast %403 : vector<8xf32> to vector<8x1xf32>
    %405 = vector.broadcast %404 : vector<8x1xf32> to vector<8x10xf32>
    %406 = arith.subf %402, %405 : vector<8x10xf32>
    %407 = math.exp %406 : vector<8x10xf32>
    %cst_131 = arith.constant dense<0.000000e+00> : vector<8xf32>
    %408 = vector.multi_reduction <add>, %407, %cst_131 [1] : vector<8x10xf32> to vector<8xf32>
    %409 = vector.shape_cast %408 : vector<8xf32> to vector<8x1xf32>
    %410 = tpu.reciprocal %409 {approx = true} : vector<8x1xf32> -> vector<8x1xf32>
    %411 = vector.broadcast %410 : vector<8x1xf32> to vector<8x10xf32>
    %412 = arith.mulf %407, %411 : vector<8x10xf32>
    %413 = vector.shape_cast %412 : vector<8x10xf32> to vector<8x1x10xf32>
    %414 = vector.broadcast %413 : vector<8x1x10xf32> to vector<8x32x10xf32>
    %415 = arith.mulf %414, %5 : vector<8x32x10xf32>
    %cst_132 = arith.constant dense<0.000000e+00> : vector<8x32xf32>
    %416 = vector.multi_reduction <add>, %415, %cst_132 [2] : vector<8x32x10xf32> to vector<8x32xf32>
    %cst_133 = arith.constant dense<0.000000e+00> : vector<8x32xf32>
    %417 = tpu.matmul %396, %8, %cst_133 {dimension_numbers = #tpu.dot_dimension_numbers<[1], [0], [0], [1], [0, 0, 1, 1], [], []>} : vector<8x32xbf16>, vector<32x32xbf16>, vector<8x32xf32> -> vector<8x32xf32>
    %418 = arith.truncf %416 : vector<8x32xf32> to vector<8x32xbf16>
    %cst_134 = arith.constant dense<0.000000e+00> : vector<8x32xf32>
    %419 = tpu.matmul %418, %9, %cst_134 {dimension_numbers = #tpu.dot_dimension_numbers<[1], [0], [0], [1], [0, 0, 1, 1], [], []>} : vector<8x32xbf16>, vector<32x32xbf16>, vector<8x32xf32> -> vector<8x32xf32>
    %420 = arith.addf %417, %419 : vector<8x32xf32>
    %421 = vector.broadcast %2 : vector<1x32xf32> to vector<8x32xf32>
    %422 = arith.addf %420, %421 : vector<8x32xf32>
    %cst_135 = arith.constant 0.000000e+00 : f32
    %423 = vector.broadcast %cst_135 : f32 to vector<8x32xf32>
    %424 = arith.maximumf %422, %423 : vector<8x32xf32>
    %425 = arith.truncf %424 : vector<8x32xf32> to vector<8x32xbf16>
    %cst_136 = arith.constant dense<0.000000e+00> : vector<8x128xf32>
    %426 = tpu.matmul %425, %10, %cst_136 {dimension_numbers = #tpu.dot_dimension_numbers<[1], [0], [0], [1], [0, 0, 1, 1], [], []>} : vector<8x32xbf16>, vector<32x128xbf16>, vector<8x128xf32> -> vector<8x128xf32>
    %cst_137 = arith.constant dense<0.000000e+00> : vector<8x128xf32>
    %427 = tpu.matmul %397, %11, %cst_137 {dimension_numbers = #tpu.dot_dimension_numbers<[1], [0], [0], [1], [0, 0, 1, 1], [], []>} : vector<8x32xbf16>, vector<32x128xbf16>, vector<8x128xf32> -> vector<8x128xf32>
    %428 = arith.addf %426, %427 : vector<8x128xf32>
    %429 = vector.broadcast %1 : vector<1x128xf32> to vector<8x128xf32>
    %430 = arith.addf %428, %429 : vector<8x128xf32>
    %431 = vector.extract_strided_slice %430 {offsets = [0, 0], sizes = [8, 32], strides = [1, 1]} : vector<8x128xf32> to vector<8x32xf32>
    %432 = arith.negf %431 : vector<8x32xf32>
    %433 = math.exp %432 : vector<8x32xf32>
    %cst_138 = arith.constant 1.000000e+00 : f32
    %434 = vector.broadcast %cst_138 : f32 to vector<8x32xf32>
    %435 = arith.addf %434, %433 : vector<8x32xf32>
    %436 = arith.divf %434, %435 : vector<8x32xf32>
    %437 = vector.extract_strided_slice %430 {offsets = [0, 32], sizes = [8, 32], strides = [1, 1]} : vector<8x128xf32> to vector<8x32xf32>
    %438 = arith.negf %437 : vector<8x32xf32>
    %439 = math.exp %438 : vector<8x32xf32>
    %cst_139 = arith.constant 1.000000e+00 : f32
    %440 = vector.broadcast %cst_139 : f32 to vector<8x32xf32>
    %441 = arith.addf %440, %439 : vector<8x32xf32>
    %442 = arith.divf %440, %441 : vector<8x32xf32>
    %443 = vector.extract_strided_slice %430 {offsets = [0, 64], sizes = [8, 32], strides = [1, 1]} : vector<8x128xf32> to vector<8x32xf32>
    %444 = vector.extract_strided_slice %430 {offsets = [0, 96], sizes = [8, 32], strides = [1, 1]} : vector<8x128xf32> to vector<8x32xf32>
    %445 = arith.mulf %436, %444 : vector<8x32xf32>
    %446 = arith.addf %443, %445 : vector<8x32xf32>
    %447 = math.tanh %446 : vector<8x32xf32>
    %cst_140 = arith.constant 1.000000e+00 : f32
    %448 = vector.broadcast %cst_140 : f32 to vector<8x32xf32>
    %449 = arith.subf %448, %442 : vector<8x32xf32>
    %450 = arith.mulf %449, %447 : vector<8x32xf32>
    %451 = arith.mulf %442, %376 : vector<8x32xf32>
    %452 = arith.addf %450, %451 : vector<8x32xf32>
    %453 = arith.truncf %452 : vector<8x32xf32> to vector<8x32xbf16>
    %cst_141 = arith.constant dense<0.000000e+00> : vector<8x16xf32>
    %454 = tpu.matmul %453, %12, %cst_141 {dimension_numbers = #tpu.dot_dimension_numbers<[1], [0], [0], [1], [0, 0, 1, 1], [], []>} : vector<8x32xbf16>, vector<32x16xbf16>, vector<8x16xf32> -> vector<8x16xf32>
    %455 = vector.broadcast %3 : vector<1x16xf32> to vector<8x16xf32>
    %456 = arith.addf %454, %455 : vector<8x16xf32>
    %cst_142 = arith.constant dense<0xFF800000> : vector<8xf32>
    %457 = vector.multi_reduction <maximumf>, %456, %cst_142 [1] : vector<8x16xf32> to vector<8xf32>
    %458 = vector.shape_cast %457 : vector<8xf32> to vector<8x1xf32>
    %459 = vector.broadcast %458 : vector<8x1xf32> to vector<8x16xf32>
    %460 = arith.subf %456, %459 : vector<8x16xf32>
    %461 = math.exp %460 : vector<8x16xf32>
    %cst_143 = arith.constant dense<0.000000e+00> : vector<8xf32>
    %462 = vector.multi_reduction <add>, %461, %cst_143 [1] : vector<8x16xf32> to vector<8xf32>
    %463 = vector.shape_cast %462 : vector<8xf32> to vector<8x1xf32>
    %464 = math.log %463 : vector<8x1xf32>
    %465 = vector.broadcast %464 : vector<8x1xf32> to vector<8x16xf32>
    %466 = arith.subf %460, %465 : vector<8x16xf32>
    %467 = tpu.concatenate %466, %452, %412, %13 in 1 : vector<8x16xf32>, vector<8x32xf32>, vector<8x10xf32>, vector<8x70xf32> -> vector<8x128xf32>
    %c5_144 = arith.constant 5 : index
    %c0_145 = arith.constant 0 : index
    %c0_146 = arith.constant 0 : index
    %468 = vector.load %arg12[%c5_144, %c0_145, %c0_146] : memref<6x8x128xf32, #tpu.memory_space<vmem>>, vector<1x8x128xf32>
    %469 = vector.shape_cast %468 : vector<1x8x128xf32> to vector<8x128xf32>
    %470 = vector.shape_cast %467 : vector<8x128xf32> to vector<1x8x128xf32>
    tpu.vector_store %arg12[%c5_144, %c0_145, %c0_146], %470 {strides = array<i32>} : memref<6x8x128xf32, #tpu.memory_space<vmem>>, vector<1x8x128xf32>,
    return
  }
  func.func @transform_0(%arg0: i32) -> (i32, i32, i32) {
    %c0_i32 = arith.constant 0 : i32
    %c0_i32_0 = arith.constant 0 : i32
    %c0_i32_1 = arith.constant 0 : i32
    return %c0_i32, %arg0, %c0_i32_0 : i32, i32, i32
  }
  func.func @transform_1(%arg0: i32) -> (i32, i32) {
    %c0_i32 = arith.constant 0 : i32
    %c0_i32_0 = arith.constant 0 : i32
    return %arg0, %c0_i32 : i32, i32
  }
  func.func @transform_2(%arg0: i32) -> (i32, i32, i32) {
    %c0_i32 = arith.constant 0 : i32
    %c0_i32_0 = arith.constant 0 : i32
    %c0_i32_1 = arith.constant 0 : i32
    return %arg0, %c0_i32, %c0_i32_0 : i32, i32, i32
  }
  func.func @transform_3(%arg0: i32) -> (i32, i32) {
    %c0_i32 = arith.constant 0 : i32
    %c0_i32_0 = arith.constant 0 : i32
    %c0_i32_1 = arith.constant 0 : i32
    return %c0_i32, %c0_i32_0 : i32, i32
  }
  func.func @transform_4(%arg0: i32) -> (i32, i32) {
    %c0_i32 = arith.constant 0 : i32
    %c0_i32_0 = arith.constant 0 : i32
    %c0_i32_1 = arith.constant 0 : i32
    return %c0_i32, %c0_i32_0 : i32, i32
  }
  func.func @transform_5(%arg0: i32) -> (i32, i32) {
    %c0_i32 = arith.constant 0 : i32
    %c0_i32_0 = arith.constant 0 : i32
    %c0_i32_1 = arith.constant 0 : i32
    return %c0_i32, %c0_i32_0 : i32, i32
  }
  func.func @transform_6(%arg0: i32) -> (i32, i32) {
    %c0_i32 = arith.constant 0 : i32
    %c0_i32_0 = arith.constant 0 : i32
    %c0_i32_1 = arith.constant 0 : i32
    return %c0_i32, %c0_i32_0 : i32, i32
  }
  func.func @transform_7(%arg0: i32) -> (i32, i32) {
    %c0_i32 = arith.constant 0 : i32
    %c0_i32_0 = arith.constant 0 : i32
    %c0_i32_1 = arith.constant 0 : i32
    return %c0_i32, %c0_i32_0 : i32, i32
  }
  func.func @transform_8(%arg0: i32) -> (i32, i32) {
    %c0_i32 = arith.constant 0 : i32
    %c0_i32_0 = arith.constant 0 : i32
    %c0_i32_1 = arith.constant 0 : i32
    return %c0_i32, %c0_i32_0 : i32, i32
  }
  func.func @transform_9(%arg0: i32) -> (i32, i32) {
    %c0_i32 = arith.constant 0 : i32
    %c0_i32_0 = arith.constant 0 : i32
    %c0_i32_1 = arith.constant 0 : i32
    return %c0_i32, %c0_i32_0 : i32, i32
  }
  func.func @transform_10(%arg0: i32) -> (i32, i32) {
    %c0_i32 = arith.constant 0 : i32
    %c0_i32_0 = arith.constant 0 : i32
    %c0_i32_1 = arith.constant 0 : i32
    return %c0_i32, %c0_i32_0 : i32, i32
  }
  func.func @transform_11(%arg0: i32) -> (i32, i32, i32) {
    %c0_i32 = arith.constant 0 : i32
    %c0_i32_0 = arith.constant 0 : i32
    %c0_i32_1 = arith.constant 0 : i32
    return %c0_i32, %arg0, %c0_i32_0 : i32, i32, i32
  }
}

</mosaic_0001>

<bundles_post_ra>
// kernel: attn_decoder_decode.1
= control target key start
LH: loop header
LB: loop body
LE: loop exit
PB: predicated region body
PF: predicated region fallthrough
CT: control target
= control target key end

     0   :  { %vm115_vm0 = vcmask 261120   ;;  %vm162_vm1 = vcmask 80896   ;;  %vm395_vm2 = vcmask 130112   ;;  %vm399_vm3 = vcmask 195712   ;;  %s3327_s30 = smov 32   ;;  %s3328_s12 = smov 64   ;;  %s5267_s4 = inlined_call_operand.vmem [shape: bf16[32,10], index: 4, kind: input, shape index: {}]   ;;  %s5268_s3 = inlined_call_operand.vmem [shape: bf16[32,10], index: 3, kind: input, shape index: {}]   ;;  %s5269_s1 = inlined_call_operand.vmem [shape: f32[8,32], index: 1, kind: input, shape index: {}]   ;;  %s5270_s0 = inlined_call_operand.vmem [shape: bf16[6,8,32], index: 0, kind: input, shape index: {}]   ;;  %s5271_s10 = inlined_call_operand.vmem [shape: f32[4,128], index: 10, kind: input, shape index: {}]   ;;  %s5272_s2 = inlined_call_operand.vmem [shape: f32[8,32,10], index: 2, kind: input, shape index: {}]   ;;  %s5273_s5 = inlined_call_operand.vmem [shape: bf16[32,32], index: 5, kind: input, shape index: {}]   ;;  %s5274_s6 = inlined_call_operand.vmem [shape: bf16[32,32], index: 6, kind: input, shape index: {}]   ;;  %s5275_s8 = inlined_call_operand.vmem [shape: bf16[32,128], index: 8, kind: input, shape index: {}]   ;;  %s5276_s7 = inlined_call_operand.vmem [shape: bf16[32,128], index: 7, kind: input, shape index: {}]   ;;  %s5277_s9 = inlined_call_operand.vmem [shape: bf16[32,16], index: 9, kind: input, shape index: {}]   ;;  %s5278_s11 = inlined_call_operand.vmem [shape: f32[6,8,128], index: 11, kind: output, shape index: {}]  }
   0x1   :  { %v3395_v0 = vld [vmem:[%s5267_s4 + $0x8] sm:$0xff]  ;;  %v3407_v2 = vld [vmem:[%s5267_s4] sm:$0xff]  ;;  %v3450_v24 = vld [vmem:[%s5272_s2 + $0x10] sm:$0xff]  ;;  %vm403_vm4 = vcmask 261312   ;;  %vm454_vm5 = vcmask 1041409   ;;  %vm456_vm6 = vcmask 1042434  }
   0x2   :  { %v3400_v1 = vld [vmem:[%s5268_s3 + $0x8] sm:$0xff]  ;;  %125 = vmatpush.bf16.msra.mxu0 %v3395_v0  ;;  %v3412_v3 = vld [vmem:[%s5268_s3] sm:$0xff]  ;;  %v3477_v36 = vld [vmem:[%s5272_s2 + $0x38] sm:$0xff]  ;;  %vm458_vm7 = vcmask 1043459   ;;  %vm460_vm8 = vcmask 1044484   ;;  %vm462_vm9 = vcmask 1045509  }
   0x3   :  { %153 = vmatpush.bf16.msra.mxu1 %v3400_v1  ;;  %v3417_v4 = vld [vmem:[%s5269_s1] sm:$0xff]  ;;  %v3472_v35 = vld [vmem:[%s5272_s2 + $0x8] sm:$0xff]  ;;  %v3494_v46 = vld [vmem:[%s5272_s2 + $0x18] sm:$0xff]  ;;  %vm464_vm10 = vcmask 1046534   ;;  %vm466_vm11 = vcmask 1047559   ;;  %s3329_s13 = smov 96  }
   0x4   :  { %v3421_v5 = vpack.c.bf16 %v3417_v4, %v3417_v4  ;;  %v3428_v6 = vld [vmem:[%s5270_s0] sm:$0xf]  ;;  %v3483_v38 = vld [vmem:[%s5272_s2 + $0x28] sm:$0xff]  ;;  %v3499_v47 = vld [vmem:[%s5272_s2 + $0x50] sm:$0xff] }
   0x5   :  { %v3437_v7 = vld [vmem:[%s5271_s10] sm:$0xf]  ;;  %v3505_v49 = vld [vmem:[%s5272_s2 + $0x30] sm:$0xff]  ;;  %v3521_v58 = vld [vmem:[%s5272_s2 + $0x68] sm:$0xff] }
   0x6   :  { %126 = vmatpush.bf16.msra.mxu0 %v3407_v2  ;;  %v3440_v8 = vperm.slane %v3437_v7, 3  ;;  %v3455_v25 = vld [vmem:[%s5272_s2] sm:$0xff]  ;;  %5347 = vst [vmem:[#allocation3_spill] sm:$0xff] %v3521_v58  ;;  %v3527_v60 = vld [vmem:[%s5272_s2 + $0x48] sm:$0xff] }
   0x7   :  { %154 = vmatpush.bf16.msra.mxu1 %v3412_v3  ;;  %v3462_v28 = vld [vmem:[%s5272_s2 + $0x20] sm:$0xff] }
   0x8   :  { %v3516_v57 = vld [vmem:[%s5272_s2 + $0x40] sm:$0xff] }
   0x9   :  { %3029 = vmatmul.msk.bf16.vlgmr.msra.gmra.mxu0 %vm115_vm0, %v3421_v5 }
   0xa   :  { %3038 = vmatmul.msk.bf16.vlgmr.msra.gmra.mxu1 %vm115_vm0, %v3428_v6 }
  0x86   :  { %v128_v9 = vpop.f32.mrf.mxu0 }
  0x87   :  { %v156_v10 = vpop.f32.mrf.mxu1 }
  0x88   :  { %v157_v11 = vadd.f32 %v156_v10, %v128_v9 }
  0x8a   :  { %v161_v12 = vadd.f32 %v3440_v8, %v157_v11 }
  0x8c   :  { %v163_v13 = vsel %vm162_vm1, %v161_v12, -inf }
  0x8d   :  { %164 = vmax.xlane.f32.xlu0 %v163_v13  ;;  %v3538_v13 = vld [vmem:[%s5272_s2 + $0x58] sm:$0xff] }
  0x8e   :  { %v130_v14 = vpop.f32.mrf.mxu0 }
  0x8f   :  { %v158_v15 = vpop.f32.mrf.mxu1  ;;  %v3543_v14 = vld [vmem:[%s5272_s2 + $0x80] sm:$0xff] }
  0x90   :  { %5348 = vst [vmem:[#allocation4_spill] sm:$0xff] %v3543_v14 }
 0x100   :  { %v165_v16 = vpop.xlane.xlu0 %164 }
 0x101   :  { %v166_v17 = vsub.f32 %v161_v12, %v165_v16  ;;  %v3549_v16 = vld [vmem:[%s5272_s2 + $0x60] sm:$0xff] }
 0x102   :  { %5349 = vst [vmem:[#allocation5_spill] sm:$0xff] %v3549_v16 }
 0x103   :  { %v167_v18 = vmul.f32 1.442695, %v166_v17 }
 0x105   :  { %3154 = vpow2.f32 %v167_v18 }
 0x10b   :  { %v3155_v19 = vpop.eup %3154 }
 0x10c   :  { %v169_v20 = vsel %vm162_vm1, %v3155_v19, 0.0 }
 0x10d   :  { %170 = vadd.xlane.f32.xlu0 %v169_v20 }
 0x180   :  { %v171_v21 = vpop.xlane.xlu0 %170 }
 0x181   :  { %3156 = vrcp.f32 %v171_v21 }
 0x187   :  { %v3157_v22 = vpop.eup %3156 }
 0x188   :  { %v3445_v23 = vmul.f32 %v3157_v22, %v3155_v19  ;;  %v3559_v22 = vld [vmem:[%s5272_s2 + $0x70] sm:$0xff] }
 0x189   :  { %5350 = vst [vmem:[#allocation6_spill] sm:$0xff] %v3559_v22 }
 0x18a   :  { %5346 = vst [vmem:[#allocation2_spill] sm:$0xff] %v3445_v23  ;;  %v182_v26 = vperm.slane %v3445_v23, 0  ;;  %v175_v27 = vrot.slane %v3445_v23, 1  ;;  %v176_v41 = vrot.slane %v3445_v23, 2  ;;  %v177_v52 = vrot.slane %v3445_v23, 3 }
 0x18b   :  { %v178_v63 = vrot.slane %v3445_v23, 4 }
 0x18c   :  { %v200_v29 = vmul.f32 %v182_v26, %v3450_v24  ;;  %v198_v30 = vmul.f32 %v182_v26, %v3455_v25  ;;  %v183_v31 = vperm.slane %v175_v27, 0  ;;  %v199_v39 = vmul.f32 %v182_v26, %v3472_v35 }
 0x18d   :  { %v184_v45 = vperm.slane %v176_v41, 0  ;;  %v201_v50 = vmul.f32 %v182_v26, %v3494_v46  ;;  %v185_v56 = vperm.slane %v177_v52, 0  ;;  %v186_v12 = vperm.slane %v178_v63, 0  ;;  %v3564_v26 = vld [vmem:[%s5272_s2 + $0x98] sm:$0xff]  ;;  %v3586_v41 = vld [vmem:[%s5272_s2 + $0xb0] sm:$0xff] }
 0x18e   :  { %v236_v32 = vsel %vm162_vm1, %v200_v29, 0.0  ;;  %v230_v33 = vsel %vm162_vm1, %v198_v30, 0.0  ;;  %v202_v34 = vmul.f32 %v183_v31, %v3462_v28  ;;  %v205_v40 = vmul.f32 %v183_v31, %v3477_v36  ;;  %5351 = vst [vmem:[#allocation7_spill] sm:$0xff] %v3564_v26  ;;  %v3570_v29 = vld [vmem:[%s5272_s2 + $0x78] sm:$0xff] }
 0x18f   :  { %237 = vadd.xlane.f32.xlu0 %v236_v32  ;;  %231 = vadd.xlane.f32.xlu1 %v230_v33  ;;  %v203_v42 = vmul.f32 %v183_v31, %v3483_v38  ;;  %v233_v43 = vsel %vm162_vm1, %v199_v39, 0.0  ;;  %v208_v51 = vmul.f32 %v184_v45, %v3499_v47  ;;  %v204_v53 = vmul.f32 %v183_v31, %v3505_v49 }
 0x190   :  { %v242_v37 = vsel %vm162_vm1, %v202_v34, 0.0  ;;  %v251_v44 = vsel %vm162_vm1, %v205_v40, 0.0  ;;  %v239_v54 = vsel %vm162_vm1, %v201_v50, 0.0  ;;  %v206_v61 = vmul.f32 %v184_v45, %v3516_v57  ;;  %5352 = vst [vmem:[#allocation8_spill] sm:$0xff] %v3570_v29  ;;  %v3581_v40 = vld [vmem:[%s5272_s2 + $0x88] sm:$0xff] }
 0x191   :  { %243 = vadd.xlane.f32.xlu2 %v242_v37  ;;  %v245_v48 = vsel %vm162_vm1, %v203_v42, 0.0  ;;  %v260_v55 = vsel %vm162_vm1, %v208_v51, 0.0  ;;  %v248_v59 = vsel %vm162_vm1, %v204_v53, 0.0  ;;  %v211_v62 = vmul.f32 %v185_v56, %v3521_v58  ;;  %5353 = vst [vmem:[#allocation9_spill] sm:$0xff] %v3581_v40 }
 0x192   :  { %v207_v9 = vmul.f32 %v184_v45, %v3527_v60  ;;  %v254_v10 = vsel %vm162_vm1, %v206_v61, 0.0  ;;  %v209_v17 = vmul.f32 %v184_v45, %v3538_v13  ;;  %v214_v18 = vmul.f32 %v186_v12, %v3543_v14  ;;  %5354 = vst [vmem:[#allocation10_spill] sm:$0xff] %v3586_v41 }
 0x193   :  { %v269_v11 = vsel %vm162_vm1, %v211_v62, 0.0  ;;  %v210_v19 = vmul.f32 %v185_v56, %v3549_v16  ;;  %v212_v30 = vmul.f32 %v185_v56, %v3559_v22  ;;  %v217_v31 = vmul.f32 %v186_v12, %v3564_v26 }
 0x194   :  { %v257_v15 = vsel %vm162_vm1, %v207_v9, 0.0  ;;  %v263_v20 = vsel %vm162_vm1, %v209_v17, 0.0  ;;  %v278_v21 = vsel %vm162_vm1, %v214_v18, 0.0  ;;  %v179_v32 = vrot.slane %v3445_v23, 5  ;;  %v3630_v17 = vld [vmem:[%s5272_s2 + $0xe0] sm:$0xff] }
 0x195   :  { %v266_v27 = vsel %vm162_vm1, %v210_v19, 0.0  ;;  %v213_v33 = vmul.f32 %v185_v56, %v3570_v29  ;;  %v272_v34 = vsel %vm162_vm1, %v212_v30, 0.0  ;;  %v287_v37 = vsel %vm162_vm1, %v217_v31, 0.0  ;;  %5360 = vst [vmem:[#allocation16_spill] sm:$0xff] %v3630_v17  ;;  %v3636_v19 = vld [vmem:[%s5272_s2 + $0xc0] sm:$0xff] }
 0x196   :  { %v187_v39 = vperm.slane %v179_v32, 0  ;;  %v181_v63 = vrot.slane %v3445_v23, 7  ;;  %5361 = vst [vmem:[#allocation17_spill] sm:$0xff] %v3636_v19  ;;  %v3646_v32 = vld [vmem:[%s5272_s2 + $0xd0] sm:$0xff] }
 0x197   :  { %234 = vadd.xlane.f32.xlu1 %v233_v43  ;;  %252 = vadd.xlane.f32.xlu0 %v251_v44  ;;  %v275_v42 = vsel %vm162_vm1, %v213_v33, 0.0  ;;  %v3592_v43 = vld [vmem:[%s5272_s2 + $0x90] sm:$0xff]  ;;  %v215_v44 = vmul.f32 %v186_v12, %v3581_v40  ;;  %5362 = vst [vmem:[#allocation18_spill] sm:$0xff] %v3646_v32  ;;  %v3651_v33 = vld [vmem:[%s5272_s2 + $0xf8] sm:$0xff] }
 0x198   :  { %5355 = vst [vmem:[#allocation11_spill] sm:$0xff] %v3592_v43  ;;  %v220_v45 = vmul.f32 %v187_v39, %v3586_v41  ;;  %v216_v50 = vmul.f32 %v186_v12, %v3592_v43  ;;  %v189_v12 = vperm.slane %v181_v63, 0 }
 0x199   :  { %246 = vadd.xlane.f32.xlu2 %v245_v48  ;;  %v180_v48 = vrot.slane %v3445_v23, 6  ;;  %v281_v51 = vsel %vm162_vm1, %v215_v44, 0.0  ;;  %5363 = vst [vmem:[#allocation19_spill] sm:$0xff] %v3651_v33 }
 0x19a   :  { %v296_v52 = vsel %vm162_vm1, %v220_v45, 0.0  ;;  %v284_v56 = vsel %vm162_vm1, %v216_v50, 0.0  ;;  %v3667_v50 = vld [vmem:[%s5272_s2 + $0xe8] sm:$0xff] }
 0x19b   :  { %v188_v53 = vperm.slane %v180_v48, 0  ;;  %5365 = vst [vmem:[#allocation21_spill] sm:$0xff] %v3667_v50 }
 0x19f   :  { %240 = vadd.xlane.f32.xlu1 %v239_v54  ;;  %261 = vadd.xlane.f32.xlu0 %v260_v55  ;;  %v3603_v54 = vld [vmem:[%s5272_s2 + $0xa0] sm:$0xff]  ;;  %v3608_v55 = vld [vmem:[%s5272_s2 + $0xc8] sm:$0xff] }
 0x1a0   :  { %5356 = vst [vmem:[#allocation12_spill] sm:$0xff] %v3603_v54  ;;  %v218_v61 = vmul.f32 %v187_v39, %v3603_v54  ;;  %v223_v62 = vmul.f32 %v188_v53, %v3608_v55 }
 0x1a1   :  { %249 = vadd.xlane.f32.xlu2 %v248_v59  ;;  %5357 = vst [vmem:[#allocation13_spill] sm:$0xff] %v3608_v55  ;;  %v3614_v59 = vld [vmem:[%s5272_s2 + $0xa8] sm:$0xff] }
 0x1a2   :  { %5358 = vst [vmem:[#allocation14_spill] sm:$0xff] %v3614_v59  ;;  %v219_v9 = vmul.f32 %v187_v39, %v3614_v59 }
 0x1a4   :  { %v293_v18 = vsel %vm162_vm1, %v219_v9, 0.0 }
 0x1a7   :  { %255 = vadd.xlane.f32.xlu1 %v254_v10  ;;  %270 = vadd.xlane.f32.xlu0 %v269_v11  ;;  %v290_v10 = vsel %vm162_vm1, %v218_v61, 0.0  ;;  %v305_v11 = vsel %vm162_vm1, %v223_v62, 0.0 }
 0x1a9   :  { %258 = vadd.xlane.f32.xlu2 %v257_v15  ;;  %v3625_v15 = vld [vmem:[%s5272_s2 + $0xb8] sm:$0xff] }
 0x1aa   :  { %5359 = vst [vmem:[#allocation15_spill] sm:$0xff] %v3625_v15 }
 0x1af   :  { %264 = vadd.xlane.f32.xlu1 %v263_v20  ;;  %279 = vadd.xlane.f32.xlu0 %v278_v21  ;;  %v221_v20 = vmul.f32 %v187_v39, %v3625_v15  ;;  %v226_v21 = vmul.f32 %v189_v12, %v3630_v17  ;;  %v224_v39 = vmul.f32 %v188_v53, %v3646_v32  ;;  %v3699_v17 = vld [vmem:[%s5274_s6 + $0x8] sm:$0xff] }
 0x1b0   :  { %490 = vmatpush.bf16.msra.mxu2 %v3699_v17 }
 0x1b1   :  { %267 = vadd.xlane.f32.xlu2 %v266_v27  ;;  %v222_v27 = vmul.f32 %v188_v53, %v3636_v19  ;;  %v299_v30 = vsel %vm162_vm1, %v221_v20, 0.0  ;;  %v314_v31 = vsel %vm162_vm1, %v226_v21, 0.0  ;;  %v308_v45 = vsel %vm162_vm1, %v224_v39, 0.0 }
 0x1b7   :  { %273 = vadd.xlane.f32.xlu1 %v272_v34  ;;  %288 = vadd.xlane.f32.xlu0 %v287_v37  ;;  %v302_v34 = vsel %vm162_vm1, %v222_v27, 0.0  ;;  %v3657_v37 = vld [vmem:[%s5272_s2 + $0xd8] sm:$0xff] }
 0x1b8   :  { %5364 = vst [vmem:[#allocation20_spill] sm:$0xff] %v3657_v37  ;;  %v225_v44 = vmul.f32 %v188_v53, %v3657_v37  ;;  %v227_v53 = vmul.f32 %v189_v12, %v3667_v50  ;;  %v3694_v50 = vld [vmem:[%s5273_s5] sm:$0xff] }
 0x1b9   :  { %276 = vadd.xlane.f32.xlu2 %v275_v42  ;;  %v229_v42 = vmul.f32 %v189_v12, %v3651_v33 }
 0x1ba   :  { %v317_v61 = vsel %vm162_vm1, %v227_v53, 0.0 }
 0x1bb   :  { %v323_v48 = vsel %vm162_vm1, %v229_v42, 0.0 }
 0x1bf   :  { %282 = vadd.xlane.f32.xlu1 %v281_v51  ;;  %297 = vadd.xlane.f32.xlu0 %v296_v52  ;;  %v311_v51 = vsel %vm162_vm1, %v225_v44, 0.0  ;;  %v3673_v52 = vld [vmem:[%s5272_s2 + $0xf0] sm:$0xff] }
 0x1c0   :  { %5366 = vst [vmem:[#allocation22_spill] sm:$0xff] %v3673_v52 }
 0x1c1   :  { %285 = vadd.xlane.f32.xlu2 %v284_v56  ;;  %v228_v56 = vmul.f32 %v189_v12, %v3673_v52 }
 0x1c3   :  { %v320_v62 = vsel %vm162_vm1, %v228_v56, 0.0  ;;  %v3684_v56 = vld [vmem:[%s5273_s5 + $0x8] sm:$0xff] }
 0x1c4   :  { %515 = vmatpush.bf16.msra.mxu3 %v3684_v56 }
 0x1c7   :  { %291 = vadd.xlane.f32.xlu1 %v290_v10  ;;  %306 = vadd.xlane.f32.xlu0 %v305_v11 }
 0x1c8   :  { %516 = vmatpush.bf16.msra.mxu3 %v3694_v50 }
 0x1c9   :  { %294 = vadd.xlane.f32.xlu2 %v293_v18 }
 0x1cb   :  { %3056 = vmatmul.msk.bf16.vlgmr.msra.gmra.mxu3 %vm115_vm0, %v3428_v6 }
 0x1cc   :  { %690 = vmatpush.bf16.msrb.mxu3 %v3395_v0 }
 0x1cf   :  { %300 = vadd.xlane.f32.xlu1 %v299_v30  ;;  %315 = vadd.xlane.f32.xlu0 %v314_v31 }
 0x1d0   :  { %691 = vmatpush.bf16.msrb.mxu3 %v3407_v2 }
 0x1d1   :  { %303 = vadd.xlane.f32.xlu2 %v302_v34 }
 0x1d7   :  { %309 = vadd.xlane.f32.xlu1 %v308_v45  ;;  %324 = vadd.xlane.f32.xlu0 %v323_v48 }
 0x1d9   :  { %312 = vadd.xlane.f32.xlu2 %v311_v51 }
 0x1df   :  { %318 = vadd.xlane.f32.xlu1 %v317_v61  ;;  %v390_v61 = vlaneseq }
 0x1e1   :  { %321 = vadd.xlane.f32.xlu2 %v320_v62  ;;  %v3689_v33 = vand.u32 127, %v390_v61 }
 0x1e3   :  { %v3724_v26 = vadd.s32 4294967272, %v3689_v33 }
 0x202   :  { %v238_v63 = vpop.xlane.xlu0 %237  ;;  %v232_v9 = vpop.xlane.xlu1 %231 }
 0x204   :  { %v244_v10 = vpop.xlane.xlu2 %243 }
 0x20a   :  { %v235_v11 = vpop.xlane.xlu1 %234  ;;  %v253_v18 = vpop.xlane.xlu0 %252 }
 0x20b   :  { %v326_v52 = vpack.c.bf16 %v235_v11, %v232_v9  ;;  %v3706_v9 = vld [vmem:[%s5274_s6] sm:$0xff] }
 0x20c   :  { %v247_v20 = vpop.xlane.xlu2 %246  ;;  %491 = vmatpush.bf16.msra.mxu2 %v3706_v9 }
 0x20d   :  { %v328_v37 = vpack.c.bf16 %v247_v20, %v244_v10  ;;  %v358_v55 = vunpack.c.l.b16 %v326_v52  ;;  %v3709_v10 = vadd.s32 4294967288, %v3689_v33  ;;  %v359_v11 = vunpack.c.h.b16 %v326_v52 }
 0x20f   :  { %v362_v20 = vunpack.c.l.b16 %v328_v37  ;;  %v363_v61 = vunpack.c.h.b16 %v328_v37  ;;  %v394_v52 = vperm.slane %v359_v11, %v3709_v10 }
 0x211   :  { %v405_v37 = vperm.slane %v362_v20, %v3689_v33  ;;  %v406_v41 = vperm.slane %v363_v61, %v3709_v10 }
 0x212   :  { %v241_v21 = vpop.xlane.xlu1 %240  ;;  %v262_v27 = vpop.xlane.xlu0 %261 }
 0x213   :  { %v327_v19 = vpack.c.bf16 %v241_v21, %v238_v63  ;;  %v3713_v63 = vadd.s32 4294967280, %v3689_v33  ;;  %v392_v21 = vperm.slane %v358_v55, %v3689_v33 }
 0x214   :  { %v250_v30 = vpop.xlane.xlu2 %249 }
 0x215   :  { %v329_v59 = vpack.c.bf16 %v253_v18, %v250_v30  ;;  %v360_v18 = vunpack.c.l.b16 %v327_v19  ;;  %v361_v6 = vunpack.c.h.b16 %v327_v19 }
 0x217   :  { %v364_v30 = vunpack.c.l.b16 %v329_v59  ;;  %v398_v55 = vperm.slane %v360_v18, %v3713_v63  ;;  %v365_v11 = vunpack.c.h.b16 %v329_v59  ;;  %v402_v19 = vperm.slane %v361_v6, %v3724_v26 }
 0x219   :  { %v408_v20 = vperm.slane %v364_v30, %v3713_v63 }
 0x21a   :  { %v256_v31 = vpop.xlane.xlu1 %255  ;;  %v271_v34 = vpop.xlane.xlu0 %270 }
 0x21c   :  { %v259_v39 = vpop.xlane.xlu2 %258 }
 0x21d   :  { %v330_v43 = vpack.c.bf16 %v259_v39, %v256_v31  ;;  %v396_v31 = vsel %vm395_vm2, %v394_v52, %v392_v21  ;;  %v407_v39 = vsel %vm395_vm2, %v406_v41, %v405_v37  ;;  %v410_v21 = vperm.slane %v365_v11, %v3724_v26 }
 0x21e   :  { %v409_v59 = vsel %vm399_vm3, %v408_v20, %v407_v39 }
 0x21f   :  { %v366_v61 = vunpack.c.l.b16 %v330_v43  ;;  %v367_v22 = vunpack.c.h.b16 %v330_v43 }
 0x221   :  { %v412_v43 = vperm.slane %v366_v61, %v3689_v33  ;;  %v413_v52 = vperm.slane %v367_v22, %v3709_v10  ;;  %v411_v22 = vsel %vm403_vm4, %v410_v21, %v409_v59 }
 0x222   :  { %v265_v42 = vpop.xlane.xlu1 %264  ;;  %v280_v12 = vpop.xlane.xlu0 %279 }
 0x223   :  { %v331_v29 = vpack.c.bf16 %v265_v42, %v262_v27 }
 0x224   :  { %v268_v44 = vpop.xlane.xlu2 %267 }
 0x225   :  { %v332_v40 = vpack.c.bf16 %v271_v34, %v268_v44  ;;  %v368_v27 = vunpack.c.l.b16 %v331_v29 }
 0x227   :  { %v370_v34 = vunpack.c.l.b16 %v332_v40  ;;  %v371_v44 = vunpack.c.h.b16 %v332_v40  ;;  %v415_v40 = vperm.slane %v368_v27, %v3713_v63 }
 0x22a   :  { %v274_v45 = vpop.xlane.xlu1 %273  ;;  %v3679_v48 = vpop.xlane.xlu0 %288 }
 0x22c   :  { %v277_v51 = vpop.xlane.xlu2 %276 }
 0x22d   :  { %v333_v42 = vpack.c.bf16 %v277_v51, %v274_v45  ;;  %v369_v51 = vunpack.c.h.b16 %v331_v29 }
 0x22f   :  { %v372_v6 = vunpack.c.l.b16 %v333_v42  ;;  %v373_v20 = vunpack.c.h.b16 %v333_v42  ;;  %v417_v27 = vperm.slane %v369_v51, %v3724_v26 }
 0x232   :  { %v283_v53 = vpop.xlane.xlu1 %282  ;;  %v3687_v23 = vpop.xlane.xlu0 %297 }
 0x233   :  { %v334_v14 = vpack.c.bf16 %v283_v53, %v280_v12  ;;  %v400_v12 = vsel %vm399_vm3, %v398_v55, %v396_v31  ;;  %v420_v55 = vperm.slane %v371_v44, %v3709_v10 }
 0x234   :  { %v286_v62 = vpop.xlane.xlu2 %285 }
 0x235   :  { %v374_v53 = vunpack.c.l.b16 %v334_v14  ;;  %v375_v18 = vunpack.c.h.b16 %v334_v14  ;;  %v335_v41 = vpack.c.bf16 %v3679_v48, %v286_v62  ;;  %v419_v14 = vperm.slane %v370_v34, %v3689_v33 }
 0x236   :  { %v422_v34 = vperm.slane %v372_v6, %v3713_v63 }
 0x237   :  { %v426_v11 = vperm.slane %v374_v53, %v3689_v33  ;;  %v376_v62 = vunpack.c.l.b16 %v335_v41  ;;  %v421_v44 = vsel %vm395_vm2, %v420_v55, %v419_v14  ;;  %v424_v53 = vperm.slane %v373_v20, %v3724_v26 }
 0x238   :  { %v377_v59 = vunpack.c.h.b16 %v335_v41  ;;  %v404_v14 = vsel %vm403_vm4, %v402_v19, %v400_v12  ;;  %v423_v55 = vsel %vm399_vm3, %v422_v34, %v421_v44 }
 0x239   :  { %v429_v21 = vperm.slane %v376_v62, %v3713_v63  ;;  %v455_v20 = vsel %vm454_vm5, %v411_v22, %v404_v14  ;;  %v425_v19 = vsel %vm403_vm4, %v424_v53, %v423_v55 }
 0x23a   :  { %v292_v32 = vpop.xlane.xlu1 %291  ;;  %v307_v54 = vpop.xlane.xlu0 %306 }
 0x23c   :  { %v295_v15 = vpop.xlane.xlu2 %294 }
 0x23d   :  { %v336_v30 = vpack.c.bf16 %v295_v15, %v292_v32  ;;  %v427_v15 = vperm.slane %v375_v18, %v3709_v10 }
 0x23f   :  { %v428_v18 = vsel %vm395_vm2, %v427_v15, %v426_v11  ;;  %v431_v11 = vperm.slane %v377_v59, %v3724_v26 }
 0x240   :  { %v430_v62 = vsel %vm399_vm3, %v429_v21, %v428_v18 }
 0x242   :  { %v301_v16 = vpop.xlane.xlu1 %300  ;;  %v316_v32 = vpop.xlane.xlu0 %315 }
 0x243   :  { %v337_v37 = vpack.c.bf16 %v301_v16, %v3687_v23  ;;  %v378_v23 = vunpack.c.l.b16 %v336_v30  ;;  %v414_v16 = vsel %vm395_vm2, %v413_v52, %v412_v43 }
 0x244   :  { %v304_v58 = vpop.xlane.xlu2 %303  ;;  %v416_v61 = vsel %vm399_vm3, %v415_v40, %v414_v16 }
 0x245   :  { %v338_v45 = vpack.c.bf16 %v307_v54, %v304_v58  ;;  %v379_v58 = vunpack.c.h.b16 %v336_v30  ;;  %v380_v29 = vunpack.c.l.b16 %v337_v37  ;;  %v433_v30 = vperm.slane %v378_v23, %v3689_v33 }
 0x247   :  { %v382_v54 = vunpack.c.l.b16 %v338_v45  ;;  %v383_v31 = vunpack.c.h.b16 %v338_v45  ;;  %v434_v43 = vperm.slane %v379_v58, %v3709_v10  ;;  %v381_v45 = vunpack.c.h.b16 %v337_v37 }
 0x248   :  { %v436_v51 = vperm.slane %v380_v29, %v3713_v63 }
 0x249   :  { %v440_v40 = vperm.slane %v382_v54, %v3689_v33  ;;  %v441_v6 = vperm.slane %v383_v31, %v3709_v10  ;;  %v435_v23 = vsel %vm395_vm2, %v434_v43, %v433_v30  ;;  %v438_v16 = vperm.slane %v381_v45, %v3724_v26 }
 0x24a   :  { %v310_v48 = vpop.xlane.xlu1 %309  ;;  %v437_v12 = vsel %vm399_vm3, %v436_v51, %v435_v23  ;;  %v325_v29 = vpop.xlane.xlu0 %324 }
 0x24b   :  { %v442_v22 = vsel %vm395_vm2, %v441_v6, %v440_v40  ;;  %v439_v30 = vsel %vm403_vm4, %v438_v16, %v437_v12 }
 0x24c   :  { %v313_v39 = vpop.xlane.xlu2 %312 }
 0x24d   :  { %v339_v42 = vpack.c.bf16 %v313_v39, %v310_v48  ;;  %v418_v48 = vsel %vm403_vm4, %v417_v27, %v416_v61 }
 0x24e   :  { %v457_v27 = vsel %vm456_vm6, %v418_v48, %v455_v20  ;;  %v3803_v48 = vld [vmem:[%s5275_s8] sm:$0xff] }
 0x24f   :  { %v384_v52 = vunpack.c.l.b16 %v339_v42  ;;  %v385_v41 = vunpack.c.h.b16 %v339_v42  ;;  %v432_v42 = vsel %vm403_vm4, %v431_v11, %v430_v62  ;;  %v459_v21 = vsel %vm458_vm7, %v425_v19, %v457_v27  ;;  %v518_v62 = vpop.f32.mrf.mxu3 }
 0x250   :  { %v461_v40 = vsel %vm460_vm8, %v432_v42, %v459_v21 }
 0x251   :  { %v443_v15 = vperm.slane %v384_v52, %v3713_v63  ;;  %v445_v31 = vperm.slane %v385_v41, %v3724_v26  ;;  %v463_v14 = vsel %vm462_vm9, %v439_v30, %v461_v40 }
 0x252   :  { %v319_v37 = vpop.xlane.xlu1 %318 }
 0x253   :  { %v340_v58 = vpack.c.bf16 %v319_v37, %v316_v32  ;;  %v444_v32 = vsel %vm399_vm3, %v443_v15, %v442_v22  ;;  %v3791_v15 = vld [vmem:[%s5275_s8 + $0x8] sm:$0xff] }
 0x254   :  { %v322_v54 = vpop.xlane.xlu2 %321  ;;  %v446_v51 = vsel %vm403_vm4, %v445_v31, %v444_v32  ;;  %v3796_v37 = vld [vmem:[%s5276_s7 + $0x8] sm:$0xff]  ;;  %544 = vmatpush.bf16.msrb.mxu0 %v3791_v15  ;;  %1043 = vmatpush.bf16.msra.mxu3 %v3791_v15 }
 0x255   :  { %v386_v39 = vunpack.c.l.b16 %v340_v58  ;;  %v387_v34 = vunpack.c.h.b16 %v340_v58  ;;  %v341_v61 = vpack.c.bf16 %v325_v29, %v322_v54  ;;  %v465_v41 = vsel %vm464_vm10, %v446_v51, %v463_v14  ;;  %572 = vmatpush.bf16.msrb.mxu1 %v3796_v37  ;;  %v3816_v58 = vld [vmem:[%s5276_s7] sm:$0xff] }
 0x257   :  { %v447_v44 = vperm.slane %v386_v39, %v3689_v33  ;;  %v448_v53 = vperm.slane %v387_v34, %v3709_v10  ;;  %v388_v18 = vunpack.c.l.b16 %v341_v61  ;;  %v389_v59 = vunpack.c.h.b16 %v341_v61  ;;  %v520_v23 = vpop.f32.mrf.mxu3 }
 0x258   :  { %545 = vmatpush.bf16.msrb.mxu0 %v3803_v48  ;;  %1044 = vmatpush.bf16.msra.mxu3 %v3803_v48  ;;  %v3828_v34 = vperm.slane %v3437_v7, 0  ;;  %v3085_v23 = vld [vmem:[%s5270_s0 + $0x4] sm:$0xf] }
 0x259   :  { %v449_v43 = vsel %vm395_vm2, %v448_v53, %v447_v44  ;;  %v450_v52 = vperm.slane %v388_v18, %v3713_v63  ;;  %v452_v45 = vperm.slane %v389_v59, %v3724_v26  ;;  %573 = vmatpush.bf16.msrb.mxu1 %v3816_v58 }
 0x25b   :  { %v451_v6 = vsel %vm399_vm3, %v450_v52, %v449_v43  ;;  %3065 = vmatmul.msk.bf16.vlgmr.msrb.gmra.mxu0 %vm115_vm0, %v3421_v5  ;;  %v3823_v5 = vperm.slane %v3437_v7, 1 }
 0x25c   :  { %v453_v55 = vsel %vm403_vm4, %v452_v45, %v451_v6  ;;  %706 = vmatpush.bf16.msra.mxu0 %v3400_v1 }
 0x25d   :  { %v467_v20 = vsel %vm466_vm11, %v453_v55, %v465_v41  ;;  %1014 = vmatpush.bf16.msra.mxu1 %v3699_v17 }
 0x25e   :  { %v468_v11 = vpack.c.b16 %v467_v20, %v467_v20 }
 0x260   :  { %3047 = vmatmul.msk.bf16.vlgmr.msra.gmra.mxu2 %vm115_vm0, %v468_v11  ;;  %707 = vmatpush.bf16.msra.mxu0 %v3412_v3 }
 0x261   :  { %1015 = vmatpush.bf16.msra.mxu1 %v3706_v9 }
 0x264   :  { %1059 = vmatpush.bf16.msrb.mxu0 %v3796_v37 }
 0x268   :  { %1060 = vmatpush.bf16.msrb.mxu0 %v3816_v58 }
 0x26b   :  { %3087 = vmatmul.msk.bf16.vlgmr.msra.gmra.mxu0 %vm115_vm0, %v3085_v23 }
 0x26c   :  { %1481 = vmatpush.bf16.msra.mxu0 %v3699_v17 }
 0x270   :  { %1482 = vmatpush.bf16.msra.mxu0 %v3706_v9 }
 0x2d8   :  { %v547_v31 = vpop.f32.mrf.mxu0 }
 0x2e0   :  { %v549_v39 = vpop.f32.mrf.mxu0 }
 0x2e3   :  { %v493_v19 = vpop.f32.mrf.mxu2 }
 0x2e4   :  { %v519_v12 = vadd.f32 %v518_v62, %v493_v19  ;;  %v3839_v62 = vld [vmem:[%s5277_s9 + $0x8] sm:$0xff] }
 0x2e5   :  { %649 = vmatpush.bf16.msrb.mxu2 %v3839_v62 }
 0x2e6   :  { %v523_v16 = vadd.f32 %v3823_v5, %v519_v12 }
 0x2e8   :  { %v524_v22 = vmax.f32 %v523_v16, 0.0 }
 0x2ea   :  { %v525_v29 = vpack.c.bf16 %v524_v22, %v524_v22 }
 0x2eb   :  { %v495_v54 = vpop.f32.mrf.mxu2 }
 0x2ec   :  { %3074 = vmatmul.msk.bf16.vlgmr.msrb.gmra.mxu1 %vm115_vm0, %v525_v29 }
 0x2ed   :  { %1118 = vmatpush.bf16.msrb.mxu1 %v3839_v62 }
 0x369   :  { %v575_v61 = vpop.f32.mrf.mxu1 }
 0x36a   :  { %v576_v27 = vadd.f32 %v575_v61, %v547_v31  ;;  %v709_v31 = vpop.f32.mrf.mxu0 }
 0x36c   :  { %v580_v42 = vadd.f32 %v3828_v34, %v576_v27 }
 0x36e   :  { %601 = vrot.lane.b32.xlu1 %v580_v42, %s3327_s30  ;;  %v3075_v44 = vmul.f32 -1.442695, %v580_v42 }
 0x370   :  { %3158 = vpow2.f32 %v3075_v44 }
 0x371   :  { %v577_v32 = vpop.f32.mrf.mxu1 }
 0x372   :  { %v711_v39 = vpop.f32.mrf.mxu0 }
 0x376   :  { %v3159_v53 = vpop.eup %3158 }
 0x377   :  { %v584_v18 = vadd.f32 1.0, %v3159_v53 }
 0x379   :  { %3160 = vrcp.f32 %v584_v18  ;;  %v596_v7 = vand.u32 2147483648, %v584_v18  ;;  %vm590_vm13 = vweird.f32 %v584_v18  ;;  %v594_v45 = vand.u32 2147483647, %v584_v18 }
 0x37b   :  { %v597_v40 = vor.u32 1.1754944e-38, %v596_v7  ;;  %vm595_vm15 = vcmp.eq.f32.partialorder %v594_v45, 8.507059e+37 }
 0x37f   :  { %v3161_v59 = vpop.eup %3160 }
 0x380   :  { %v586_v21 = vmul.f32 %v3161_v59, %v584_v18  ;;  %vm591_vm12 = vweird.f32 %v3161_v59 }
 0x381   :  { %vm592_vm14 = vmor %vm590_vm13, %vm591_vm12 }
 0x382   :  { %v587_v30 = vsub.f32 1.0, %v586_v21 }
 0x384   :  { %v588_v43 = vmul.f32 %v3161_v59, %v587_v30 }
 0x386   :  { %v589_v52 = vadd.f32 %v3161_v59, %v588_v43 }
 0x388   :  { %v593_v51 = vsel %vm592_vm14, %v3161_v59, %v589_v52 }
 0x389   :  { %v598_v14 = vsel %vm595_vm15, %v597_v40, %v593_v51 }
 0x38a   :  { %v611_v12 = vsub.f32 1.0, %v598_v14 }
 0x3e0   :  { %v602_v6 = vpop.permute.xlu1 %601 }
 0x3e1   :  { %v604_v55 = vmul.f32 %v602_v6, %v598_v14 }
 0x3e3   :  { %606 = vrot.lane.b32.xlu2 %v604_v55, %s3328_s12 }
 0x3eb   :  { %618 = vrot.lane.b32.xlu2 %v3417_v4, %s3327_s30  ;;  %v3849_v4 = vld [vmem:[%s5277_s9] sm:$0xff] }
 0x3ec   :  { %650 = vmatpush.bf16.msrb.mxu2 %v3849_v4  ;;  %1119 = vmatpush.bf16.msrb.mxu1 %v3849_v4 }
 0x3f0   :  { %1027 = vmatpush.bf16.msra.mxu2 %v3684_v56 }
 0x3f4   :  { %1028 = vmatpush.bf16.msra.mxu2 %v3694_v50 }
 0x43d   :  { %v607_v41 = vpop.permute.xlu2 %606 }
 0x43e   :  { %v609_v20 = vadd.f32 %v607_v41, %v580_v42 }
 0x440   :  { %3162 = vtanh.f32 %v609_v20 }
 0x445   :  { %v619_v19 = vpop.permute.xlu2 %618 }
 0x446   :  { %v3163_v11 = vpop.eup %3162  ;;  %v621_v22 = vmul.f32 %v619_v19, %v598_v14 }
 0x447   :  { %613 = vrot.lane.b32.xlu0 %v3163_v11, %s3329_s13 }
 0x4b9   :  { %v614_v16 = vpop.permute.xlu0 %613 }
 0x4ba   :  { %v616_v29 = vmul.f32 %v614_v16, %v611_v12 }
 0x4bc   :  { %v3858_v54 = vadd.f32 %v621_v22, %v616_v29 }
 0x4be   :  { %5367 = vst [vmem:[#allocation23_spill] sm:$0xff] %v3858_v54  ;;  %v623_v17 = vpack.c.bf16 %v3858_v54, %v3858_v54 }
 0x4c0   :  { %626 = vrot.lane.b32.xlu1 %v623_v17, %s3329_s13 }
 0x532   :  { %v627_v61 = vpop.permute.xlu1 %626 }
 0x533   :  { %3084 = vmatmul.msk.bf16.vlgmr.msrb.gmra.mxu2 %vm115_vm0, %v627_v61  ;;  %3086 = vmatmul.msk.bf16.vlgmr.msrb.gmra.mxu3 %vm115_vm0, %v627_v61 }
 0x534   :  { %1157 = vmatpush.bf16.msrb.mxu2 %v3395_v0  ;;  %1173 = vmatpush.bf16.msrb.mxu3 %v3400_v1 }
 0x538   :  { %1174 = vmatpush.bf16.msrb.mxu3 %v3412_v3  ;;  %1158 = vmatpush.bf16.msrb.mxu2 %v3407_v2 }
 0x543   :  { %3090 = vmatmul.msk.bf16.vlgmr.msra.gmra.mxu3 %vm115_vm0, %v627_v61  ;;  %3089 = vmatmul.msk.bf16.vlgmr.msra.gmra.mxu2 %vm115_vm0, %v3085_v23 }
 0x544   :  { %1510 = vmatpush.bf16.msra.mxu2 %v3791_v15  ;;  %1526 = vmatpush.bf16.msra.mxu3 %v3796_v37 }
 0x548   :  { %1511 = vmatpush.bf16.msra.mxu2 %v3803_v48  ;;  %1527 = vmatpush.bf16.msra.mxu3 %v3816_v58 }
 0x5b6   :  { %v3875_v50 = vpop.f32.mrf.mxu2  ;;  %v693_v0 = vpop.f32.mrf.mxu3 }
 0x5b7   :  { %5368 = vst [vmem:[#allocation24_spill] sm:$0xff] %v3875_v50  ;;  %v710_v1 = vadd.f32 %v709_v31, %v693_v0 }
 0x5b9   :  { %v713_v3 = vadd.f32 %v710_v1, %v3440_v8  ;;  %v5370_v1 = vld [vmem:[#allocation3_spill] sm:$0xff] }
 0x5bb   :  { %v714_v2 = vsel %vm162_vm1, %v713_v3, -inf }
 0x5bc   :  { %715 = vmax.xlane.f32.xlu0 %v714_v2  ;;  %v5371_v2 = vld [vmem:[#allocation6_spill] sm:$0xff] }
 0x5be   :  { %v654_v56 = vpop.f32.mrf.mxu2  ;;  %v695_v9 = vpop.f32.mrf.mxu3 }
 0x5bf   :  { %v5372_v56 = vld [vmem:[#allocation5_spill] sm:$0xff] }
 0x5c6   :  { %v3879_v27 = vpop.f32.mrf.mxu3 }
 0x5ce   :  { %v1048_v42 = vpop.f32.mrf.mxu3 }
 0x62f   :  { %v716_v32 = vpop.xlane.xlu0 %715 }
 0x630   :  { %v717_v44 = vsub.f32 %v713_v3, %v716_v32 }
 0x632   :  { %v718_v53 = vmul.f32 1.442695, %v717_v44 }
 0x634   :  { %3164 = vpow2.f32 %v718_v53  ;;  %v5373_v53 = vld [vmem:[#allocation4_spill] sm:$0xff] }
 0x63a   :  { %v3165_v18 = vpop.eup %3164 }
 0x63b   :  { %v720_v59 = vsel %vm162_vm1, %v3165_v18, 0.0 }
 0x63c   :  { %721 = vadd.xlane.f32.xlu2 %v720_v59  ;;  %v5374_v59 = vld [vmem:[#allocation9_spill] sm:$0xff] }
 0x6af   :  { %v722_v21 = vpop.xlane.xlu2 %721 }
 0x6b0   :  { %3166 = vrcp.f32 %v722_v21 }
 0x6b6   :  { %v3167_v30 = vpop.eup %3166 }
 0x6b7   :  { %v3882_v43 = vmul.f32 %v3167_v30, %v3165_v18 }
 0x6b9   :  { %5369 = vst [vmem:[#allocation25_spill] sm:$0xff] %v3882_v43  ;;  %v733_v52 = vperm.slane %v3882_v43, 0  ;;  %v726_v7 = vrot.slane %v3882_v43, 1  ;;  %v728_v39 = vrot.slane %v3882_v43, 3  ;;  %v730_v30 = vrot.slane %v3882_v43, 5 }
 0x6bb   :  { %v752_v45 = vmul.f32 %v733_v52, %v3494_v46  ;;  %v750_v51 = vmul.f32 %v733_v52, %v3472_v35  ;;  %v749_v40 = vmul.f32 %v733_v52, %v3455_v25  ;;  %v734_v41 = vperm.slane %v726_v7, 0 }
 0x6bc   :  { %v751_v20 = vmul.f32 %v733_v52, %v3450_v24  ;;  %v727_v46 = vrot.slane %v3882_v43, 2  ;;  %v736_v61 = vperm.slane %v728_v39, 0  ;;  %v5375_v52 = vld [vmem:[#allocation8_spill] sm:$0xff] }
 0x6bd   :  { %v790_v6 = vsel %vm162_vm1, %v752_v45, 0.0  ;;  %v784_v14 = vsel %vm162_vm1, %v750_v51, 0.0  ;;  %v781_v55 = vsel %vm162_vm1, %v749_v40, 0.0  ;;  %v753_v11 = vmul.f32 %v734_v41, %v3462_v28 }
 0x6be   :  { %791 = vadd.xlane.f32.xlu2 %v790_v6  ;;  %785 = vadd.xlane.f32.xlu0 %v784_v14  ;;  %v754_v35 = vmul.f32 %v734_v41, %v3483_v38  ;;  %v787_v25 = vsel %vm162_vm1, %v751_v20, 0.0  ;;  %v735_v19 = vperm.slane %v727_v46, 0  ;;  %v756_v16 = vmul.f32 %v734_v41, %v3477_v36  ;;  %v5376_v14 = vld [vmem:[#allocation7_spill] sm:$0xff] }
 0x6bf   :  { %782 = vadd.xlane.f32.xlu1 %v781_v55  ;;  %v793_v23 = vsel %vm162_vm1, %v753_v11, 0.0  ;;  %v755_v28 = vmul.f32 %v734_v41, %v3505_v49  ;;  %v762_v3 = vmul.f32 %v736_v61, %v5370_v1  ;;  %v761_v9 = vmul.f32 %v736_v61, %v5372_v56  ;;  %v5377_v41 = vld [vmem:[#allocation12_spill] sm:$0xff]  ;;  %v5378_v11 = vld [vmem:[#allocation11_spill] sm:$0xff]  ;;  %v5384_v1 = vld [vmem:[#allocation17_spill] sm:$0xff] }
 0x6c0   :  { %v796_v12 = vsel %vm162_vm1, %v754_v35, 0.0  ;;  %v757_v24 = vmul.f32 %v735_v19, %v3516_v57  ;;  %v802_v22 = vsel %vm162_vm1, %v756_v16, 0.0  ;;  %v759_v17 = vmul.f32 %v735_v19, %v3499_v47  ;;  %v5380_v16 = vld [vmem:[#allocation15_spill] sm:$0xff] }
 0x6c1   :  { %v799_v29 = vsel %vm162_vm1, %v755_v28, 0.0  ;;  %v760_v31 = vmul.f32 %v735_v19, %v3538_v13  ;;  %v758_v36 = vmul.f32 %v735_v19, %v3527_v60  ;;  %v763_v47 = vmul.f32 %v736_v61, %v5371_v2  ;;  %v5379_v19 = vld [vmem:[#allocation10_spill] sm:$0xff] }
 0x6c2   :  { %v805_v38 = vsel %vm162_vm1, %v757_v24, 0.0  ;;  %v811_v57 = vsel %vm162_vm1, %v759_v17, 0.0  ;;  %v729_v13 = vrot.slane %v3882_v43, 4  ;;  %v820_v60 = vsel %vm162_vm1, %v762_v3, 0.0 }
 0x6c3   :  { %v814_v49 = vsel %vm162_vm1, %v760_v31, 0.0  ;;  %v808_v0 = vsel %vm162_vm1, %v758_v36, 0.0  ;;  %v823_v42 = vsel %vm162_vm1, %v763_v47, 0.0  ;;  %v817_v44 = vsel %vm162_vm1, %v761_v9, 0.0  ;;  %v5382_v36 = vld [vmem:[#allocation13_spill] sm:$0xff]  ;;  %v5385_v9 = vld [vmem:[#allocation16_spill] sm:$0xff] }
 0x6c4   :  { %v737_v32 = vperm.slane %v729_v13, 0  ;;  %v764_v7 = vmul.f32 %v736_v61, %v5375_v52  ;;  %v738_v40 = vperm.slane %v730_v30, 0  ;;  %v731_v28 = vrot.slane %v3882_v43, 6  ;;  %v5388_v30 = vld [vmem:[#allocation19_spill] sm:$0xff] }
 0x6c6   :  { %788 = vadd.xlane.f32.xlu0 %v787_v25  ;;  %794 = vadd.xlane.f32.xlu2 %v793_v23  ;;  %v765_v18 = vmul.f32 %v737_v32, %v5373_v53  ;;  %v766_v21 = vmul.f32 %v737_v32, %v5374_v59  ;;  %v826_v6 = vsel %vm162_vm1, %v764_v7, 0.0  ;;  %v768_v55 = vmul.f32 %v737_v32, %v5376_v14  ;;  %v5389_v7 = vld [vmem:[#allocation22_spill] sm:$0xff] }
 0x6c7   :  { %797 = vadd.xlane.f32.xlu1 %v796_v12  ;;  %v769_v20 = vmul.f32 %v738_v40, %v5377_v41  ;;  %v767_v46 = vmul.f32 %v737_v32, %v5378_v11  ;;  %v771_v12 = vmul.f32 %v738_v40, %v5379_v19  ;;  %v772_v24 = vmul.f32 %v738_v40, %v5380_v16 }
 0x6c8   :  { %v829_v45 = vsel %vm162_vm1, %v765_v18, 0.0  ;;  %v832_v51 = vsel %vm162_vm1, %v766_v21, 0.0  ;;  %v838_v35 = vsel %vm162_vm1, %v768_v55, 0.0  ;;  %v739_v31 = vperm.slane %v731_v28, 0 }
 0x6c9   :  { %v841_v25 = vsel %vm162_vm1, %v769_v20, 0.0  ;;  %v835_v23 = vsel %vm162_vm1, %v767_v46, 0.0  ;;  %v850_v17 = vsel %vm162_vm1, %v772_v24, 0.0 }
 0x6ca   :  { %v773_v3 = vmul.f32 %v739_v31, %v5384_v1 }
 0x6cc   :  { %v853_v56 = vsel %vm162_vm1, %v773_v3, 0.0 }
 0x6ce   :  { %803 = vadd.xlane.f32.xlu0 %v802_v22  ;;  %806 = vadd.xlane.f32.xlu2 %v805_v38  ;;  %v5381_v22 = vld [vmem:[#allocation14_spill] sm:$0xff] }
 0x6cf   :  { %800 = vadd.xlane.f32.xlu1 %v799_v29  ;;  %v770_v38 = vmul.f32 %v738_v40, %v5381_v22  ;;  %v847_v29 = vsel %vm162_vm1, %v771_v12, 0.0 }
 0x6d1   :  { %v844_v39 = vsel %vm162_vm1, %v770_v38, 0.0 }
 0x6d6   :  { %812 = vadd.xlane.f32.xlu0 %v811_v57  ;;  %815 = vadd.xlane.f32.xlu2 %v814_v49  ;;  %v774_v57 = vmul.f32 %v739_v31, %v5382_v36  ;;  %v5383_v49 = vld [vmem:[#allocation18_spill] sm:$0xff] }
 0x6d7   :  { %809 = vadd.xlane.f32.xlu1 %v808_v0  ;;  %v775_v61 = vmul.f32 %v739_v31, %v5383_v49  ;;  %v732_v0 = vrot.slane %v3882_v43, 7 }
 0x6d8   :  { %v856_v2 = vsel %vm162_vm1, %v774_v57, 0.0 }
 0x6d9   :  { %v859_v47 = vsel %vm162_vm1, %v775_v61, 0.0  ;;  %v740_v13 = vperm.slane %v732_v0, 0 }
 0x6db   :  { %v780_v52 = vmul.f32 %v740_v13, %v5388_v30 }
 0x6de   :  { %821 = vadd.xlane.f32.xlu0 %v820_v60  ;;  %824 = vadd.xlane.f32.xlu2 %v823_v42  ;;  %v777_v60 = vmul.f32 %v740_v13, %v5385_v9  ;;  %v5386_v42 = vld [vmem:[#allocation21_spill] sm:$0xff] }
 0x6df   :  { %818 = vadd.xlane.f32.xlu1 %v817_v44  ;;  %v778_v32 = vmul.f32 %v740_v13, %v5386_v42  ;;  %v5387_v44 = vld [vmem:[#allocation20_spill] sm:$0xff] }
 0x6e0   :  { %v776_v53 = vmul.f32 %v739_v31, %v5387_v44  ;;  %v865_v18 = vsel %vm162_vm1, %v777_v60, 0.0 }
 0x6e1   :  { %v868_v59 = vsel %vm162_vm1, %v778_v32, 0.0  ;;  %v3956_v32 = vpop.f32.mrf.mxu2 }
 0x6e2   :  { %v862_v21 = vsel %vm162_vm1, %v776_v53, 0.0 }
 0x6e6   :  { %830 = vadd.xlane.f32.xlu0 %v829_v45  ;;  %833 = vadd.xlane.f32.xlu2 %v832_v51  ;;  %v779_v45 = vmul.f32 %v740_v13, %v5389_v7  ;;  %v874_v51 = vsel %vm162_vm1, %v780_v52, 0.0 }
 0x6e7   :  { %827 = vadd.xlane.f32.xlu1 %v826_v6 }
 0x6e8   :  { %v871_v40 = vsel %vm162_vm1, %v779_v45, 0.0 }
 0x6ee   :  { %839 = vadd.xlane.f32.xlu0 %v838_v35  ;;  %842 = vadd.xlane.f32.xlu2 %v841_v25 }
 0x6ef   :  { %836 = vadd.xlane.f32.xlu1 %v835_v23 }
 0x6f6   :  { %848 = vadd.xlane.f32.xlu0 %v847_v29  ;;  %851 = vadd.xlane.f32.xlu2 %v850_v17 }
 0x6f7   :  { %845 = vadd.xlane.f32.xlu1 %v844_v39 }
 0x6fe   :  { %857 = vadd.xlane.f32.xlu0 %v856_v2  ;;  %860 = vadd.xlane.f32.xlu2 %v859_v47 }
 0x6ff   :  { %854 = vadd.xlane.f32.xlu1 %v853_v56 }
 0x706   :  { %866 = vadd.xlane.f32.xlu0 %v865_v18  ;;  %869 = vadd.xlane.f32.xlu2 %v868_v59 }
 0x707   :  { %863 = vadd.xlane.f32.xlu1 %v862_v21 }
 0x70e   :  { %875 = vadd.xlane.f32.xlu0 %v874_v51 }
 0x70f   :  { %872 = vadd.xlane.f32.xlu1 %v871_v40 }
 0x731   :  { %v792_v6 = vpop.xlane.xlu2 %791  ;;  %v786_v14 = vpop.xlane.xlu0 %785 }
 0x732   :  { %v783_v55 = vpop.xlane.xlu1 %782 }
 0x733   :  { %v877_v36 = vpack.c.bf16 %v786_v14, %v783_v55 }
 0x735   :  { %v909_v3 = vunpack.c.l.b16 %v877_v36  ;;  %v910_v2 = vunpack.c.h.b16 %v877_v36 }
 0x737   :  { %v941_v44 = vperm.slane %v909_v3, %v3689_v33  ;;  %v942_v53 = vperm.slane %v910_v2, %v3709_v10  ;;  %v1032_v2 = vpop.f32.mrf.mxu2 }
 0x739   :  { %v789_v41 = vpop.xlane.xlu0 %788  ;;  %v795_v20 = vpop.xlane.xlu2 %794 }
 0x73a   :  { %v798_v11 = vpop.xlane.xlu1 %797  ;;  %v878_v57 = vpack.c.bf16 %v792_v6, %v789_v41 }
 0x73b   :  { %v879_v0 = vpack.c.bf16 %v798_v11, %v795_v20  ;;  %v943_v20 = vsel %vm395_vm2, %v942_v53, %v941_v44 }
 0x73c   :  { %v911_v13 = vunpack.c.l.b16 %v878_v57  ;;  %v912_v21 = vunpack.c.h.b16 %v878_v57 }
 0x73d   :  { %v913_v9 = vunpack.c.l.b16 %v879_v0  ;;  %v914_v60 = vunpack.c.h.b16 %v879_v0 }
 0x73e   :  { %v944_v52 = vperm.slane %v911_v13, %v3713_v63 }
 0x73f   :  { %v948_v40 = vperm.slane %v913_v9, %v3689_v33  ;;  %v949_v6 = vperm.slane %v914_v60, %v3709_v10 }
 0x741   :  { %v804_v46 = vpop.xlane.xlu0 %803  ;;  %v807_v35 = vpop.xlane.xlu2 %806 }
 0x742   :  { %v801_v25 = vpop.xlane.xlu1 %800 }
 0x743   :  { %v880_v56 = vpack.c.bf16 %v804_v46, %v801_v25  ;;  %v946_v25 = vperm.slane %v912_v21, %v3724_v26 }
 0x745   :  { %v915_v7 = vunpack.c.l.b16 %v880_v56  ;;  %v916_v11 = vunpack.c.h.b16 %v880_v56 }
 0x749   :  { %v813_v23 = vpop.xlane.xlu0 %812  ;;  %v816_v19 = vpop.xlane.xlu2 %815 }
 0x74a   :  { %v810_v12 = vpop.xlane.xlu1 %809  ;;  %v882_v42 = vpack.c.bf16 %v816_v19, %v813_v23 }
 0x74b   :  { %v881_v47 = vpack.c.bf16 %v810_v12, %v807_v35 }
 0x74c   :  { %v919_v14 = vunpack.c.l.b16 %v882_v42  ;;  %v920_v36 = vunpack.c.h.b16 %v882_v42 }
 0x74d   :  { %v917_v18 = vunpack.c.l.b16 %v881_v47  ;;  %v918_v59 = vunpack.c.h.b16 %v881_v47  ;;  %v953_v47 = vperm.slane %v916_v11, %v3724_v26 }
 0x74f   :  { %v955_v46 = vperm.slane %v917_v18, %v3689_v33  ;;  %v956_v35 = vperm.slane %v918_v59, %v3709_v10 }
 0x751   :  { %v822_v16 = vpop.xlane.xlu0 %821  ;;  %v825_v24 = vpop.xlane.xlu2 %824  ;;  %v957_v13 = vsel %vm395_vm2, %v956_v35, %v955_v46 }
 0x752   :  { %v819_v28 = vpop.xlane.xlu1 %818 }
 0x753   :  { %v883_v30 = vpack.c.bf16 %v822_v16, %v819_v28  ;;  %v945_v16 = vsel %vm399_vm3, %v944_v52, %v943_v20  ;;  %v951_v28 = vperm.slane %v915_v7, %v3713_v63 }
 0x754   :  { %v947_v2 = vsel %vm403_vm4, %v946_v25, %v945_v16 }
 0x755   :  { %v921_v23 = vunpack.c.l.b16 %v883_v30  ;;  %v922_v19 = vunpack.c.h.b16 %v883_v30 }
 0x759   :  { %v831_v22 = vpop.xlane.xlu0 %830  ;;  %v834_v38 = vpop.xlane.xlu2 %833 }
 0x75a   :  { %v828_v29 = vpop.xlane.xlu1 %827  ;;  %v885_v57 = vpack.c.bf16 %v834_v38, %v831_v22  ;;  %v960_v38 = vperm.slane %v920_v36, %v3724_v26 }
 0x75b   :  { %v884_v55 = vpack.c.bf16 %v828_v29, %v825_v24  ;;  %v950_v24 = vsel %vm395_vm2, %v949_v6, %v948_v40  ;;  %v958_v29 = vperm.slane %v919_v14, %v3713_v63 }
 0x75c   :  { %v952_v22 = vsel %vm399_vm3, %v951_v28, %v950_v24  ;;  %v925_v44 = vunpack.c.l.b16 %v885_v57  ;;  %v926_v53 = vunpack.c.h.b16 %v885_v57 }
 0x75d   :  { %v923_v0 = vunpack.c.l.b16 %v884_v55  ;;  %v959_v18 = vsel %vm399_vm3, %v958_v29, %v957_v13  ;;  %v924_v59 = vunpack.c.h.b16 %v884_v55 }
 0x75e   :  { %v969_v20 = vperm.slane %v925_v44, %v3689_v33  ;;  %v970_v11 = vperm.slane %v926_v53, %v3709_v10 }
 0x760   :  { %v971_v13 = vsel %vm395_vm2, %v970_v11, %v969_v20 }
 0x761   :  { %v840_v17 = vpop.xlane.xlu0 %839  ;;  %v843_v31 = vpop.xlane.xlu2 %842 }
 0x762   :  { %v837_v39 = vpop.xlane.xlu1 %836 }
 0x763   :  { %v886_v3 = vpack.c.bf16 %v840_v17, %v837_v39 }
 0x765   :  { %v928_v55 = vunpack.c.h.b16 %v886_v3 }
 0x769   :  { %v849_v49 = vpop.xlane.xlu0 %848  ;;  %v852_v61 = vpop.xlane.xlu2 %851 }
 0x76a   :  { %v846_v1 = vpop.xlane.xlu1 %845  ;;  %v888_v56 = vpack.c.bf16 %v852_v61, %v849_v49  ;;  %v965_v49 = vperm.slane %v923_v0, %v3713_v63  ;;  %v927_v61 = vunpack.c.l.b16 %v886_v3 }
 0x76b   :  { %v887_v12 = vpack.c.bf16 %v846_v1, %v843_v31  ;;  %v962_v31 = vperm.slane %v921_v23, %v3689_v33  ;;  %v963_v1 = vperm.slane %v922_v19, %v3709_v10  ;;  %v967_v23 = vperm.slane %v924_v59, %v3724_v26 }
 0x76c   :  { %v931_v30 = vunpack.c.l.b16 %v888_v56  ;;  %v972_v19 = vperm.slane %v927_v61, %v3713_v63 }
 0x76d   :  { %v929_v60 = vunpack.c.l.b16 %v887_v12  ;;  %v930_v42 = vunpack.c.h.b16 %v887_v12  ;;  %v964_v40 = vsel %vm395_vm2, %v963_v1, %v962_v31  ;;  %v954_v31 = vsel %vm403_vm4, %v953_v47, %v952_v22 }
 0x76e   :  { %v966_v35 = vsel %vm399_vm3, %v965_v49, %v964_v40  ;;  %v979_v12 = vperm.slane %v931_v30, %v3713_v63  ;;  %v961_v1 = vsel %vm403_vm4, %v960_v38, %v959_v18  ;;  %v997_v38 = vsel %vm454_vm5, %v954_v31, %v947_v2 }
 0x76f   :  { %v976_v6 = vperm.slane %v929_v60, %v3689_v33  ;;  %v977_v14 = vperm.slane %v930_v42, %v3709_v10  ;;  %v968_v60 = vsel %vm403_vm4, %v967_v23, %v966_v35  ;;  %v973_v42 = vsel %vm399_vm3, %v972_v19, %v971_v13  ;;  %v4025_v23 = vld [vmem:[%s5273_s5 + $0x8] sm:$0xff]  ;;  %v4031_v19 = vld [vmem:[%s5273_s5] sm:$0xff] }
 0x771   :  { %v858_v45 = vpop.xlane.xlu0 %857  ;;  %v861_v51 = vpop.xlane.xlu2 %860  ;;  %v978_v24 = vsel %vm395_vm2, %v977_v14, %v976_v6 }
 0x772   :  { %v855_v41 = vpop.xlane.xlu1 %854  ;;  %v980_v53 = vsel %vm399_vm3, %v979_v12, %v978_v24 }
 0x773   :  { %v889_v9 = vpack.c.bf16 %v858_v45, %v855_v41 }
 0x775   :  { %v933_v52 = vunpack.c.l.b16 %v889_v9  ;;  %v934_v7 = vunpack.c.h.b16 %v889_v9  ;;  %v974_v9 = vperm.slane %v928_v55, %v3724_v26 }
 0x777   :  { %v983_v28 = vperm.slane %v933_v52, %v3689_v33  ;;  %v984_v36 = vperm.slane %v934_v7, %v3709_v10  ;;  %v975_v18 = vsel %vm403_vm4, %v974_v9, %v973_v42 }
 0x779   :  { %v867_v17 = vpop.xlane.xlu0 %866  ;;  %v870_v39 = vpop.xlane.xlu2 %869 }
 0x77a   :  { %v864_v21 = vpop.xlane.xlu1 %863  ;;  %v891_v41 = vpack.c.bf16 %v870_v39, %v867_v17  ;;  %v985_v17 = vsel %vm395_vm2, %v984_v36, %v983_v28 }
 0x77b   :  { %v890_v45 = vpack.c.bf16 %v864_v21, %v861_v51  ;;  %v932_v51 = vunpack.c.h.b16 %v888_v56  ;;  %v998_v21 = vsel %vm456_vm6, %v961_v1, %v997_v38  ;;  %v4057_v38 = vld [vmem:[%s5274_s6] sm:$0xff] }
 0x77c   :  { %v937_v0 = vunpack.c.l.b16 %v891_v41  ;;  %v938_v3 = vunpack.c.h.b16 %v891_v41  ;;  %v999_v52 = vsel %vm458_vm7, %v968_v60, %v998_v21 }
 0x77d   :  { %v935_v46 = vunpack.c.l.b16 %v890_v45  ;;  %v936_v57 = vunpack.c.h.b16 %v890_v45  ;;  %v981_v39 = vperm.slane %v932_v51, %v3724_v26  ;;  %v1000_v6 = vsel %vm460_vm8, %v975_v18, %v999_v52 }
 0x77e   :  { %v990_v47 = vperm.slane %v937_v0, %v3689_v33  ;;  %v991_v22 = vperm.slane %v938_v3, %v3709_v10 }
 0x77f   :  { %v986_v29 = vperm.slane %v935_v46, %v3713_v63  ;;  %v988_v25 = vperm.slane %v936_v57, %v3724_v26  ;;  %v982_v30 = vsel %vm403_vm4, %v981_v39, %v980_v53 }
 0x780   :  { %v992_v14 = vsel %vm395_vm2, %v991_v22, %v990_v47  ;;  %v1001_v41 = vsel %vm462_vm9, %v982_v30, %v1000_v6  ;;  %v3095_v47 = vld [vmem:[%s5270_s0 + $0x8] sm:$0xf]  ;;  %v4083_v6 = vld [vmem:[%s5268_s3] sm:$0xff] }
 0x781   :  { %v876_v56 = vpop.xlane.xlu0 %875  ;;  %v987_v59 = vsel %vm399_vm3, %v986_v29, %v985_v17  ;;  %3097 = vmatmul.msk.bf16.vlgmr.msrb.gmra.mxu3 %vm115_vm0, %v3095_v47  ;;  %v4051_v22 = vld [vmem:[%s5274_s6 + $0x8] sm:$0xff] }
 0x782   :  { %v873_v44 = vpop.xlane.xlu1 %872  ;;  %v989_v7 = vsel %vm403_vm4, %v988_v25, %v987_v59  ;;  %1948 = vmatpush.bf16.msrb.mxu3 %v4051_v22 }
 0x783   :  { %v892_v16 = vpack.c.bf16 %v876_v56, %v873_v44  ;;  %v1002_v11 = vsel %vm464_vm10, %v989_v7, %v1001_v41 }
 0x785   :  { %v939_v49 = vunpack.c.l.b16 %v892_v16  ;;  %v940_v61 = vunpack.c.h.b16 %v892_v16 }
 0x786   :  { %1949 = vmatpush.bf16.msrb.mxu3 %v4057_v38 }
 0x787   :  { %v993_v45 = vperm.slane %v939_v49, %v3713_v63  ;;  %v995_v40 = vperm.slane %v940_v61, %v3724_v26 }
 0x789   :  { %v994_v20 = vsel %vm399_vm3, %v993_v45, %v992_v14  ;;  %v4071_v45 = vld [vmem:[%s5268_s3 + $0x8] sm:$0xff]  ;;  %v4089_v14 = vld [vmem:[%s5267_s4] sm:$0xff] }
 0x78a   :  { %v996_v55 = vsel %vm403_vm4, %v995_v40, %v994_v20  ;;  %v4077_v40 = vld [vmem:[%s5267_s4 + $0x8] sm:$0xff] }
 0x78b   :  { %v1003_v46 = vsel %vm466_vm11, %v996_v55, %v1002_v11 }
 0x78c   :  { %v1004_v35 = vpack.c.b16 %v1003_v46, %v1003_v46 }
 0x78e   :  { %3088 = vmatmul.msk.bf16.vlgmr.msra.gmra.mxu1 %vm115_vm0, %v1004_v35 }
 0x78f   :  { %1494 = vmatpush.bf16.msra.mxu1 %v4025_v23 }
 0x793   :  { %1495 = vmatpush.bf16.msra.mxu1 %v4031_v19 }
 0x804   :  { %v1176_v41 = vpop.f32.mrf.mxu3 }
 0x80b   :  { %v1017_v51 = vpop.f32.mrf.mxu1 }
 0x80c   :  { %v1031_v12 = vadd.f32 %v3956_v32, %v1017_v51  ;;  %v1178_v20 = vpop.f32.mrf.mxu3 }
 0x80d   :  { %v4167_v20 = vld [vmem:[%s5272_s2 + $0x30] sm:$0xff] }
 0x80e   :  { %v1034_v28 = vadd.f32 %v1031_v12, %v3823_v5  ;;  %5394 = vst [vmem:[#allocation9_spill] sm:$0xff] %v4167_v20 }
 0x810   :  { %v1035_v36 = vmax.f32 %v1034_v28, 0.0 }
 0x812   :  { %v1036_v57 = vpack.c.bf16 %v1035_v36, %v1035_v36 }
 0x813   :  { %v1019_v24 = vpop.f32.mrf.mxu1 }
 0x814   :  { %3091 = vmatmul.msk.bf16.vlgmr.msrb.gmra.mxu0 %vm115_vm0, %v1036_v57 }
 0x815   :  { %1585 = vmatpush.bf16.msrb.mxu0 %v3839_v62 }
 0x819   :  { %1586 = vmatpush.bf16.msrb.mxu0 %v3849_v4 }
 0x891   :  { %v1062_v29 = vpop.f32.mrf.mxu0 }
 0x892   :  { %v1063_v0 = vadd.f32 %v1062_v29, %v3879_v27 }
 0x894   :  { %v1066_v3 = vadd.f32 %v1063_v0, %v3828_v34 }
 0x896   :  { %1087 = vrot.lane.b32.xlu2 %v1066_v3, %s3327_s30  ;;  %v3092_v32 = vmul.f32 -1.442695, %v1066_v3 }
 0x898   :  { %3168 = vpow2.f32 %v3092_v32 }
 0x899   :  { %v1064_v2 = vpop.f32.mrf.mxu0 }
 0x89e   :  { %v3169_v13 = vpop.eup %3168 }
 0x89f   :  { %v1070_v9 = vadd.f32 1.0, %v3169_v13  ;;  %v4112_v13 = vld [vmem:[%s5272_s2 + $0x18] sm:$0xff] }
 0x8a1   :  { %3170 = vrcp.f32 %v1070_v9  ;;  %v1082_v4 = vand.u32 2147483648, %v1070_v9  ;;  %vm1076_vm13 = vweird.f32 %v1070_v9  ;;  %v1080_v42 = vand.u32 2147483647, %v1070_v9 }
 0x8a3   :  { %v1083_v44 = vor.u32 1.1754944e-38, %v1082_v4  ;;  %vm1081_vm15 = vcmp.eq.f32.partialorder %v1080_v42, 8.507059e+37 }
 0x8a7   :  { %v3171_v56 = vpop.eup %3170 }
 0x8a8   :  { %v1072_v31 = vmul.f32 %v3171_v56, %v1070_v9  ;;  %vm1077_vm12 = vweird.f32 %v3171_v56 }
 0x8a9   :  { %vm1078_vm14 = vmor %vm1076_vm13, %vm1077_vm12 }
 0x8aa   :  { %v1073_v1 = vsub.f32 1.0, %v1072_v31 }
 0x8ac   :  { %v1074_v60 = vmul.f32 %v3171_v56, %v1073_v1  ;;  %v4124_v1 = vld [vmem:[%s5272_s2] sm:$0xff] }
 0x8ae   :  { %v1075_v62 = vadd.f32 %v3171_v56, %v1074_v60 }
 0x8b0   :  { %v1079_v27 = vsel %vm1078_vm14, %v3171_v56, %v1075_v62  ;;  %v4118_v56 = vld [vmem:[%s5272_s2 + $0x8] sm:$0xff] }
 0x8b1   :  { %v1084_v17 = vsel %vm1081_vm15, %v1083_v44, %v1079_v27  ;;  %v4133_v44 = vld [vmem:[%s5272_s2 + $0x10] sm:$0xff] }
 0x8b2   :  { %v1097_v18 = vsub.f32 1.0, %v1084_v17  ;;  %v1103_v61 = vmul.f32 %v1084_v17, %v3858_v54 }
 0x8f0   :  { %v1088_v53 = vpop.permute.xlu2 %1087 }
 0x8f1   :  { %v1090_v25 = vmul.f32 %v1088_v53, %v1084_v17  ;;  %v4139_v17 = vld [vmem:[%s5272_s2 + $0x20] sm:$0xff] }
 0x8f3   :  { %1092 = vrot.lane.b32.xlu1 %v1090_v25, %s3328_s12 }
 0x965   :  { %v1093_v16 = vpop.permute.xlu1 %1092 }
 0x966   :  { %v1095_v39 = vadd.f32 %v1093_v16, %v1066_v3 }
 0x968   :  { %3172 = vtanh.f32 %v1095_v39  ;;  %v4146_v39 = vld [vmem:[%s5272_s2 + $0x28] sm:$0xff] }
 0x96e   :  { %v3173_v59 = vpop.eup %3172 }
 0x96f   :  { %1099 = vrot.lane.b32.xlu0 %v3173_v59, %s3329_s13 }
 0x9e1   :  { %v1100_v49 = vpop.permute.xlu0 %1099 }
 0x9e2   :  { %v1102_v21 = vmul.f32 %v1100_v49, %v1097_v18 }
 0x9e4   :  { %v4061_v30 = vadd.f32 %v1103_v61, %v1102_v21  ;;  %v4155_v21 = vld [vmem:[%s5272_s2 + $0x38] sm:$0xff] }
 0x9e6   :  { %5390 = vst [vmem:[#allocation3_spill] sm:$0xff] %v4061_v30  ;;  %v1105_v52 = vpack.c.bf16 %v4061_v30, %v4061_v30 }
 0x9e8   :  { %1107 = vrot.lane.b32.xlu2 %v1105_v52, %s3329_s13 }
 0xa42   :  { %v1108_v7 = vpop.permute.xlu2 %1107 }
 0xa43   :  { %3093 = vmatmul.msk.bf16.vlgmr.msrb.gmra.mxu1 %vm115_vm0, %v1108_v7  ;;  %3096 = vmatmul.msk.bf16.vlgmr.msrb.gmra.mxu2 %vm115_vm0, %v1108_v7 }
 0xa44   :  { %1640 = vmatpush.bf16.msrb.mxu2 %v4071_v45  ;;  %1624 = vmatpush.bf16.msrb.mxu1 %v4077_v40 }
 0xa48   :  { %1641 = vmatpush.bf16.msrb.mxu2 %v4083_v6  ;;  %1625 = vmatpush.bf16.msrb.mxu1 %v4089_v14 }
 0xa53   :  { %3100 = vmatmul.msk.bf16.vlgmr.msra.gmra.mxu2 %vm115_vm0, %v1108_v7  ;;  %3099 = vmatmul.msk.bf16.vlgmr.msra.gmra.mxu1 %vm115_vm0, %v3095_v47  ;;  %v4161_v7 = vld [vmem:[%s5272_s2 + $0x40] sm:$0xff] }
 0xa54   :  { %1977 = vmatpush.bf16.msra.mxu1 %v3791_v15  ;;  %1993 = vmatpush.bf16.msra.mxu2 %v3796_v37  ;;  %5393 = vst [vmem:[#allocation4_spill] sm:$0xff] %v4161_v7 }
 0xa58   :  { %1978 = vmatpush.bf16.msra.mxu1 %v3803_v48  ;;  %1994 = vmatpush.bf16.msra.mxu2 %v3816_v58 }
 0xac0   :  { %v4098_v11 = vpop.f32.mrf.mxu1 }
 0xac1   :  { %5391 = vst [vmem:[#allocation6_spill] sm:$0xff] %v4098_v11 }
 0xac6   :  { %v1160_v55 = vpop.f32.mrf.mxu2 }
 0xac7   :  { %v1177_v46 = vadd.f32 %v1176_v41, %v1160_v55 }
 0xac8   :  { %v1123_v35 = vpop.f32.mrf.mxu1 }
 0xac9   :  { %v1180_v51 = vadd.f32 %v1177_v46, %v3440_v8 }
 0xacb   :  { %v1181_v12 = vsel %vm162_vm1, %v1180_v51, -inf }
 0xacc   :  { %1182 = vmax.xlane.f32.xlu0 %v1181_v12  ;;  %v4176_v12 = vld [vmem:[%s5272_s2 + $0x50] sm:$0xff] }
 0xacd   :  { %5395 = vst [vmem:[#allocation8_spill] sm:$0xff] %v4176_v12 }
 0xace   :  { %v1162_v28 = vpop.f32.mrf.mxu2 }
 0xad6   :  { %v4102_v36 = vpop.f32.mrf.mxu2 }
 0xade   :  { %v1515_v15 = vpop.f32.mrf.mxu2 }
 0xadf   :  { %v4182_v15 = vld [vmem:[%s5272_s2 + $0x58] sm:$0xff] }
 0xae0   :  { %5396 = vst [vmem:[#allocation7_spill] sm:$0xff] %v4182_v15 }
 0xb3f   :  { %v1183_v57 = vpop.xlane.xlu0 %1182 }
 0xb40   :  { %v1184_v37 = vsub.f32 %v1180_v51, %v1183_v57 }
 0xb42   :  { %v1185_v24 = vmul.f32 1.442695, %v1184_v37 }
 0xb44   :  { %3174 = vpow2.f32 %v1185_v24  ;;  %v4189_v24 = vld [vmem:[%s5272_s2 + $0x48] sm:$0xff] }
 0xb45   :  { %5397 = vst [vmem:[#allocation12_spill] sm:$0xff] %v4189_v24 }
 0xb4a   :  { %v3175_v48 = vpop.eup %3174 }
 0xb4b   :  { %v1187_v58 = vsel %vm162_vm1, %v3175_v48, 0.0 }
 0xb4c   :  { %1188 = vadd.xlane.f32.xlu1 %v1187_v58 }
 0xbbf   :  { %v1189_v29 = vpop.xlane.xlu1 %1188 }
 0xbc0   :  { %3176 = vrcp.f32 %v1189_v29 }
 0xbc6   :  { %v3177_v0 = vpop.eup %3176 }
 0xbc7   :  { %v4105_v3 = vmul.f32 %v3177_v0, %v3175_v48 }
 0xbc9   :  { %5392 = vst [vmem:[#allocation5_spill] sm:$0xff] %v4105_v3  ;;  %v1200_v2 = vperm.slane %v4105_v3, 0  ;;  %v1193_v32 = vrot.slane %v4105_v3, 1  ;;  %v1194_v16 = vrot.slane %v4105_v3, 2  ;;  %v1195_v37 = vrot.slane %v4105_v3, 3 }
 0xbcb   :  { %v1219_v9 = vmul.f32 %v4112_v13, %v1200_v2  ;;  %v1217_v31 = vmul.f32 %v4118_v56, %v1200_v2  ;;  %v1216_v60 = vmul.f32 %v4124_v1, %v1200_v2  ;;  %v1201_v27 = vperm.slane %v1193_v32, 0  ;;  %v4198_v32 = vld [vmem:[%s5272_s2 + $0x68] sm:$0xff] }
 0xbcc   :  { %v1218_v53 = vmul.f32 %v4133_v44, %v1200_v2  ;;  %v1202_v49 = vperm.slane %v1194_v16, 0  ;;  %v1203_v0 = vperm.slane %v1195_v37, 0  ;;  %5398 = vst [vmem:[#allocation11_spill] sm:$0xff] %v4198_v32  ;;  %v4248_v37 = vld [vmem:[%s5272_s2 + $0xa0] sm:$0xff] }
 0xbcd   :  { %v1257_v62 = vsel %vm162_vm1, %v1219_v9, 0.0  ;;  %v1251_v4 = vsel %vm162_vm1, %v1217_v31, 0.0  ;;  %v1248_v42 = vsel %vm162_vm1, %v1216_v60, 0.0  ;;  %v1220_v25 = vmul.f32 %v4139_v17, %v1201_v27  ;;  %v4204_v31 = vld [vmem:[%s5272_s2 + $0x70] sm:$0xff]  ;;  %5405 = vst [vmem:[#allocation16_spill] sm:$0xff] %v4248_v37 }
 0xbce   :  { %1258 = vadd.xlane.f32.xlu1 %v1257_v62  ;;  %1252 = vadd.xlane.f32.xlu0 %v1251_v4  ;;  %v1221_v59 = vmul.f32 %v4146_v39, %v1201_v27  ;;  %v1254_v47 = vsel %vm162_vm1, %v1218_v53, 0.0  ;;  %v1223_v52 = vmul.f32 %v4155_v21, %v1201_v27  ;;  %v1224_v41 = vmul.f32 %v4161_v7, %v1202_v49  ;;  %v4211_v4 = vld [vmem:[%s5272_s2 + $0x60] sm:$0xff] }
 0xbcf   :  { %1249 = vadd.xlane.f32.xlu2 %v1248_v42  ;;  %v1260_v18 = vsel %vm162_vm1, %v1220_v25, 0.0  ;;  %v1222_v55 = vmul.f32 %v4167_v20, %v1201_v27  ;;  %v1226_v28 = vmul.f32 %v4176_v12, %v1202_v49  ;;  %v1227_v57 = vmul.f32 %v4182_v15, %v1202_v49  ;;  %5399 = vst [vmem:[#allocation10_spill] sm:$0xff] %v4204_v31 }
 0xbd0   :  { %v1263_v61 = vsel %vm162_vm1, %v1221_v59, 0.0  ;;  %v1269_v46 = vsel %vm162_vm1, %v1223_v52, 0.0  ;;  %v1272_v35 = vsel %vm162_vm1, %v1224_v41, 0.0  ;;  %v1225_v48 = vmul.f32 %v4189_v24, %v1202_v49  ;;  %5400 = vst [vmem:[#allocation15_spill] sm:$0xff] %v4211_v4  ;;  %v4220_v59 = vld [vmem:[%s5272_s2 + $0x80] sm:$0xff]  ;;  %v4233_v52 = vld [vmem:[%s5272_s2 + $0x78] sm:$0xff]  ;;  %v4339_v24 = vpop.f32.mrf.mxu1 }
 0xbd1   :  { %v1266_v51 = vsel %vm162_vm1, %v1222_v55, 0.0  ;;  %v1278_v58 = vsel %vm162_vm1, %v1226_v28, 0.0  ;;  %v1281_v29 = vsel %vm162_vm1, %v1227_v57, 0.0  ;;  %v1229_v9 = vmul.f32 %v4198_v32, %v1203_v0  ;;  %5401 = vst [vmem:[#allocation14_spill] sm:$0xff] %v4220_v59  ;;  %v4242_v28 = vld [vmem:[%s5272_s2 + $0x98] sm:$0xff] }
 0xbd2   :  { %v1275_v2 = vsel %vm162_vm1, %v1225_v48, 0.0  ;;  %v1230_v60 = vmul.f32 %v4204_v31, %v1203_v0  ;;  %v1196_v62 = vrot.slane %v4105_v3, 4  ;;  %v1228_v42 = vmul.f32 %v4211_v4, %v1203_v0  ;;  %5403 = vst [vmem:[#allocation18_spill] sm:$0xff] %v4233_v52 }
 0xbd3   :  { %v1287_v27 = vsel %vm162_vm1, %v1229_v9, 0.0  ;;  %v1231_v41 = vmul.f32 %v4233_v52, %v1203_v0  ;;  %5404 = vst [vmem:[#allocation17_spill] sm:$0xff] %v4242_v28 }
 0xbd4   :  { %v1290_v53 = vsel %vm162_vm1, %v1230_v60, 0.0  ;;  %v1204_v25 = vperm.slane %v1196_v62, 0  ;;  %v1284_v16 = vsel %vm162_vm1, %v1228_v42, 0.0  ;;  %v4263_v60 = vld [vmem:[%s5272_s2 + $0xb0] sm:$0xff]  ;;  %v4269_v42 = vld [vmem:[%s5272_s2 + $0xb8] sm:$0xff] }
 0xbd5   :  { %5407 = vst [vmem:[#allocation20_spill] sm:$0xff] %v4263_v60 }
 0xbd6   :  { %1255 = vadd.xlane.f32.xlu0 %v1254_v47  ;;  %1261 = vadd.xlane.f32.xlu1 %v1260_v18  ;;  %v1232_v47 = vmul.f32 %v4220_v59, %v1204_v25  ;;  %v4226_v18 = vld [vmem:[%s5272_s2 + $0x88] sm:$0xff]  ;;  %v1235_v57 = vmul.f32 %v4242_v28, %v1204_v25  ;;  %5408 = vst [vmem:[#allocation19_spill] sm:$0xff] %v4269_v42 }
 0xbd7   :  { %1264 = vadd.xlane.f32.xlu2 %v1263_v61  ;;  %5402 = vst [vmem:[#allocation13_spill] sm:$0xff] %v4226_v18  ;;  %v1233_v49 = vmul.f32 %v4226_v18, %v1204_v25  ;;  %v1197_v61 = vrot.slane %v4105_v3, 5 }
 0xbd8   :  { %v1296_v55 = vsel %vm162_vm1, %v1232_v47, 0.0  ;;  %v1305_v0 = vsel %vm162_vm1, %v1235_v57, 0.0  ;;  %v1199_v57 = vrot.slane %v4105_v3, 7 }
 0xbde   :  { %1270 = vadd.xlane.f32.xlu0 %v1269_v46  ;;  %1273 = vadd.xlane.f32.xlu1 %v1272_v35  ;;  %v1299_v46 = vsel %vm162_vm1, %v1233_v49, 0.0  ;;  %v1205_v35 = vperm.slane %v1197_v61, 0 }
 0xbdf   :  { %1267 = vadd.xlane.f32.xlu2 %v1266_v51  ;;  %v1293_v51 = vsel %vm162_vm1, %v1231_v41, 0.0 }
 0xbe0   :  { %v1236_v48 = vmul.f32 %v4248_v37, %v1205_v35  ;;  %v1238_v62 = vmul.f32 %v4263_v60, %v1205_v35 }
 0xbe2   :  { %v1314_v47 = vsel %vm162_vm1, %v1238_v62, 0.0 }
 0xbe6   :  { %1279 = vadd.xlane.f32.xlu0 %v1278_v58  ;;  %1282 = vadd.xlane.f32.xlu1 %v1281_v29  ;;  %v4254_v58 = vld [vmem:[%s5272_s2 + $0x90] sm:$0xff] }
 0xbe7   :  { %1276 = vadd.xlane.f32.xlu2 %v1275_v2  ;;  %5406 = vst [vmem:[#allocation21_spill] sm:$0xff] %v4254_v58  ;;  %v1234_v29 = vmul.f32 %v4254_v58, %v1204_v25  ;;  %v1308_v2 = vsel %vm162_vm1, %v1236_v48, 0.0  ;;  %v4276_v25 = vld [vmem:[%s5272_s2 + $0xa8] sm:$0xff]  ;;  %v4298_v48 = vld [vmem:[%s5272_s2 + $0xc0] sm:$0xff] }
 0xbe8   :  { %5409 = vst [vmem:[#allocation22_spill] sm:$0xff] %v4276_v25 }
 0xbe9   :  { %v1302_v9 = vsel %vm162_vm1, %v1234_v29, 0.0  ;;  %5412 = vst [vmem:[#allocation28_spill] sm:$0xff] %v4298_v48 }
 0xbee   :  { %1288 = vadd.xlane.f32.xlu0 %v1287_v27  ;;  %1291 = vadd.xlane.f32.xlu1 %v1290_v53  ;;  %v1239_v27 = vmul.f32 %v4269_v42, %v1205_v35  ;;  %v1198_v53 = vrot.slane %v4105_v3, 6 }
 0xbef   :  { %1285 = vadd.xlane.f32.xlu2 %v1284_v16  ;;  %v1237_v16 = vmul.f32 %v4276_v25, %v1205_v35  ;;  %v4291_v35 = vld [vmem:[%s5272_s2 + $0xd0] sm:$0xff] }
 0xbf0   :  { %v1317_v49 = vsel %vm162_vm1, %v1239_v27, 0.0  ;;  %v1206_v61 = vperm.slane %v1198_v53, 0  ;;  %5411 = vst [vmem:[#allocation27_spill] sm:$0xff] %v4291_v35  ;;  %v4307_v27 = vld [vmem:[%s5272_s2 + $0xe0] sm:$0xff] }
 0xbf1   :  { %v1311_v41 = vsel %vm162_vm1, %v1237_v16, 0.0  ;;  %5413 = vst [vmem:[#allocation29_spill] sm:$0xff] %v4307_v27  ;;  %v4313_v16 = vld [vmem:[%s5272_s2 + $0xe8] sm:$0xff] }
 0xbf2   :  { %v1240_v29 = vmul.f32 %v4298_v48, %v1206_v61  ;;  %5414 = vst [vmem:[#allocation30_spill] sm:$0xff] %v4313_v16 }
 0xbf4   :  { %v1320_v62 = vsel %vm162_vm1, %v1240_v29, 0.0  ;;  %v4328_v29 = vld [vmem:[%s5272_s2 + $0xf8] sm:$0xff] }
 0xbf5   :  { %5416 = vst [vmem:[#allocation32_spill] sm:$0xff] %v4328_v29 }
 0xbf6   :  { %1297 = vadd.xlane.f32.xlu0 %v1296_v55  ;;  %1300 = vadd.xlane.f32.xlu1 %v1299_v46  ;;  %v4285_v55 = vld [vmem:[%s5272_s2 + $0xc8] sm:$0xff] }
 0xbf7   :  { %1294 = vadd.xlane.f32.xlu2 %v1293_v51  ;;  %5410 = vst [vmem:[#allocation26_spill] sm:$0xff] %v4285_v55  ;;  %v1241_v46 = vmul.f32 %v4285_v55, %v1206_v61  ;;  %v1242_v51 = vmul.f32 %v4291_v35, %v1206_v61 }
 0xbfe   :  { %1306 = vadd.xlane.f32.xlu0 %v1305_v0  ;;  %1309 = vadd.xlane.f32.xlu1 %v1308_v2  ;;  %v1323_v0 = vsel %vm162_vm1, %v1241_v46, 0.0  ;;  %v1326_v2 = vsel %vm162_vm1, %v1242_v51, 0.0 }
 0xbff   :  { %1303 = vadd.xlane.f32.xlu2 %v1302_v9  ;;  %v1207_v9 = vperm.slane %v1199_v57, 0 }
 0xc01   :  { %v1244_v53 = vmul.f32 %v4307_v27, %v1207_v9 }
 0xc03   :  { %v1332_v46 = vsel %vm162_vm1, %v1244_v53, 0.0 }
 0xc06   :  { %1315 = vadd.xlane.f32.xlu0 %v1314_v47  ;;  %1318 = vadd.xlane.f32.xlu1 %v1317_v49  ;;  %v1245_v47 = vmul.f32 %v4313_v16, %v1207_v9  ;;  %v4319_v49 = vld [vmem:[%s5272_s2 + $0xd8] sm:$0xff] }
 0xc07   :  { %1312 = vadd.xlane.f32.xlu2 %v1311_v41  ;;  %5415 = vst [vmem:[#allocation31_spill] sm:$0xff] %v4319_v49  ;;  %v1243_v41 = vmul.f32 %v4319_v49, %v1206_v61  ;;  %v4334_v61 = vld [vmem:[%s5272_s2 + $0xf0] sm:$0xff] }
 0xc08   :  { %v1335_v51 = vsel %vm162_vm1, %v1245_v47, 0.0  ;;  %5417 = vst [vmem:[#allocation33_spill] sm:$0xff] %v4334_v61 }
 0xc09   :  { %v1329_v57 = vsel %vm162_vm1, %v1243_v41, 0.0 }
 0xc0e   :  { %1324 = vadd.xlane.f32.xlu0 %v1323_v0  ;;  %1327 = vadd.xlane.f32.xlu1 %v1326_v2  ;;  %v1247_v0 = vmul.f32 %v4328_v29, %v1207_v9  ;;  %v1246_v2 = vmul.f32 %v4334_v61, %v1207_v9 }
 0xc0f   :  { %1321 = vadd.xlane.f32.xlu2 %v1320_v62 }
 0xc10   :  { %v1341_v62 = vsel %vm162_vm1, %v1247_v0, 0.0  ;;  %v1338_v53 = vsel %vm162_vm1, %v1246_v2, 0.0 }
 0xc16   :  { %1333 = vadd.xlane.f32.xlu0 %v1332_v46  ;;  %1336 = vadd.xlane.f32.xlu1 %v1335_v51 }
 0xc17   :  { %1330 = vadd.xlane.f32.xlu2 %v1329_v57 }
 0xc1e   :  { %1342 = vadd.xlane.f32.xlu0 %v1341_v62 }
 0xc1f   :  { %1339 = vadd.xlane.f32.xlu2 %v1338_v53 }
 0xc41   :  { %v1259_v47 = vpop.xlane.xlu1 %1258  ;;  %v1253_v41 = vpop.xlane.xlu0 %1252 }
 0xc42   :  { %v1250_v46 = vpop.xlane.xlu2 %1249 }
 0xc43   :  { %v1344_v35 = vpack.c.bf16 %v1253_v41, %v1250_v46 }
 0xc45   :  { %v1376_v37 = vunpack.c.l.b16 %v1344_v35  ;;  %v1377_v28 = vunpack.c.h.b16 %v1344_v35 }
 0xc47   :  { %v1408_v15 = vperm.slane %v1376_v37, %v3689_v33  ;;  %v1409_v12 = vperm.slane %v1377_v28, %v3709_v10 }
 0xc49   :  { %v1256_v51 = vpop.xlane.xlu0 %1255  ;;  %v1262_v57 = vpop.xlane.xlu1 %1261  ;;  %v1410_v37 = vsel %vm395_vm2, %v1409_v12, %v1408_v15 }
 0xc4a   :  { %v1265_v43 = vpop.xlane.xlu2 %1264  ;;  %v1345_v55 = vpack.c.bf16 %v1259_v47, %v1256_v51 }
 0xc4b   :  { %v1346_v60 = vpack.c.bf16 %v1265_v43, %v1262_v57 }
 0xc4c   :  { %v1378_v18 = vunpack.c.l.b16 %v1345_v55  ;;  %v1379_v46 = vunpack.c.h.b16 %v1345_v55 }
 0xc4d   :  { %v1380_v4 = vunpack.c.l.b16 %v1346_v60  ;;  %v1381_v31 = vunpack.c.h.b16 %v1346_v60 }
 0xc4e   :  { %v1411_v43 = vperm.slane %v1378_v18, %v3713_v63  ;;  %v1413_v55 = vperm.slane %v1379_v46, %v3724_v26 }
 0xc50   :  { %v1412_v20 = vsel %vm399_vm3, %v1411_v43, %v1410_v37 }
 0xc51   :  { %v1271_v3 = vpop.xlane.xlu0 %1270  ;;  %v1274_v11 = vpop.xlane.xlu1 %1273 }
 0xc52   :  { %v1268_v54 = vpop.xlane.xlu2 %1267 }
 0xc53   :  { %v1347_v59 = vpack.c.bf16 %v1271_v3, %v1268_v54  ;;  %v1415_v54 = vperm.slane %v1380_v4, %v3689_v33  ;;  %v1416_v3 = vperm.slane %v1381_v31, %v3709_v10 }
 0xc55   :  { %v1382_v57 = vunpack.c.l.b16 %v1347_v59 }
 0xc57   :  { %v1418_v4 = vperm.slane %v1382_v57, %v3713_v63 }
 0xc59   :  { %v1280_v50 = vpop.xlane.xlu0 %1279  ;;  %v1283_v29 = vpop.xlane.xlu1 %1282 }
 0xc5a   :  { %v1277_v49 = vpop.xlane.xlu2 %1276  ;;  %v1349_v32 = vpack.c.bf16 %v1283_v29, %v1280_v50  ;;  %v1383_v29 = vunpack.c.h.b16 %v1347_v59 }
 0xc5b   :  { %v1348_v52 = vpack.c.bf16 %v1277_v49, %v1274_v11 }
 0xc5c   :  { %v1386_v50 = vunpack.c.l.b16 %v1349_v32  ;;  %v1387_v31 = vunpack.c.h.b16 %v1349_v32 }
 0xc5d   :  { %v1384_v41 = vunpack.c.l.b16 %v1348_v52  ;;  %v1385_v47 = vunpack.c.h.b16 %v1348_v52 }
 0xc5e   :  { %v1425_v12 = vperm.slane %v1386_v50, %v3713_v63 }
 0xc5f   :  { %v1422_v28 = vperm.slane %v1384_v41, %v3689_v33  ;;  %v1423_v52 = vperm.slane %v1385_v47, %v3709_v10  ;;  %v1420_v41 = vperm.slane %v1383_v29, %v3724_v26 }
 0xc61   :  { %v1289_v16 = vpop.xlane.xlu0 %1288  ;;  %v1292_v9 = vpop.xlane.xlu1 %1291  ;;  %v1424_v47 = vsel %vm395_vm2, %v1423_v52, %v1422_v28 }
 0xc62   :  { %v1286_v61 = vpop.xlane.xlu2 %1285 }
 0xc63   :  { %v1350_v51 = vpack.c.bf16 %v1289_v16, %v1286_v61 }
 0xc65   :  { %v1388_v18 = vunpack.c.l.b16 %v1350_v51  ;;  %v1389_v16 = vunpack.c.h.b16 %v1350_v51 }
 0xc69   :  { %v1298_v0 = vpop.xlane.xlu0 %1297  ;;  %v1301_v62 = vpop.xlane.xlu1 %1300 }
 0xc6a   :  { %v1295_v27 = vpop.xlane.xlu2 %1294  ;;  %v1352_v7 = vpack.c.bf16 %v1301_v62, %v1298_v0  ;;  %v1427_v62 = vperm.slane %v1387_v31, %v3724_v26 }
 0xc6b   :  { %v1351_v60 = vpack.c.bf16 %v1295_v27, %v1292_v9  ;;  %v1417_v27 = vsel %vm395_vm2, %v1416_v3, %v1415_v54  ;;  %v1499_v9 = vpop.f32.mrf.mxu1  ;;  %v1426_v3 = vsel %vm399_vm3, %v1425_v12, %v1424_v47 }
 0xc6c   :  { %v1419_v0 = vsel %vm399_vm3, %v1418_v4, %v1417_v27  ;;  %v1392_v57 = vunpack.c.l.b16 %v1352_v7  ;;  %v1393_v54 = vunpack.c.h.b16 %v1352_v7 }
 0xc6d   :  { %v1390_v15 = vunpack.c.l.b16 %v1351_v60  ;;  %v1391_v50 = vunpack.c.h.b16 %v1351_v60 }
 0xc6e   :  { %v1437_v4 = vperm.slane %v1393_v54, %v3709_v10 }
 0xc6f   :  { %v1434_v12 = vperm.slane %v1391_v50, %v3724_v26  ;;  %v1428_v50 = vsel %vm403_vm4, %v1427_v62, %v1426_v3 }
 0xc71   :  { %v1307_v2 = vpop.xlane.xlu0 %1306  ;;  %v1310_v53 = vpop.xlane.xlu1 %1309 }
 0xc72   :  { %v1304_v48 = vpop.xlane.xlu2 %1303 }
 0xc73   :  { %v1353_v59 = vpack.c.bf16 %v1307_v2, %v1304_v48 }
 0xc75   :  { %v1395_v60 = vunpack.c.h.b16 %v1353_v59 }
 0xc79   :  { %v1316_v25 = vpop.xlane.xlu0 %1315  ;;  %v1319_v42 = vpop.xlane.xlu1 %1318 }
 0xc7a   :  { %v1313_v58 = vpop.xlane.xlu2 %1312  ;;  %v1355_v46 = vpack.c.bf16 %v1319_v42, %v1316_v25  ;;  %v1432_v42 = vperm.slane %v1390_v15, %v3713_v63  ;;  %v1394_v25 = vunpack.c.l.b16 %v1353_v59 }
 0xc7b   :  { %v1354_v61 = vpack.c.bf16 %v1313_v58, %v1310_v53  ;;  %v1429_v58 = vperm.slane %v1388_v18, %v3689_v33  ;;  %v1430_v53 = vperm.slane %v1389_v16, %v3709_v10 }
 0xc7c   :  { %v1439_v15 = vperm.slane %v1394_v25, %v3713_v63 }
 0xc7d   :  { %v1396_v43 = vunpack.c.l.b16 %v1354_v61  ;;  %v1397_v32 = vunpack.c.h.b16 %v1354_v61  ;;  %v1431_v52 = vsel %vm395_vm2, %v1430_v53, %v1429_v58  ;;  %v1436_v61 = vperm.slane %v1392_v57, %v3689_v33 }
 0xc7e   :  { %v1433_v27 = vsel %vm399_vm3, %v1432_v42, %v1431_v52  ;;  %v1414_v57 = vsel %vm403_vm4, %v1413_v55, %v1412_v20 }
 0xc7f   :  { %v1443_v18 = vperm.slane %v1396_v43, %v3689_v33  ;;  %v1444_v16 = vperm.slane %v1397_v32, %v3709_v10  ;;  %v1438_v54 = vsel %vm395_vm2, %v1437_v4, %v1436_v61  ;;  %v1435_v42 = vsel %vm403_vm4, %v1434_v12, %v1433_v27 }
 0xc80   :  { %v1440_v25 = vsel %vm399_vm3, %v1439_v15, %v1438_v54 }
 0xc81   :  { %v1325_v35 = vpop.xlane.xlu0 %1324  ;;  %v1328_v11 = vpop.xlane.xlu1 %1327  ;;  %v1445_v53 = vsel %vm395_vm2, %v1444_v16, %v1443_v18 }
 0xc82   :  { %v1322_v49 = vpop.xlane.xlu2 %1321 }
 0xc83   :  { %v1356_v51 = vpack.c.bf16 %v1325_v35, %v1322_v49  ;;  %v1398_v49 = vunpack.c.l.b16 %v1355_v46 }
 0xc85   :  { %v1400_v37 = vunpack.c.l.b16 %v1356_v51  ;;  %v1401_v29 = vunpack.c.h.b16 %v1356_v51  ;;  %v1446_v9 = vperm.slane %v1398_v49, %v3713_v63 }
 0xc87   :  { %v1450_v47 = vperm.slane %v1400_v37, %v3689_v33  ;;  %v1451_v51 = vperm.slane %v1401_v29, %v3709_v10  ;;  %v1447_v49 = vsel %vm399_vm3, %v1446_v9, %v1445_v53 }
 0xc89   :  { %v1334_v48 = vpop.xlane.xlu0 %1333  ;;  %v1337_v2 = vpop.xlane.xlu1 %1336  ;;  %v1452_v37 = vsel %vm395_vm2, %v1451_v51, %v1450_v47 }
 0xc8a   :  { %v1331_v35 = vpop.xlane.xlu2 %1330  ;;  %v1358_v7 = vpack.c.bf16 %v1337_v2, %v1334_v48  ;;  %v1441_v48 = vperm.slane %v1395_v60, %v3724_v26  ;;  %v1421_v2 = vsel %vm403_vm4, %v1420_v41, %v1419_v0 }
 0xc8b   :  { %v1357_v28 = vpack.c.bf16 %v1331_v35, %v1328_v11  ;;  %v1399_v11 = vunpack.c.h.b16 %v1355_v46  ;;  %v1464_v62 = vsel %vm454_vm5, %v1421_v2, %v1414_v57 }
 0xc8c   :  { %v1404_v59 = vunpack.c.l.b16 %v1358_v7  ;;  %v1405_v32 = vunpack.c.h.b16 %v1358_v7  ;;  %v1442_v3 = vsel %vm403_vm4, %v1441_v48, %v1440_v25  ;;  %v1465_v16 = vsel %vm456_vm6, %v1428_v50, %v1464_v62  ;;  %v4413_v48 = vld [vmem:[%s5277_s9 + $0x8] sm:$0xff] }
 0xc8d   :  { %v1402_v31 = vunpack.c.l.b16 %v1357_v28  ;;  %v1403_v58 = vunpack.c.h.b16 %v1357_v28  ;;  %v1448_v29 = vperm.slane %v1399_v11, %v3724_v26  ;;  %v1466_v61 = vsel %vm458_vm7, %v1435_v42, %v1465_v16 }
 0xc8e   :  { %v1457_v41 = vperm.slane %v1404_v59, %v3689_v33  ;;  %v1458_v0 = vperm.slane %v1405_v32, %v3709_v10  ;;  %v1467_v27 = vsel %vm460_vm8, %v1442_v3, %v1466_v61 }
 0xc8f   :  { %v1453_v43 = vperm.slane %v1402_v31, %v3713_v63  ;;  %v1455_v20 = vperm.slane %v1403_v58, %v3724_v26  ;;  %v1449_v7 = vsel %vm403_vm4, %v1448_v29, %v1447_v49 }
 0xc90   :  { %v1459_v12 = vsel %vm395_vm2, %v1458_v0, %v1457_v41  ;;  %v1468_v15 = vsel %vm462_vm9, %v1449_v7, %v1467_v27  ;;  %v3105_v7 = vld [vmem:[%s5270_s0 + $0xc] sm:$0xf] }
 0xc91   :  { %v1343_v46 = vpop.xlane.xlu0 %1342  ;;  %v1454_v28 = vsel %vm399_vm3, %v1453_v43, %v1452_v37  ;;  %3107 = vmatmul.msk.bf16.vlgmr.msrb.gmra.mxu2 %vm115_vm0, %v3105_v7 }
 0xc92   :  { %v1340_v35 = vpop.xlane.xlu2 %1339  ;;  %v1456_v4 = vsel %vm403_vm4, %v1455_v20, %v1454_v28  ;;  %2415 = vmatpush.bf16.msrb.mxu2 %v4051_v22  ;;  %v4450_v22 = vld [vmem:[%s5275_s8 + $0x8] sm:$0xff] }
 0xc93   :  { %v1359_v55 = vpack.c.bf16 %v1343_v46, %v1340_v35  ;;  %v1469_v9 = vsel %vm464_vm10, %v1456_v4, %v1468_v15 }
 0xc95   :  { %v1406_v52 = vunpack.c.l.b16 %v1359_v55  ;;  %v1407_v18 = vunpack.c.h.b16 %v1359_v55 }
 0xc96   :  { %2416 = vmatpush.bf16.msrb.mxu2 %v4057_v38  ;;  %v4456_v38 = vld [vmem:[%s5276_s7 + $0x8] sm:$0xff] }
 0xc97   :  { %v1460_v60 = vperm.slane %v1406_v52, %v3713_v63  ;;  %v1462_v31 = vperm.slane %v1407_v18, %v3724_v26 }
 0xc99   :  { %v1461_v11 = vsel %vm399_vm3, %v1460_v60, %v1459_v12 }
 0xc9a   :  { %v1463_v47 = vsel %vm403_vm4, %v1462_v31, %v1461_v11 }
 0xc9b   :  { %v1470_v51 = vsel %vm466_vm11, %v1463_v47, %v1469_v9 }
 0xc9c   :  { %v1471_v58 = vpack.c.b16 %v1470_v51, %v1470_v51 }
 0xc9e   :  { %3098 = vmatmul.msk.bf16.vlgmr.msra.gmra.mxu0 %vm115_vm0, %v1471_v58 }
 0xc9f   :  { %1961 = vmatpush.bf16.msra.mxu0 %v4025_v23  ;;  %v4419_v23 = vld [vmem:[%s5277_s9] sm:$0xff] }
 0xca3   :  { %1962 = vmatpush.bf16.msra.mxu0 %v4031_v19 }
 0xd14   :  { %v1643_v15 = vpop.f32.mrf.mxu2 }
 0xd1b   :  { %v1484_v53 = vpop.f32.mrf.mxu0 }
 0xd1c   :  { %v1498_v43 = vadd.f32 %v4339_v24, %v1484_v53  ;;  %v1645_v11 = vpop.f32.mrf.mxu2 }
 0xd1e   :  { %v1501_v59 = vadd.f32 %v1498_v43, %v3823_v5 }
 0xd20   :  { %v1502_v32 = vmax.f32 %v1501_v59, 0.0 }
 0xd22   :  { %v1503_v57 = vpack.c.bf16 %v1502_v32, %v1502_v32 }
 0xd23   :  { %v1486_v54 = vpop.f32.mrf.mxu0 }
 0xd24   :  { %3101 = vmatmul.msk.bf16.vlgmr.msra.gmra.mxu3 %vm115_vm0, %v1503_v57 }
 0xd25   :  { %2052 = vmatpush.bf16.msra.mxu3 %v4413_v48 }
 0xd29   :  { %2053 = vmatpush.bf16.msra.mxu3 %v4419_v23 }
 0xda7   :  { %v1529_v19 = vpop.f32.mrf.mxu3 }
 0xda8   :  { %v1530_v24 = vadd.f32 %v1529_v19, %v4102_v36 }
 0xdaa   :  { %v1533_v46 = vadd.f32 %v1530_v24, %v3828_v34 }
 0xdac   :  { %1554 = vrot.lane.b32.xlu1 %v1533_v46, %s3327_s30  ;;  %v3102_v50 = vmul.f32 -1.442695, %v1533_v46 }
 0xdae   :  { %3178 = vpow2.f32 %v3102_v50 }
 0xdaf   :  { %v1531_v2 = vpop.f32.mrf.mxu3 }
 0xdb4   :  { %v3179_v42 = vpop.eup %3178 }
 0xdb5   :  { %v1537_v25 = vadd.f32 1.0, %v3179_v42 }
 0xdb7   :  { %3180 = vrcp.f32 %v1537_v25  ;;  %v1549_v29 = vand.u32 2147483648, %v1537_v25  ;;  %vm1543_vm13 = vweird.f32 %v1537_v25  ;;  %v1547_v28 = vand.u32 2147483647, %v1537_v25 }
 0xdb9   :  { %v1550_v41 = vor.u32 1.1754944e-38, %v1549_v29  ;;  %vm1548_vm15 = vcmp.eq.f32.partialorder %v1547_v28, 8.507059e+37 }
 0xdbd   :  { %v3181_v35 = vpop.eup %3180 }
 0xdbe   :  { %v1539_v49 = vmul.f32 %v3181_v35, %v1537_v25  ;;  %vm1544_vm12 = vweird.f32 %v3181_v35 }
 0xdbf   :  { %vm1545_vm14 = vmor %vm1543_vm13, %vm1544_vm12 }
 0xdc0   :  { %v1540_v37 = vsub.f32 1.0, %v1539_v49 }
 0xdc2   :  { %v1541_v20 = vmul.f32 %v3181_v35, %v1540_v37 }
 0xdc4   :  { %v1542_v55 = vadd.f32 %v3181_v35, %v1541_v20 }
 0xdc6   :  { %v1546_v36 = vsel %vm1545_vm14, %v3181_v35, %v1542_v55 }
 0xdc7   :  { %v1551_v62 = vsel %vm1548_vm15, %v1550_v41, %v1546_v36 }
 0xdc8   :  { %v1564_v61 = vsub.f32 1.0, %v1551_v62  ;;  %v1570_v60 = vmul.f32 %v1551_v62, %v4061_v30 }
 0xe1e   :  { %v1555_v0 = vpop.permute.xlu1 %1554 }
 0xe1f   :  { %v1557_v3 = vmul.f32 %v1555_v0, %v1551_v62 }
 0xe21   :  { %1559 = vrot.lane.b32.xlu2 %v1557_v3, %s3328_s12 }
 0xe7b   :  { %v1560_v52 = vpop.permute.xlu2 %1559 }
 0xe7c   :  { %v1562_v18 = vadd.f32 %v1560_v52, %v1533_v46 }
 0xe7e   :  { %3182 = vtanh.f32 %v1562_v18 }
 0xe84   :  { %v3183_v16 = vpop.eup %3182 }
 0xe85   :  { %1566 = vrot.lane.b32.xlu0 %v3183_v16, %s3329_s13  ;;  %v5421_v16 = vld [vmem:[#allocation4_spill] sm:$0xff] }
 0xef7   :  { %v1567_v4 = vpop.permute.xlu0 %1566 }
 0xef8   :  { %v1569_v31 = vmul.f32 %v1567_v4, %v1564_v61 }
 0xefa   :  { %v4434_v27 = vadd.f32 %v1570_v60, %v1569_v31  ;;  %v5423_v60 = vld [vmem:[#allocation8_spill] sm:$0xff] }
 0xefc   :  { %5418 = vst [vmem:[#allocation34_spill] sm:$0xff] %v4434_v27  ;;  %v1572_v12 = vpack.c.bf16 %v4434_v27, %v4434_v27 }
 0xefe   :  { %1574 = vrot.lane.b32.xlu1 %v1572_v12, %s3329_s13  ;;  %v5424_v12 = vld [vmem:[#allocation7_spill] sm:$0xff] }
 0xf70   :  { %v1575_v9 = vpop.permute.xlu1 %1574 }
 0xf71   :  { %3103 = vmatmul.msk.bf16.vlgmr.msrb.gmra.mxu0 %vm115_vm0, %v1575_v9  ;;  %3106 = vmatmul.msk.bf16.vlgmr.msrb.gmra.mxu1 %vm115_vm0, %v1575_v9 }
 0xf72   :  { %2091 = vmatpush.bf16.msrb.mxu0 %v4077_v40  ;;  %2107 = vmatpush.bf16.msrb.mxu1 %v4071_v45  ;;  %v4462_v45 = vld [vmem:[%s5275_s8] sm:$0xff] }
 0xf73   :  { %v4468_v40 = vld [vmem:[%s5276_s7] sm:$0xff] }
 0xf76   :  { %2108 = vmatpush.bf16.msrb.mxu1 %v4083_v6  ;;  %2092 = vmatpush.bf16.msrb.mxu0 %v4089_v14 }
 0xf81   :  { %3110 = vmatmul.msk.bf16.vlgmr.msra.gmra.mxu1 %vm115_vm0, %v1575_v9  ;;  %3109 = vmatmul.msk.bf16.vlgmr.msra.gmra.mxu0 %vm115_vm0, %v3105_v7  ;;  %v5422_v7 = vld [vmem:[#allocation9_spill] sm:$0xff] }
 0xf82   :  { %2444 = vmatpush.bf16.msra.mxu0 %v4450_v22  ;;  %2460 = vmatpush.bf16.msra.mxu1 %v4456_v38 }
 0xf86   :  { %2445 = vmatpush.bf16.msra.mxu0 %v4462_v45  ;;  %2461 = vmatpush.bf16.msra.mxu1 %v4468_v40 }
 0xfee   :  { %v4471_v6 = vpop.f32.mrf.mxu0  ;;  %v1627_v14 = vpop.f32.mrf.mxu1 }
 0xfef   :  { %5419 = vst [vmem:[#allocation35_spill] sm:$0xff] %v4471_v6  ;;  %v1644_v47 = vadd.f32 %v1643_v15, %v1627_v14 }
 0xff1   :  { %v1647_v51 = vadd.f32 %v1644_v47, %v3440_v8 }
 0xff3   :  { %v1648_v58 = vsel %vm162_vm1, %v1647_v51, -inf }
 0xff4   :  { %1649 = vmax.xlane.f32.xlu0 %v1648_v58 }
 0xff6   :  { %v1590_v53 = vpop.f32.mrf.mxu0  ;;  %v1629_v43 = vpop.f32.mrf.mxu1 }
 0xff7   :  { %v5426_v53 = vld [vmem:[#allocation11_spill] sm:$0xff] }
 0xffe   :  { %v4475_v59 = vpop.f32.mrf.mxu1 }
0x1006   :  { %v1982_v32 = vpop.f32.mrf.mxu1 }
0x1007   :  { %v5427_v32 = vld [vmem:[#allocation10_spill] sm:$0xff] }
0x1067   :  { %v1650_v57 = vpop.xlane.xlu0 %1649 }
0x1068   :  { %v1651_v54 = vsub.f32 %v1647_v51, %v1650_v57 }
0x106a   :  { %v1652_v19 = vmul.f32 1.442695, %v1651_v54 }
0x106c   :  { %3184 = vpow2.f32 %v1652_v19  ;;  %v5428_v19 = vld [vmem:[#allocation15_spill] sm:$0xff] }
0x1072   :  { %v3185_v24 = vpop.eup %3184 }
0x1073   :  { %v1654_v46 = vsel %vm162_vm1, %v3185_v24, 0.0 }
0x1074   :  { %1655 = vadd.xlane.f32.xlu2 %v1654_v46 }
0x10e7   :  { %v1656_v2 = vpop.xlane.xlu2 %1655 }
0x10e8   :  { %3186 = vrcp.f32 %v1656_v2 }
0x10ee   :  { %v3187_v50 = vpop.eup %3186 }
0x10ef   :  { %v4478_v42 = vmul.f32 %v3187_v50, %v3185_v24 }
0x10f1   :  { %5420 = vst [vmem:[#allocation36_spill] sm:$0xff] %v4478_v42  ;;  %v1667_v25 = vperm.slane %v4478_v42, 0  ;;  %v1660_v35 = vrot.slane %v4478_v42, 1  ;;  %v1662_v11 = vrot.slane %v4478_v42, 3  ;;  %v1663_v54 = vrot.slane %v4478_v42, 4 }
0x10f3   :  { %v1686_v49 = vmul.f32 %v4112_v13, %v1667_v25  ;;  %v1684_v37 = vmul.f32 %v4118_v56, %v1667_v25  ;;  %v1683_v20 = vmul.f32 %v4124_v1, %v1667_v25  ;;  %v1668_v36 = vperm.slane %v1660_v35, 0  ;;  %v5429_v35 = vld [vmem:[#allocation14_spill] sm:$0xff] }
0x10f4   :  { %v1685_v41 = vmul.f32 %v4133_v44, %v1667_v25  ;;  %v1661_v13 = vrot.slane %v4478_v42, 2  ;;  %v1670_v51 = vperm.slane %v1662_v11, 0  ;;  %v1671_v50 = vperm.slane %v1663_v54, 0 }
0x10f5   :  { %v1724_v55 = vsel %vm162_vm1, %v1686_v49, 0.0  ;;  %v1718_v29 = vsel %vm162_vm1, %v1684_v37, 0.0  ;;  %v1715_v28 = vsel %vm162_vm1, %v1683_v20, 0.0  ;;  %v1687_v0 = vmul.f32 %v4139_v17, %v1668_v36  ;;  %v5430_v37 = vld [vmem:[#allocation13_spill] sm:$0xff] }
0x10f6   :  { %1725 = vadd.xlane.f32.xlu2 %v1724_v55  ;;  %1719 = vadd.xlane.f32.xlu0 %v1718_v29  ;;  %v1688_v56 = vmul.f32 %v4146_v39, %v1668_v36  ;;  %v1721_v1 = vsel %vm162_vm1, %v1685_v41, 0.0  ;;  %v1669_v3 = vperm.slane %v1661_v13, 0  ;;  %v1690_v18 = vmul.f32 %v4155_v21, %v1668_v36  ;;  %v5425_v21 = vld [vmem:[#allocation12_spill] sm:$0xff]  ;;  %v5431_v29 = vld [vmem:[#allocation18_spill] sm:$0xff] }
0x10f7   :  { %1716 = vadd.xlane.f32.xlu1 %v1715_v28  ;;  %v1727_v62 = vsel %vm162_vm1, %v1687_v0, 0.0  ;;  %v1689_v17 = vmul.f32 %v5422_v7, %v1668_v36  ;;  %v1696_v43 = vmul.f32 %v5426_v53, %v1670_v51  ;;  %v1697_v57 = vmul.f32 %v5427_v32, %v1670_v51 }
0x10f8   :  { %v1730_v52 = vsel %vm162_vm1, %v1688_v56, 0.0  ;;  %v1691_v44 = vmul.f32 %v5421_v16, %v1669_v3  ;;  %v1736_v61 = vsel %vm162_vm1, %v1690_v18, 0.0  ;;  %v1693_v31 = vmul.f32 %v5423_v60, %v1669_v3  ;;  %v5432_v56 = vld [vmem:[#allocation17_spill] sm:$0xff] }
0x10f9   :  { %v1733_v4 = vsel %vm162_vm1, %v1689_v17, 0.0  ;;  %v1694_v15 = vmul.f32 %v5424_v12, %v1669_v3  ;;  %v1692_v9 = vmul.f32 %v5425_v21, %v1669_v3  ;;  %v1695_v24 = vmul.f32 %v5428_v19, %v1670_v51  ;;  %v5435_v17 = vld [vmem:[#allocation20_spill] sm:$0xff] }
0x10fa   :  { %v1739_v39 = vsel %vm162_vm1, %v1691_v44, 0.0  ;;  %v1745_v14 = vsel %vm162_vm1, %v1693_v31, 0.0  ;;  %v1754_v46 = vsel %vm162_vm1, %v1696_v43, 0.0  ;;  %v1757_v2 = vsel %vm162_vm1, %v1697_v57, 0.0  ;;  %v5437_v31 = vld [vmem:[#allocation22_spill] sm:$0xff]  ;;  %v5440_v43 = vld [vmem:[#allocation28_spill] sm:$0xff] }
0x10fb   :  { %v1748_v47 = vsel %vm162_vm1, %v1694_v15, 0.0  ;;  %v1742_v58 = vsel %vm162_vm1, %v1692_v9, 0.0  ;;  %v1751_v25 = vsel %vm162_vm1, %v1695_v24, 0.0  ;;  %v1699_v49 = vmul.f32 %v5429_v35, %v1671_v50  ;;  %v5443_v35 = vld [vmem:[#allocation31_spill] sm:$0xff] }
0x10fc   :  { %v1700_v20 = vmul.f32 %v5430_v37, %v1671_v50  ;;  %v1664_v55 = vrot.slane %v4478_v42, 5  ;;  %v1698_v28 = vmul.f32 %v5431_v29, %v1670_v51  ;;  %v1665_v60 = vrot.slane %v4478_v42, 6  ;;  %v5439_v51 = vld [vmem:[#allocation27_spill] sm:$0xff]  ;;  %v5444_v29 = vld [vmem:[#allocation32_spill] sm:$0xff] }
0x10fd   :  { %v1763_v36 = vsel %vm162_vm1, %v1699_v49, 0.0  ;;  %v1666_v53 = vrot.slane %v4478_v42, 7 }
0x10fe   :  { %1722 = vadd.xlane.f32.xlu0 %v1721_v1  ;;  %1728 = vadd.xlane.f32.xlu2 %v1727_v62  ;;  %v1766_v41 = vsel %vm162_vm1, %v1700_v20, 0.0  ;;  %v1672_v0 = vperm.slane %v1664_v55, 0  ;;  %v1760_v13 = vsel %vm162_vm1, %v1698_v28, 0.0  ;;  %v1702_v1 = vmul.f32 %v5432_v56, %v1671_v50  ;;  %v5433_v62 = vld [vmem:[#allocation16_spill] sm:$0xff] }
0x10ff   :  { %1731 = vadd.xlane.f32.xlu1 %v1730_v52  ;;  %v5434_v52 = vld [vmem:[#allocation21_spill] sm:$0xff]  ;;  %v1673_v21 = vperm.slane %v1665_v60, 0  ;;  %v1674_v19 = vperm.slane %v1666_v53, 0 }
0x1100   :  { %v1703_v3 = vmul.f32 %v5433_v62, %v1672_v0  ;;  %v1701_v18 = vmul.f32 %v5434_v52, %v1671_v50  ;;  %v1772_v16 = vsel %vm162_vm1, %v1702_v1, 0.0  ;;  %v1704_v12 = vmul.f32 %v5437_v31, %v1672_v0  ;;  %v5442_v50 = vld [vmem:[#allocation30_spill] sm:$0xff] }
0x1101   :  { %v1707_v32 = vmul.f32 %v5440_v43, %v1673_v21  ;;  %v1710_v49 = vmul.f32 %v5443_v35, %v1673_v21  ;;  %v1714_v28 = vmul.f32 %v5444_v29, %v1674_v19 }
0x1102   :  { %v1775_v44 = vsel %vm162_vm1, %v1703_v3, 0.0  ;;  %v1769_v7 = vsel %vm162_vm1, %v1701_v18, 0.0  ;;  %v1778_v9 = vsel %vm162_vm1, %v1704_v12, 0.0 }
0x1103   :  { %v1787_v24 = vsel %vm162_vm1, %v1707_v32, 0.0  ;;  %v1796_v55 = vsel %vm162_vm1, %v1710_v49, 0.0 }
0x1106   :  { %1737 = vadd.xlane.f32.xlu0 %v1736_v61  ;;  %1740 = vadd.xlane.f32.xlu2 %v1739_v39  ;;  %v1705_v61 = vmul.f32 %v5435_v17, %v1672_v0  ;;  %v5436_v39 = vld [vmem:[#allocation19_spill] sm:$0xff] }
0x1107   :  { %1734 = vadd.xlane.f32.xlu1 %v1733_v4  ;;  %v1706_v4 = vmul.f32 %v5436_v39, %v1672_v0  ;;  %v1808_v0 = vsel %vm162_vm1, %v1714_v28, 0.0 }
0x1108   :  { %v1781_v15 = vsel %vm162_vm1, %v1705_v61, 0.0 }
0x1109   :  { %v1784_v11 = vsel %vm162_vm1, %v1706_v4, 0.0 }
0x110e   :  { %1746 = vadd.xlane.f32.xlu0 %v1745_v14  ;;  %1749 = vadd.xlane.f32.xlu2 %v1748_v47  ;;  %v5438_v14 = vld [vmem:[#allocation26_spill] sm:$0xff] }
0x110f   :  { %1743 = vadd.xlane.f32.xlu1 %v1742_v58  ;;  %v1708_v47 = vmul.f32 %v5438_v14, %v1673_v21  ;;  %v1709_v58 = vmul.f32 %v5439_v51, %v1673_v21 }
0x1111   :  { %v1790_v57 = vsel %vm162_vm1, %v1708_v47, 0.0  ;;  %v1793_v54 = vsel %vm162_vm1, %v1709_v58, 0.0 }
0x1116   :  { %1755 = vadd.xlane.f32.xlu0 %v1754_v46  ;;  %1758 = vadd.xlane.f32.xlu2 %v1757_v2  ;;  %v5441_v46 = vld [vmem:[#allocation29_spill] sm:$0xff] }
0x1117   :  { %1752 = vadd.xlane.f32.xlu1 %v1751_v25  ;;  %v1711_v2 = vmul.f32 %v5441_v46, %v1674_v19  ;;  %v1712_v25 = vmul.f32 %v5442_v50, %v1674_v19 }
0x1119   :  { %v1799_v37 = vsel %vm162_vm1, %v1711_v2, 0.0  ;;  %v1802_v20 = vsel %vm162_vm1, %v1712_v25, 0.0 }
0x111e   :  { %1764 = vadd.xlane.f32.xlu0 %v1763_v36  ;;  %1767 = vadd.xlane.f32.xlu2 %v1766_v41  ;;  %v5445_v36 = vld [vmem:[#allocation33_spill] sm:$0xff] }
0x111f   :  { %1761 = vadd.xlane.f32.xlu1 %v1760_v13  ;;  %v1713_v41 = vmul.f32 %v5445_v36, %v1674_v19 }
0x1121   :  { %v1805_v13 = vsel %vm162_vm1, %v1713_v41, 0.0 }
0x1126   :  { %1773 = vadd.xlane.f32.xlu0 %v1772_v16  ;;  %1776 = vadd.xlane.f32.xlu2 %v1775_v44 }
0x1127   :  { %1770 = vadd.xlane.f32.xlu1 %v1769_v7 }
0x112e   :  { %1782 = vadd.xlane.f32.xlu0 %v1781_v15  ;;  %1785 = vadd.xlane.f32.xlu2 %v1784_v11 }
0x112f   :  { %1779 = vadd.xlane.f32.xlu1 %v1778_v9 }
0x1136   :  { %1791 = vadd.xlane.f32.xlu0 %v1790_v57  ;;  %1794 = vadd.xlane.f32.xlu2 %v1793_v54 }
0x1137   :  { %1788 = vadd.xlane.f32.xlu1 %v1787_v24 }
0x113e   :  { %1800 = vadd.xlane.f32.xlu0 %v1799_v37  ;;  %1803 = vadd.xlane.f32.xlu2 %v1802_v20 }
0x113f   :  { %1797 = vadd.xlane.f32.xlu1 %v1796_v55 }
0x1146   :  { %1809 = vadd.xlane.f32.xlu0 %v1808_v0 }
0x1147   :  { %1806 = vadd.xlane.f32.xlu1 %v1805_v13 }
0x1169   :  { %v1726_v56 = vpop.xlane.xlu2 %1725  ;;  %v1720_v1 = vpop.xlane.xlu0 %1719 }
0x116a   :  { %v1717_v62 = vpop.xlane.xlu1 %1716 }
0x116b   :  { %v1811_v3 = vpack.c.bf16 %v1720_v1, %v1717_v62 }
0x116d   :  { %v1843_v52 = vunpack.c.l.b16 %v1811_v3  ;;  %v1844_v18 = vunpack.c.h.b16 %v1811_v3 }
0x116f   :  { %v1875_v61 = vperm.slane %v1843_v52, %v3689_v33  ;;  %v1876_v39 = vperm.slane %v1844_v18, %v3709_v10 }
0x1171   :  { %v1723_v16 = vpop.xlane.xlu0 %1722  ;;  %v1729_v44 = vpop.xlane.xlu2 %1728  ;;  %v1877_v11 = vsel %vm395_vm2, %v1876_v39, %v1875_v61 }
0x1172   :  { %v1812_v7 = vpack.c.bf16 %v1726_v56, %v1723_v16  ;;  %v1732_v17 = vpop.xlane.xlu1 %1731 }
0x1173   :  { %v1813_v31 = vpack.c.bf16 %v1732_v17, %v1729_v44  ;;  %v4569_v44 = vpop.f32.mrf.mxu0 }
0x1174   :  { %v1845_v4 = vunpack.c.l.b16 %v1812_v7  ;;  %v1846_v60 = vunpack.c.h.b16 %v1812_v7 }
0x1175   :  { %v1847_v9 = vunpack.c.l.b16 %v1813_v31  ;;  %v1848_v14 = vunpack.c.h.b16 %v1813_v31 }
0x1176   :  { %v1878_v12 = vperm.slane %v1845_v4, %v3713_v63  ;;  %v1880_v15 = vperm.slane %v1846_v60, %v3724_v26 }
0x1177   :  { %v1882_v32 = vperm.slane %v1847_v9, %v3689_v33  ;;  %v1883_v57 = vperm.slane %v1848_v14, %v3709_v10 }
0x1178   :  { %v1879_v21 = vsel %vm399_vm3, %v1878_v12, %v1877_v11 }
0x1179   :  { %v1881_v47 = vsel %vm403_vm4, %v1880_v15, %v1879_v21  ;;  %v1738_v51 = vpop.xlane.xlu0 %1737  ;;  %v1741_v58 = vpop.xlane.xlu2 %1740  ;;  %v1884_v2 = vsel %vm395_vm2, %v1883_v57, %v1882_v32 }
0x117a   :  { %v1735_v53 = vpop.xlane.xlu1 %1734 }
0x117b   :  { %v1814_v43 = vpack.c.bf16 %v1738_v51, %v1735_v53  ;;  %v1966_v32 = vpop.f32.mrf.mxu0 }
0x117d   :  { %v1849_v54 = vunpack.c.l.b16 %v1814_v43  ;;  %v1850_v19 = vunpack.c.h.b16 %v1814_v43 }
0x117f   :  { %v1885_v24 = vperm.slane %v1849_v54, %v3713_v63  ;;  %v1887_v46 = vperm.slane %v1850_v19, %v3724_v26 }
0x1181   :  { %v1886_v50 = vsel %vm399_vm3, %v1885_v24, %v1884_v2  ;;  %v1747_v25 = vpop.xlane.xlu0 %1746  ;;  %v1750_v35 = vpop.xlane.xlu2 %1749 }
0x1182   :  { %v1888_v49 = vsel %vm403_vm4, %v1887_v46, %v1886_v50  ;;  %v1744_v37 = vpop.xlane.xlu1 %1743  ;;  %v1816_v16 = vpack.c.bf16 %v1750_v35, %v1747_v25 }
0x1183   :  { %v4567_v20 = vsel %vm454_vm5, %v1888_v49, %v1881_v47  ;;  %v1815_v18 = vpack.c.bf16 %v1744_v37, %v1741_v58 }
0x1184   :  { %v1853_v60 = vunpack.c.l.b16 %v1816_v16  ;;  %v1854_v47 = vunpack.c.h.b16 %v1816_v16 }
0x1185   :  { %v1851_v7 = vunpack.c.l.b16 %v1815_v18  ;;  %v1852_v17 = vunpack.c.h.b16 %v1815_v18 }
0x1186   :  { %v1892_v58 = vperm.slane %v1853_v60, %v3713_v63  ;;  %v1894_v25 = vperm.slane %v1854_v47, %v3724_v26 }
0x1187   :  { %v1889_v15 = vperm.slane %v1851_v7, %v3689_v33  ;;  %v1890_v11 = vperm.slane %v1852_v17, %v3709_v10 }
0x1189   :  { %v1756_v55 = vpop.xlane.xlu0 %1755  ;;  %v1759_v29 = vpop.xlane.xlu2 %1758  ;;  %v1891_v57 = vsel %vm395_vm2, %v1890_v11, %v1889_v15 }
0x118a   :  { %v1753_v28 = vpop.xlane.xlu1 %1752 }
0x118b   :  { %v1817_v61 = vpack.c.bf16 %v1756_v55, %v1753_v28 }
0x118d   :  { %v1855_v21 = vunpack.c.l.b16 %v1817_v61  ;;  %v1856_v9 = vunpack.c.h.b16 %v1817_v61 }
0x118f   :  { %v1896_v24 = vperm.slane %v1855_v21, %v3689_v33  ;;  %v1897_v46 = vperm.slane %v1856_v9, %v3709_v10 }
0x1191   :  { %v1765_v36 = vpop.xlane.xlu0 %1764  ;;  %v1768_v41 = vpop.xlane.xlu2 %1767 }
0x1192   :  { %v1762_v0 = vpop.xlane.xlu1 %1761  ;;  %v1819_v51 = vpack.c.bf16 %v1768_v41, %v1765_v36 }
0x1193   :  { %v1818_v31 = vpack.c.bf16 %v1762_v0, %v1759_v29  ;;  %v1893_v29 = vsel %vm399_vm3, %v1892_v58, %v1891_v57 }
0x1194   :  { %v1859_v35 = vunpack.c.l.b16 %v1819_v51  ;;  %v1860_v49 = vunpack.c.h.b16 %v1819_v51  ;;  %v1895_v57 = vsel %vm403_vm4, %v1894_v25, %v1893_v29 }
0x1195   :  { %v1857_v53 = vunpack.c.l.b16 %v1818_v31  ;;  %v1858_v28 = vunpack.c.h.b16 %v1818_v31 }
0x1196   :  { %v1903_v7 = vperm.slane %v1859_v35, %v3689_v33  ;;  %v1904_v17 = vperm.slane %v1860_v49, %v3709_v10 }
0x1197   :  { %v1899_v36 = vperm.slane %v1857_v53, %v3713_v63  ;;  %v1901_v31 = vperm.slane %v1858_v28, %v3724_v26 }
0x1198   :  { %v1905_v53 = vsel %vm395_vm2, %v1904_v17, %v1903_v7 }
0x1199   :  { %v1774_v13 = vpop.xlane.xlu0 %1773  ;;  %v1777_v56 = vpop.xlane.xlu2 %1776 }
0x119a   :  { %v1771_v1 = vpop.xlane.xlu1 %1770 }
0x119b   :  { %v1820_v43 = vpack.c.bf16 %v1774_v13, %v1771_v1 }
0x119d   :  { %v1861_v41 = vunpack.c.l.b16 %v1820_v43  ;;  %v1862_v61 = vunpack.c.h.b16 %v1820_v43 }
0x119f   :  { %v1908_v43 = vperm.slane %v1862_v61, %v3724_v26 }
0x11a1   :  { %v1783_v62 = vpop.xlane.xlu0 %1782  ;;  %v1786_v3 = vpop.xlane.xlu2 %1785 }
0x11a2   :  { %v1780_v52 = vpop.xlane.xlu1 %1779  ;;  %v1822_v54 = vpack.c.bf16 %v1786_v3, %v1783_v62  ;;  %v1898_v3 = vsel %vm395_vm2, %v1897_v46, %v1896_v24 }
0x11a3   :  { %v1821_v14 = vpack.c.bf16 %v1780_v52, %v1777_v56  ;;  %v1900_v60 = vsel %vm399_vm3, %v1899_v36, %v1898_v3 }
0x11a4   :  { %v1865_v13 = vunpack.c.l.b16 %v1822_v54 }
0x11a5   :  { %v1863_v2 = vunpack.c.l.b16 %v1821_v14  ;;  %v1864_v50 = vunpack.c.h.b16 %v1821_v14 }
0x11a6   :  { %v1913_v15 = vperm.slane %v1865_v13, %v3713_v63 }
0x11a7   :  { %v1910_v52 = vperm.slane %v1863_v2, %v3689_v33  ;;  %v1911_v18 = vperm.slane %v1864_v50, %v3709_v10 }
0x11a9   :  { %v1792_v39 = vpop.xlane.xlu0 %1791  ;;  %v1795_v4 = vpop.xlane.xlu2 %1794  ;;  %v1912_v14 = vsel %vm395_vm2, %v1911_v18, %v1910_v52 }
0x11aa   :  { %v1789_v12 = vpop.xlane.xlu1 %1788  ;;  %v1914_v46 = vsel %vm399_vm3, %v1913_v15, %v1912_v14 }
0x11ab   :  { %v1823_v19 = vpack.c.bf16 %v1792_v39, %v1789_v12  ;;  %v1906_v12 = vperm.slane %v1861_v41, %v3713_v63  ;;  %v1932_v41 = vsel %vm456_vm6, %v1895_v57, %v4567_v20 }
0x11ad   :  { %v1867_v56 = vunpack.c.l.b16 %v1823_v19  ;;  %v1868_v1 = vunpack.c.h.b16 %v1823_v19  ;;  %v1907_v19 = vsel %vm399_vm3, %v1906_v12, %v1905_v53 }
0x11ae   :  { %v1909_v29 = vsel %vm403_vm4, %v1908_v43, %v1907_v19 }
0x11af   :  { %v1917_v11 = vperm.slane %v1867_v56, %v3689_v33  ;;  %v1918_v21 = vperm.slane %v1868_v1, %v3709_v10 }
0x11b1   :  { %v1801_v37 = vpop.xlane.xlu0 %1800  ;;  %v1804_v55 = vpop.xlane.xlu2 %1803  ;;  %v1919_v2 = vsel %vm395_vm2, %v1918_v21, %v1917_v11 }
0x11b2   :  { %v1798_v0 = vpop.xlane.xlu1 %1797  ;;  %v1825_v16 = vpack.c.bf16 %v1804_v55, %v1801_v37 }
0x11b3   :  { %v1824_v62 = vpack.c.bf16 %v1798_v0, %v1795_v4  ;;  %v1866_v4 = vunpack.c.h.b16 %v1822_v54  ;;  %v1902_v54 = vsel %vm403_vm4, %v1901_v31, %v1900_v60  ;;  %v4630_v60 = vld [vmem:[%s5273_s5] sm:$0xff] }
0x11b4   :  { %v1871_v51 = vunpack.c.l.b16 %v1825_v16  ;;  %v1872_v58 = vunpack.c.h.b16 %v1825_v16  ;;  %v1933_v13 = vsel %vm458_vm7, %v1902_v54, %v1932_v41 }
0x11b5   :  { %v1869_v39 = vunpack.c.l.b16 %v1824_v62  ;;  %v1870_v9 = vunpack.c.h.b16 %v1824_v62  ;;  %v1915_v49 = vperm.slane %v1866_v4, %v3724_v26  ;;  %v1934_v3 = vsel %vm460_vm8, %v1909_v29, %v1933_v13  ;;  %v3287_v29 = vld [vmem:[%s5274_s6] sm:$0xff] }
0x11b6   :  { %v1924_v55 = vperm.slane %v1871_v51, %v3689_v33  ;;  %v1925_v25 = vperm.slane %v1872_v58, %v3709_v10 }
0x11b7   :  { %v1920_v47 = vperm.slane %v1869_v39, %v3713_v63  ;;  %v1922_v50 = vperm.slane %v1870_v9, %v3724_v26  ;;  %v1916_v0 = vsel %vm403_vm4, %v1915_v49, %v1914_v46  ;;  %v4624_v39 = vld [vmem:[%s5273_s5 + $0x8] sm:$0xff] }
0x11b8   :  { %v1926_v52 = vsel %vm395_vm2, %v1925_v25, %v1924_v55  ;;  %v1935_v18 = vsel %vm462_vm9, %v1916_v0, %v1934_v3  ;;  %v3115_v55 = vld [vmem:[%s5270_s0 + $0x10] sm:$0xf]  ;;  %v3286_v25 = vld [vmem:[%s5274_s6 + $0x8] sm:$0xff] }
0x11b9   :  { %v1810_v32 = vpop.xlane.xlu0 %1809  ;;  %v1921_v37 = vsel %vm399_vm3, %v1920_v47, %v1919_v2  ;;  %3117 = vmatmul.msk.bf16.vlgmr.msrb.gmra.mxu1 %vm115_vm0, %v3115_v55  ;;  %v3289_v3 = vld [vmem:[%s5268_s3 + $0x8] sm:$0xff] }
0x11ba   :  { %v1807_v24 = vpop.xlane.xlu1 %1806  ;;  %v1923_v56 = vsel %vm403_vm4, %v1922_v50, %v1921_v37  ;;  %2882 = vmatpush.bf16.msrb.mxu1 %v3286_v25 }
0x11bb   :  { %v1826_v35 = vpack.c.bf16 %v1810_v32, %v1807_v24  ;;  %v1936_v20 = vsel %vm464_vm10, %v1923_v56, %v1935_v18  ;;  %v3290_v18 = vld [vmem:[%s5267_s4] sm:$0xff] }
0x11bd   :  { %v1873_v28 = vunpack.c.l.b16 %v1826_v35  ;;  %v1874_v36 = vunpack.c.h.b16 %v1826_v35 }
0x11be   :  { %2883 = vmatpush.bf16.msrb.mxu1 %v3287_v29 }
0x11bf   :  { %v1927_v1 = vperm.slane %v1873_v28, %v3713_v63  ;;  %v1929_v62 = vperm.slane %v1874_v36, %v3724_v26 }
0x11c1   :  { %v1928_v16 = vsel %vm399_vm3, %v1927_v1, %v1926_v52 }
0x11c2   :  { %v1930_v7 = vsel %vm403_vm4, %v1929_v62, %v1928_v16  ;;  %v3288_v62 = vld [vmem:[%s5267_s4 + $0x8] sm:$0xff]  ;;  %v3291_v16 = vld [vmem:[%s5268_s3] sm:$0xff] }
0x11c3   :  { %v1937_v17 = vsel %vm466_vm11, %v1930_v7, %v1936_v20 }
0x11c4   :  { %v1938_v61 = vpack.c.b16 %v1937_v17, %v1937_v17 }
0x11c6   :  { %3108 = vmatmul.msk.bf16.vlgmr.msrb.gmra.mxu3 %vm115_vm0, %v1938_v61 }
0x11c7   :  { %2428 = vmatpush.bf16.msrb.mxu3 %v4624_v39 }
0x11cb   :  { %2429 = vmatpush.bf16.msrb.mxu3 %v4630_v60 }
0x1236   :  { %v2110_v52 = vpop.f32.mrf.mxu1 }
0x123e   :  { %v2112_v20 = vpop.f32.mrf.mxu1 }
0x123f   :  { %v4757_v20 = vld [vmem:[%s5272_s2 + $0x50] sm:$0xff] }
0x1249   :  { %v1951_v31 = vpop.f32.mrf.mxu3 }
0x124a   :  { %v1965_v12 = vadd.f32 %v4569_v44, %v1951_v31 }
0x124c   :  { %v1968_v4 = vadd.f32 %v1965_v12, %v3823_v5 }
0x124e   :  { %v1969_v15 = vmax.f32 %v1968_v4, 0.0 }
0x1250   :  { %v1970_v11 = vpack.c.bf16 %v1969_v15, %v1969_v15 }
0x1251   :  { %v1953_v21 = vpop.f32.mrf.mxu3 }
0x1252   :  { %3111 = vmatmul.msk.bf16.vlgmr.msra.gmra.mxu2 %vm115_vm0, %v1970_v11 }
0x1253   :  { %2519 = vmatpush.bf16.msra.mxu2 %v4413_v48 }
0x1257   :  { %2520 = vmatpush.bf16.msra.mxu2 %v4419_v23 }
0x12d5   :  { %v1996_v9 = vpop.f32.mrf.mxu2 }
0x12d6   :  { %v1997_v14 = vadd.f32 %v1996_v9, %v4475_v59 }
0x12d8   :  { %v2000_v47 = vadd.f32 %v1997_v14, %v3828_v34 }
0x12da   :  { %2021 = vrot.lane.b32.xlu2 %v2000_v47, %s3327_s30  ;;  %v3112_v44 = vmul.f32 -1.442695, %v2000_v47 }
0x12dc   :  { %3188 = vpow2.f32 %v3112_v44 }
0x12dd   :  { %v1998_v51 = vpop.f32.mrf.mxu2 }
0x12e2   :  { %v3189_v58 = vpop.eup %3188 }
0x12e3   :  { %v2004_v53 = vadd.f32 1.0, %v3189_v58 }
0x12e5   :  { %3190 = vrcp.f32 %v2004_v53  ;;  %v2016_v23 = vand.u32 2147483648, %v2004_v53  ;;  %vm2010_vm13 = vweird.f32 %v2004_v53  ;;  %v2014_v19 = vand.u32 2147483647, %v2004_v53 }
0x12e7   :  { %v2017_v24 = vor.u32 1.1754944e-38, %v2016_v23  ;;  %vm2015_vm15 = vcmp.eq.f32.partialorder %v2014_v19, 8.507059e+37 }
0x12eb   :  { %v3191_v43 = vpop.eup %3190 }
0x12ec   :  { %v2006_v32 = vmul.f32 %v3191_v43, %v2004_v53  ;;  %vm2011_vm12 = vweird.f32 %v3191_v43  ;;  %v4693_v53 = vld [vmem:[%s5272_s2 + $0x18] sm:$0xff] }
0x12ed   :  { %vm2012_vm14 = vmor %vm2010_vm13, %vm2011_vm12 }
0x12ee   :  { %v2007_v57 = vsub.f32 1.0, %v2006_v32  ;;  %v4699_v32 = vld [vmem:[%s5272_s2 + $0x8] sm:$0xff] }
0x12f0   :  { %v2008_v54 = vmul.f32 %v3191_v43, %v2007_v57 }
0x12f2   :  { %v2009_v48 = vadd.f32 %v3191_v43, %v2008_v54  ;;  %v4705_v54 = vld [vmem:[%s5272_s2] sm:$0xff] }
0x12f4   :  { %v2013_v59 = vsel %vm2012_vm14, %v3191_v43, %v2009_v48 }
0x12f5   :  { %v2018_v2 = vsel %vm2015_vm15, %v2017_v24, %v2013_v59 }
0x12f6   :  { %v2031_v28 = vsub.f32 1.0, %v2018_v2  ;;  %v2037_v41 = vmul.f32 %v2018_v2, %v4434_v27 }
0x1334   :  { %v2022_v46 = vpop.permute.xlu2 %2021 }
0x1335   :  { %v2024_v50 = vmul.f32 %v2022_v46, %v2018_v2  ;;  %v4714_v46 = vld [vmem:[%s5272_s2 + $0x10] sm:$0xff] }
0x1337   :  { %2026 = vrot.lane.b32.xlu1 %v2024_v50, %s3328_s12  ;;  %v4720_v50 = vld [vmem:[%s5272_s2 + $0x20] sm:$0xff] }
0x13a9   :  { %v2027_v35 = vpop.permute.xlu1 %2026 }
0x13aa   :  { %v2029_v49 = vadd.f32 %v2027_v35, %v2000_v47 }
0x13ac   :  { %3192 = vtanh.f32 %v2029_v49 }
0x13b2   :  { %v3193_v37 = vpop.eup %3192 }
0x13b3   :  { %2033 = vrot.lane.b32.xlu0 %v3193_v37, %s3329_s13  ;;  %v4727_v37 = vld [vmem:[%s5272_s2 + $0x28] sm:$0xff] }
0x1425   :  { %v2034_v36 = vpop.permute.xlu0 %2033 }
0x1426   :  { %v2036_v0 = vmul.f32 %v2034_v36, %v2031_v28 }
0x1428   :  { %v4654_v13 = vadd.f32 %v2037_v41, %v2036_v0  ;;  %v4736_v41 = vld [vmem:[%s5272_s2 + $0x38] sm:$0xff] }
0x142a   :  { %v2039_v56 = vpack.c.bf16 %v4654_v13, %v4654_v13 }
0x142c   :  { %2041 = vrot.lane.b32.xlu2 %v2039_v56, %s3329_s13  ;;  %v4742_v56 = vld [vmem:[%s5272_s2 + $0x40] sm:$0xff] }
0x1486   :  { %v2042_v1 = vpop.permute.xlu2 %2041 }
0x1487   :  { %3113 = vmatmul.msk.bf16.vlgmr.msra.gmra.mxu3 %vm115_vm0, %v2042_v1  ;;  %3116 = vmatmul.msk.bf16.vlgmr.msrb.gmra.mxu0 %vm115_vm0, %v2042_v1 }
0x1488   :  { %2558 = vmatpush.bf16.msra.mxu3 %v3288_v62  ;;  %2574 = vmatpush.bf16.msrb.mxu0 %v3289_v3  ;;  %v4748_v62 = vld [vmem:[%s5272_s2 + $0x30] sm:$0xff] }
0x148c   :  { %2559 = vmatpush.bf16.msra.mxu3 %v3290_v18  ;;  %2575 = vmatpush.bf16.msrb.mxu0 %v3291_v16 }
0x1497   :  { %3120 = vmatmul.msk.bf16.vlgmr.msra.gmra.mxu0 %vm115_vm0, %v2042_v1  ;;  %3119 = vmatmul.msk.bf16.vlgmr.msrb.gmra.mxu3 %vm115_vm0, %v3115_v55 }
0x1498   :  { %2911 = vmatpush.bf16.msrb.mxu3 %v4450_v22  ;;  %2927 = vmatpush.bf16.msra.mxu0 %v4456_v38 }
0x149c   :  { %2912 = vmatpush.bf16.msrb.mxu3 %v4462_v45  ;;  %2928 = vmatpush.bf16.msra.mxu0 %v4468_v40 }
0x1504   :  { %v2094_v7 = vpop.f32.mrf.mxu0 }
0x1505   :  { %v2111_v17 = vadd.f32 %v2110_v52, %v2094_v7 }
0x1507   :  { %v2114_v61 = vadd.f32 %v2111_v17, %v3440_v8  ;;  %v4763_v17 = vld [vmem:[%s5272_s2 + $0x58] sm:$0xff] }
0x1509   :  { %v2115_v31 = vsel %vm162_vm1, %v2114_v61, -inf }
0x150a   :  { %2116 = vmax.xlane.f32.xlu0 %v2115_v31  ;;  %v4681_v12 = vpop.f32.mrf.mxu3 }
0x150b   :  { %5446 = vst [vmem:[#allocation4_spill] sm:$0xff] %v4681_v12 }
0x150c   :  { %v2096_v4 = vpop.f32.mrf.mxu0 }
0x150d   :  { %v4770_v4 = vld [vmem:[%s5272_s2 + $0x48] sm:$0xff] }
0x1512   :  { %v2057_v15 = vpop.f32.mrf.mxu3 }
0x1514   :  { %v4683_v11 = vpop.f32.mrf.mxu0 }
0x151c   :  { %v2449_v22 = vpop.f32.mrf.mxu0 }
0x157d   :  { %v2117_v21 = vpop.xlane.xlu0 %2116 }
0x157e   :  { %v2118_v38 = vsub.f32 %v2114_v61, %v2117_v21 }
0x1580   :  { %v2119_v9 = vmul.f32 1.442695, %v2118_v38 }
0x1582   :  { %3194 = vpow2.f32 %v2119_v9 }
0x1588   :  { %v3195_v45 = vpop.eup %3194 }
0x1589   :  { %v2121_v40 = vsel %vm162_vm1, %v3195_v45, 0.0 }
0x158a   :  { %2122 = vadd.xlane.f32.xlu1 %v2121_v40 }
0x15fd   :  { %v2123_v14 = vpop.xlane.xlu1 %2122 }
0x15fe   :  { %3196 = vrcp.f32 %v2123_v14  ;;  %v4785_v14 = vld [vmem:[%s5272_s2 + $0x70] sm:$0xff] }
0x1604   :  { %v3197_v47 = vpop.eup %3196 }
0x1605   :  { %v4686_v51 = vmul.f32 %v3197_v47, %v3195_v45  ;;  %v4779_v45 = vld [vmem:[%s5272_s2 + $0x68] sm:$0xff] }
0x1607   :  { %5447 = vst [vmem:[#allocation9_spill] sm:$0xff] %v4686_v51  ;;  %v2134_v44 = vperm.slane %v4686_v51, 0  ;;  %v2127_v58 = vrot.slane %v4686_v51, 1  ;;  %v2128_v49 = vrot.slane %v4686_v51, 2  ;;  %v2129_v31 = vrot.slane %v4686_v51, 3 }
0x1609   :  { %v2153_v43 = vmul.f32 %v4693_v53, %v2134_v44  ;;  %v2151_v57 = vmul.f32 %v4699_v32, %v2134_v44  ;;  %v2150_v48 = vmul.f32 %v4705_v54, %v2134_v44  ;;  %v2135_v24 = vperm.slane %v2127_v58, 0  ;;  %v4792_v58 = vld [vmem:[%s5272_s2 + $0x60] sm:$0xff] }
0x160a   :  { %v2152_v2 = vmul.f32 %v4714_v46, %v2134_v44  ;;  %v2136_v28 = vperm.slane %v2128_v49, 0  ;;  %v2137_v38 = vperm.slane %v2129_v31, 0  ;;  %v2130_v44 = vrot.slane %v4686_v51, 4 }
0x160b   :  { %v2191_v23 = vsel %vm162_vm1, %v2153_v43, 0.0  ;;  %v2185_v19 = vsel %vm162_vm1, %v2151_v57, 0.0  ;;  %v2182_v59 = vsel %vm162_vm1, %v2150_v48, 0.0  ;;  %v2154_v35 = vmul.f32 %v4720_v50, %v2135_v24 }
0x160c   :  { %2192 = vadd.xlane.f32.xlu1 %v2191_v23  ;;  %2186 = vadd.xlane.f32.xlu0 %v2185_v19  ;;  %v2155_v55 = vmul.f32 %v4727_v37, %v2135_v24  ;;  %v2188_v25 = vsel %vm162_vm1, %v2152_v2, 0.0  ;;  %v2157_v0 = vmul.f32 %v4736_v41, %v2135_v24  ;;  %v2158_v1 = vmul.f32 %v4742_v56, %v2136_v28  ;;  %v4807_v2 = vld [vmem:[%s5272_s2 + $0x88] sm:$0xff] }
0x160d   :  { %2183 = vadd.xlane.f32.xlu2 %v2182_v59  ;;  %v2194_v29 = vsel %vm162_vm1, %v2154_v35, 0.0  ;;  %v2156_v3 = vmul.f32 %v4748_v62, %v2135_v24  ;;  %v2160_v7 = vmul.f32 %v4757_v20, %v2136_v28  ;;  %v2161_v61 = vmul.f32 %v4763_v17, %v2136_v28  ;;  %v4801_v59 = vld [vmem:[%s5272_s2 + $0x80] sm:$0xff] }
0x160e   :  { %v2197_v36 = vsel %vm162_vm1, %v2155_v55, 0.0  ;;  %v2203_v52 = vsel %vm162_vm1, %v2157_v0, 0.0  ;;  %v2206_v18 = vsel %vm162_vm1, %v2158_v1, 0.0  ;;  %v2159_v15 = vmul.f32 %v4770_v4, %v2136_v28  ;;  %v4814_v55 = vld [vmem:[%s5272_s2 + $0x78] sm:$0xff] }
0x160f   :  { %v2200_v16 = vsel %vm162_vm1, %v2156_v3, 0.0  ;;  %v2212_v22 = vsel %vm162_vm1, %v2160_v7, 0.0  ;;  %v2215_v21 = vsel %vm162_vm1, %v2161_v61, 0.0  ;;  %v2163_v40 = vmul.f32 %v4779_v45, %v2137_v38  ;;  %v4823_v1 = vld [vmem:[%s5272_s2 + $0x98] sm:$0xff] }
0x1610   :  { %v2209_v9 = vsel %vm162_vm1, %v2159_v15, 0.0  ;;  %v2164_v47 = vmul.f32 %v4785_v14, %v2137_v38  ;;  %v2162_v43 = vmul.f32 %v4792_v58, %v2137_v38  ;;  %v2138_v23 = vperm.slane %v2130_v44, 0  ;;  %5448 = vst [vmem:[#allocation8_spill] sm:$0xff] %v4823_v1 }
0x1611   :  { %v2221_v57 = vsel %vm162_vm1, %v2163_v40, 0.0  ;;  %v2131_v49 = vrot.slane %v4686_v51, 5  ;;  %v2132_v40 = vrot.slane %v4686_v51, 6 }
0x1612   :  { %v2224_v48 = vsel %vm162_vm1, %v2164_v47, 0.0  ;;  %v2218_v19 = vsel %vm162_vm1, %v2162_v43, 0.0  ;;  %v2166_v24 = vmul.f32 %v4801_v59, %v2138_v23  ;;  %v2167_v35 = vmul.f32 %v4807_v2, %v2138_v23  ;;  %v4857_v47 = vld [vmem:[%s5272_s2 + $0xa8] sm:$0xff] }
0x1613   :  { %v2169_v3 = vmul.f32 %v4823_v1, %v2138_v23  ;;  %5453 = vst [vmem:[#allocation15_spill] sm:$0xff] %v4857_v47 }
0x1614   :  { %2189 = vadd.xlane.f32.xlu0 %v2188_v25  ;;  %2195 = vadd.xlane.f32.xlu1 %v2194_v29  ;;  %v2165_v25 = vmul.f32 %v4814_v55, %v2137_v38  ;;  %v2230_v29 = vsel %vm162_vm1, %v2166_v24, 0.0  ;;  %v2233_v28 = vsel %vm162_vm1, %v2167_v35, 0.0  ;;  %v4850_v38 = vld [vmem:[%s5272_s2 + $0xb8] sm:$0xff]  ;;  %v4872_v35 = vld [vmem:[%s5272_s2 + $0xd0] sm:$0xff] }
0x1615   :  { %2198 = vadd.xlane.f32.xlu2 %v2197_v36  ;;  %v2139_v36 = vperm.slane %v2131_v49, 0  ;;  %v2239_v61 = vsel %vm162_vm1, %v2169_v3, 0.0  ;;  %5452 = vst [vmem:[#allocation10_spill] sm:$0xff] %v4850_v38 }
0x1616   :  { %v2227_v0 = vsel %vm162_vm1, %v2165_v25, 0.0  ;;  %5455 = vst [vmem:[#allocation13_spill] sm:$0xff] %v4872_v35  ;;  %v2133_v25 = vrot.slane %v4686_v51, 7 }
0x1617   :  { %v2171_v44 = vmul.f32 %v4857_v47, %v2139_v36 }
0x1618   :  { %v2141_v3 = vperm.slane %v2133_v25, 0 }
0x161c   :  { %2204 = vadd.xlane.f32.xlu0 %v2203_v52  ;;  %2207 = vadd.xlane.f32.xlu1 %v2206_v18  ;;  %v4829_v52 = vld [vmem:[%s5272_s2 + $0xa0] sm:$0xff] }
0x161d   :  { %2201 = vadd.xlane.f32.xlu2 %v2200_v16  ;;  %5449 = vst [vmem:[#allocation7_spill] sm:$0xff] %v4829_v52  ;;  %v2170_v18 = vmul.f32 %v4829_v52, %v2139_v36  ;;  %v4835_v16 = vld [vmem:[%s5272_s2 + $0x90] sm:$0xff] }
0x161e   :  { %5450 = vst [vmem:[#allocation12_spill] sm:$0xff] %v4835_v16  ;;  %v2168_v7 = vmul.f32 %v4835_v16, %v2138_v23  ;;  %v2245_v23 = vsel %vm162_vm1, %v2171_v44, 0.0 }
0x161f   :  { %v2242_v31 = vsel %vm162_vm1, %v2170_v18, 0.0 }
0x1620   :  { %v2236_v15 = vsel %vm162_vm1, %v2168_v7, 0.0  ;;  %v4888_v7 = vld [vmem:[%s5272_s2 + $0xe0] sm:$0xff] }
0x1621   :  { %5457 = vst [vmem:[#allocation17_spill] sm:$0xff] %v4888_v7 }
0x1624   :  { %2213 = vadd.xlane.f32.xlu0 %v2212_v22  ;;  %2216 = vadd.xlane.f32.xlu1 %v2215_v21  ;;  %v4844_v22 = vld [vmem:[%s5272_s2 + $0xb0] sm:$0xff] }
0x1625   :  { %2210 = vadd.xlane.f32.xlu2 %v2209_v9  ;;  %5451 = vst [vmem:[#allocation11_spill] sm:$0xff] %v4844_v22  ;;  %v2172_v21 = vmul.f32 %v4844_v22, %v2139_v36  ;;  %v2173_v9 = vmul.f32 %v4850_v38, %v2139_v36 }
0x1627   :  { %v2248_v43 = vsel %vm162_vm1, %v2172_v21, 0.0  ;;  %v4900_v21 = vld [vmem:[%s5272_s2 + $0xd8] sm:$0xff] }
0x1628   :  { %5459 = vst [vmem:[#allocation21_spill] sm:$0xff] %v4900_v21 }
0x162c   :  { %2222 = vadd.xlane.f32.xlu0 %v2221_v57  ;;  %2225 = vadd.xlane.f32.xlu1 %v2224_v48  ;;  %v2251_v57 = vsel %vm162_vm1, %v2173_v9, 0.0  ;;  %v2140_v48 = vperm.slane %v2132_v40, 0 }
0x162d   :  { %2219 = vadd.xlane.f32.xlu2 %v2218_v19  ;;  %v4866_v19 = vld [vmem:[%s5272_s2 + $0xc8] sm:$0xff] }
0x162e   :  { %5454 = vst [vmem:[#allocation14_spill] sm:$0xff] %v4866_v19  ;;  %v2175_v24 = vmul.f32 %v4866_v19, %v2140_v48  ;;  %v2176_v49 = vmul.f32 %v4872_v35, %v2140_v48  ;;  %v2177_v9 = vmul.f32 %v4900_v21, %v2140_v48 }
0x1630   :  { %v2257_v36 = vsel %vm162_vm1, %v2175_v24, 0.0 }
0x1634   :  { %2231 = vadd.xlane.f32.xlu0 %v2230_v29  ;;  %2234 = vadd.xlane.f32.xlu1 %v2233_v28  ;;  %v4879_v29 = vld [vmem:[%s5272_s2 + $0xc0] sm:$0xff] }
0x1635   :  { %2228 = vadd.xlane.f32.xlu2 %v2227_v0  ;;  %5456 = vst [vmem:[#allocation18_spill] sm:$0xff] %v4879_v29  ;;  %v2174_v28 = vmul.f32 %v4879_v29, %v2140_v48  ;;  %v2260_v0 = vsel %vm162_vm1, %v2176_v49, 0.0  ;;  %v4915_v48 = vld [vmem:[%s5272_s2 + $0xf0] sm:$0xff] }
0x1636   :  { %5461 = vst [vmem:[#allocation19_spill] sm:$0xff] %v4915_v48  ;;  %v2180_v24 = vmul.f32 %v4915_v48, %v2141_v3 }
0x1637   :  { %v2254_v18 = vsel %vm162_vm1, %v2174_v28, 0.0 }
0x1638   :  { %v2272_v25 = vsel %vm162_vm1, %v2180_v24, 0.0 }
0x163c   :  { %2240 = vadd.xlane.f32.xlu0 %v2239_v61  ;;  %2243 = vadd.xlane.f32.xlu1 %v2242_v31  ;;  %v2178_v61 = vmul.f32 %v4888_v7, %v2141_v3  ;;  %v4894_v31 = vld [vmem:[%s5272_s2 + $0xe8] sm:$0xff]  ;;  %v4937_v7 = vpop.f32.mrf.mxu3 }
0x163d   :  { %2237 = vadd.xlane.f32.xlu2 %v2236_v15  ;;  %5458 = vst [vmem:[#allocation16_spill] sm:$0xff] %v4894_v31  ;;  %v2179_v15 = vmul.f32 %v4894_v31, %v2141_v3 }
0x163e   :  { %v2266_v40 = vsel %vm162_vm1, %v2178_v61, 0.0 }
0x163f   :  { %v2269_v44 = vsel %vm162_vm1, %v2179_v15, 0.0 }
0x1644   :  { %2249 = vadd.xlane.f32.xlu0 %v2248_v43  ;;  %2252 = vadd.xlane.f32.xlu1 %v2251_v57  ;;  %v2263_v43 = vsel %vm162_vm1, %v2177_v9, 0.0  ;;  %v4909_v57 = vld [vmem:[%s5272_s2 + $0xf8] sm:$0xff] }
0x1645   :  { %2246 = vadd.xlane.f32.xlu2 %v2245_v23  ;;  %5460 = vst [vmem:[#allocation20_spill] sm:$0xff] %v4909_v57  ;;  %v2181_v23 = vmul.f32 %v4909_v57, %v2141_v3 }
0x1647   :  { %v2275_v49 = vsel %vm162_vm1, %v2181_v23, 0.0 }
0x164c   :  { %2258 = vadd.xlane.f32.xlu0 %v2257_v36  ;;  %2261 = vadd.xlane.f32.xlu1 %v2260_v0 }
0x164d   :  { %2255 = vadd.xlane.f32.xlu2 %v2254_v18 }
0x1654   :  { %2267 = vadd.xlane.f32.xlu0 %v2266_v40  ;;  %2270 = vadd.xlane.f32.xlu1 %v2269_v44 }
0x1655   :  { %2264 = vadd.xlane.f32.xlu2 %v2263_v43 }
0x165c   :  { %2276 = vadd.xlane.f32.xlu0 %v2275_v49 }
0x165d   :  { %2273 = vadd.xlane.f32.xlu2 %v2272_v25 }
0x167f   :  { %v2193_v28 = vpop.xlane.xlu1 %2192  ;;  %v2187_v36 = vpop.xlane.xlu0 %2186 }
0x1680   :  { %v2184_v0 = vpop.xlane.xlu2 %2183 }
0x1681   :  { %v2278_v18 = vpack.c.bf16 %v2187_v36, %v2184_v0 }
0x1683   :  { %v2310_v61 = vunpack.c.l.b16 %v2278_v18  ;;  %v2311_v15 = vunpack.c.h.b16 %v2278_v18 }
0x1685   :  { %v2342_v51 = vperm.slane %v2310_v61, %v3689_v33  ;;  %v2343_v3 = vperm.slane %v2311_v15, %v3709_v10 }
0x1687   :  { %v2190_v9 = vpop.xlane.xlu0 %2189  ;;  %v2196_v40 = vpop.xlane.xlu1 %2195  ;;  %v2344_v42 = vsel %vm395_vm2, %v2343_v3, %v2342_v51 }
0x1688   :  { %v2279_v44 = vpack.c.bf16 %v2193_v28, %v2190_v9  ;;  %v2199_v43 = vpop.xlane.xlu2 %2198 }
0x1689   :  { %v2280_v49 = vpack.c.bf16 %v2199_v43, %v2196_v40 }
0x168a   :  { %v2312_v27 = vunpack.c.l.b16 %v2279_v44  ;;  %v2313_v23 = vunpack.c.h.b16 %v2279_v44 }
0x168b   :  { %v2314_v0 = vunpack.c.l.b16 %v2280_v49  ;;  %v2315_v18 = vunpack.c.h.b16 %v2280_v49 }
0x168c   :  { %v2345_v24 = vperm.slane %v2312_v27, %v3713_v63  ;;  %v2347_v25 = vperm.slane %v2313_v23, %v3724_v26 }
0x168d   :  { %v2349_v15 = vperm.slane %v2314_v0, %v3689_v33  ;;  %v2350_v40 = vperm.slane %v2315_v18, %v3709_v10 }
0x168e   :  { %v2346_v36 = vsel %vm399_vm3, %v2345_v24, %v2344_v42 }
0x168f   :  { %v2348_v28 = vsel %vm403_vm4, %v2347_v25, %v2346_v36  ;;  %v2205_v9 = vpop.xlane.xlu0 %2204  ;;  %v2208_v12 = vpop.xlane.xlu1 %2207  ;;  %v2351_v42 = vsel %vm395_vm2, %v2350_v40, %v2349_v15 }
0x1690   :  { %v2202_v61 = vpop.xlane.xlu2 %2201 }
0x1691   :  { %v2281_v30 = vpack.c.bf16 %v2205_v9, %v2202_v61 }
0x1693   :  { %v2316_v44 = vunpack.c.l.b16 %v2281_v30  ;;  %v2317_v27 = vunpack.c.h.b16 %v2281_v30 }
0x1695   :  { %v2352_v43 = vperm.slane %v2316_v44, %v3713_v63  ;;  %v2354_v51 = vperm.slane %v2317_v27, %v3724_v26 }
0x1697   :  { %v2353_v3 = vsel %vm399_vm3, %v2352_v43, %v2351_v42  ;;  %v2214_v23 = vpop.xlane.xlu0 %2213  ;;  %v2217_v49 = vpop.xlane.xlu1 %2216 }
0x1698   :  { %v2355_v24 = vsel %vm403_vm4, %v2354_v51, %v2353_v3  ;;  %v2211_v25 = vpop.xlane.xlu2 %2210  ;;  %v2283_v48 = vpack.c.bf16 %v2217_v49, %v2214_v23 }
0x1699   :  { %v4935_v36 = vsel %vm454_vm5, %v2355_v24, %v2348_v28  ;;  %v2282_v42 = vpack.c.bf16 %v2211_v25, %v2208_v12 }
0x169a   :  { %v2320_v21 = vunpack.c.l.b16 %v2283_v48  ;;  %v2321_v52 = vunpack.c.h.b16 %v2283_v48 }
0x169b   :  { %v2318_v51 = vunpack.c.l.b16 %v2282_v42  ;;  %v2319_v3 = vunpack.c.h.b16 %v2282_v42  ;;  %v2433_v42 = vpop.f32.mrf.mxu3 }
0x169c   :  { %v2359_v23 = vperm.slane %v2320_v21, %v3713_v63 }
0x169d   :  { %v2356_v29 = vperm.slane %v2318_v51, %v3689_v33  ;;  %v2357_v22 = vperm.slane %v2319_v3, %v3709_v10 }
0x169f   :  { %v2223_v0 = vpop.xlane.xlu0 %2222  ;;  %v2226_v18 = vpop.xlane.xlu1 %2225 }
0x16a0   :  { %v2220_v9 = vpop.xlane.xlu2 %2219 }
0x16a1   :  { %v2284_v28 = vpack.c.bf16 %v2223_v0, %v2220_v9  ;;  %v2358_v0 = vsel %vm395_vm2, %v2357_v22, %v2356_v29 }
0x16a2   :  { %v2360_v21 = vsel %vm399_vm3, %v2359_v23, %v2358_v0 }
0x16a3   :  { %v2322_v38 = vunpack.c.l.b16 %v2284_v28  ;;  %v2323_v47 = vunpack.c.h.b16 %v2284_v28  ;;  %v2361_v28 = vperm.slane %v2321_v52, %v3724_v26 }
0x16a7   :  { %v2232_v30 = vpop.xlane.xlu0 %2231  ;;  %v2235_v61 = vpop.xlane.xlu1 %2234 }
0x16a8   :  { %v2229_v44 = vpop.xlane.xlu2 %2228  ;;  %v2286_v12 = vpack.c.bf16 %v2235_v61, %v2232_v30 }
0x16a9   :  { %v2285_v19 = vpack.c.bf16 %v2229_v44, %v2226_v18  ;;  %v2363_v18 = vperm.slane %v2322_v38, %v3689_v33  ;;  %v2364_v44 = vperm.slane %v2323_v47, %v3709_v10 }
0x16aa   :  { %v2327_v48 = vunpack.c.h.b16 %v2286_v12 }
0x16ab   :  { %v2324_v49 = vunpack.c.l.b16 %v2285_v19  ;;  %v2365_v47 = vsel %vm395_vm2, %v2364_v44, %v2363_v18 }
0x16af   :  { %v2241_v6 = vpop.xlane.xlu0 %2240  ;;  %v2244_v27 = vpop.xlane.xlu1 %2243 }
0x16b0   :  { %v2238_v57 = vpop.xlane.xlu2 %2237 }
0x16b1   :  { %v2287_v25 = vpack.c.bf16 %v2241_v6, %v2238_v57  ;;  %v2325_v6 = vunpack.c.h.b16 %v2285_v19  ;;  %v2366_v57 = vperm.slane %v2324_v49, %v3713_v63 }
0x16b3   :  { %v2328_v22 = vunpack.c.l.b16 %v2287_v25  ;;  %v2329_v19 = vunpack.c.h.b16 %v2287_v25  ;;  %v2367_v49 = vsel %vm399_vm3, %v2366_v57, %v2365_v47  ;;  %v2368_v42 = vperm.slane %v2325_v6, %v3724_v26 }
0x16b5   :  { %v2369_v57 = vsel %vm403_vm4, %v2368_v42, %v2367_v49 }
0x16b7   :  { %v2250_v15 = vpop.xlane.xlu0 %2249  ;;  %v2253_v40 = vpop.xlane.xlu1 %2252 }
0x16b8   :  { %v2247_v43 = vpop.xlane.xlu2 %2246  ;;  %v2289_v9 = vpack.c.bf16 %v2253_v40, %v2250_v15 }
0x16b9   :  { %v2288_v1 = vpack.c.bf16 %v2247_v43, %v2244_v27  ;;  %v2326_v27 = vunpack.c.l.b16 %v2286_v12  ;;  %v2371_v12 = vperm.slane %v2327_v48, %v3709_v10 }
0x16bb   :  { %v2330_v51 = vunpack.c.l.b16 %v2288_v1  ;;  %v2331_v3 = vunpack.c.h.b16 %v2288_v1 }
0x16bd   :  { %v2377_v1 = vperm.slane %v2330_v51, %v3689_v33  ;;  %v2378_v52 = vperm.slane %v2331_v3, %v3709_v10 }
0x16bf   :  { %v2259_v24 = vpop.xlane.xlu0 %2258  ;;  %v2262_v31 = vpop.xlane.xlu1 %2261  ;;  %v2379_v3 = vsel %vm395_vm2, %v2378_v52, %v2377_v1 }
0x16c0   :  { %v2256_v35 = vpop.xlane.xlu2 %2255 }
0x16c1   :  { %v2290_v16 = vpack.c.bf16 %v2259_v24, %v2256_v35  ;;  %v2332_v35 = vunpack.c.l.b16 %v2289_v9  ;;  %v2370_v24 = vperm.slane %v2326_v27, %v3689_v33 }
0x16c3   :  { %v2334_v15 = vunpack.c.l.b16 %v2290_v16  ;;  %v2335_v38 = vunpack.c.h.b16 %v2290_v16  ;;  %v2373_v16 = vperm.slane %v2328_v22, %v3713_v63  ;;  %v2380_v0 = vperm.slane %v2332_v35, %v3713_v63 }
0x16c5   :  { %v2384_v18 = vperm.slane %v2334_v15, %v3689_v33  ;;  %v2385_v44 = vperm.slane %v2335_v38, %v3709_v10  ;;  %v2381_v35 = vsel %vm399_vm3, %v2380_v0, %v2379_v3 }
0x16c7   :  { %v2268_v30 = vpop.xlane.xlu0 %2267  ;;  %v2271_v61 = vpop.xlane.xlu1 %2270  ;;  %v2386_v15 = vsel %vm395_vm2, %v2385_v44, %v2384_v18 }
0x16c8   :  { %v2265_v29 = vpop.xlane.xlu2 %2264  ;;  %v2292_v43 = vpack.c.bf16 %v2271_v61, %v2268_v30  ;;  %v2372_v30 = vsel %vm395_vm2, %v2371_v12, %v2370_v24  ;;  %v2375_v61 = vperm.slane %v2329_v19, %v3724_v26 }
0x16c9   :  { %v2291_v40 = vpack.c.bf16 %v2265_v29, %v2262_v31  ;;  %v2333_v31 = vunpack.c.h.b16 %v2289_v9  ;;  %v2362_v9 = vsel %vm403_vm4, %v2361_v28, %v2360_v21  ;;  %v2374_v22 = vsel %vm399_vm3, %v2373_v16, %v2372_v30 }
0x16ca   :  { %v2338_v25 = vunpack.c.l.b16 %v2292_v43  ;;  %v2339_v48 = vunpack.c.h.b16 %v2292_v43  ;;  %v2376_v21 = vsel %vm403_vm4, %v2375_v61, %v2374_v22  ;;  %v2399_v12 = vsel %vm456_vm6, %v2362_v9, %v4935_v36 }
0x16cb   :  { %v2336_v23 = vunpack.c.l.b16 %v2291_v40  ;;  %v2337_v51 = vunpack.c.h.b16 %v2291_v40  ;;  %v2382_v47 = vperm.slane %v2333_v31, %v3724_v26 }
0x16cc   :  { %v2391_v52 = vperm.slane %v2338_v25, %v3689_v33  ;;  %v2392_v28 = vperm.slane %v2339_v48, %v3709_v10 }
0x16cd   :  { %v2387_v27 = vperm.slane %v2336_v23, %v3713_v63  ;;  %v2389_v38 = vperm.slane %v2337_v51, %v3724_v26  ;;  %v2383_v19 = vsel %vm403_vm4, %v2382_v47, %v2381_v35  ;;  %v2400_v23 = vsel %vm458_vm7, %v2369_v57, %v2399_v12  ;;  %v3324_v57 = vld [vmem:[%s5277_s9 + $0x8] sm:$0xff] }
0x16ce   :  { %v2401_v31 = vsel %vm460_vm8, %v2376_v21, %v2400_v23  ;;  %v2393_v0 = vsel %vm395_vm2, %v2392_v28, %v2391_v52 }
0x16cf   :  { %v2277_v6 = vpop.xlane.xlu0 %2276  ;;  %v2388_v1 = vsel %vm399_vm3, %v2387_v27, %v2386_v15  ;;  %v2402_v18 = vsel %vm462_vm9, %v2383_v19, %v2401_v31  ;;  %v3125_v31 = vld [vmem:[%s5270_s0 + $0x14] sm:$0xf] }
0x16d0   :  { %v2274_v29 = vpop.xlane.xlu2 %2273  ;;  %v2390_v49 = vsel %vm403_vm4, %v2389_v38, %v2388_v1  ;;  %3127 = vmatmul.msk.bf16.vlgmr.msrb.gmra.mxu0 %vm115_vm0, %v3125_v31 }
0x16d1   :  { %v2293_v40 = vpack.c.bf16 %v2277_v6, %v2274_v29  ;;  %v2403_v36 = vsel %vm464_vm10, %v2390_v49, %v2402_v18 }
0x16d3   :  { %v2340_v43 = vunpack.c.l.b16 %v2293_v40  ;;  %v2341_v24 = vunpack.c.h.b16 %v2293_v40 }
0x16d5   :  { %v2394_v42 = vperm.slane %v2340_v43, %v3713_v63  ;;  %v2396_v16 = vperm.slane %v2341_v24, %v3724_v26 }
0x16d7   :  { %v2395_v44 = vsel %vm399_vm3, %v2394_v42, %v2393_v0 }
0x16d8   :  { %v2397_v51 = vsel %vm403_vm4, %v2396_v16, %v2395_v44 }
0x16d9   :  { %v2404_v3 = vsel %vm466_vm11, %v2397_v51, %v2403_v36 }
0x16da   :  { %v2405_v27 = vpack.c.b16 %v2404_v3, %v2404_v3 }
0x16dc   :  { %3118 = vmatmul.msk.bf16.vlgmr.msrb.gmra.mxu2 %vm115_vm0, %v2405_v27 }
0x16dd   :  { %2895 = vmatpush.bf16.msrb.mxu2 %v4624_v39  ;;  %v3325_v39 = vld [vmem:[%s5277_s9] sm:$0xff] }
0x16e1   :  { %2896 = vmatpush.bf16.msrb.mxu2 %v4630_v60 }
0x174d   :  { %v2577_v27 = vpop.f32.mrf.mxu0 }
0x175f   :  { %v2418_v25 = vpop.f32.mrf.mxu2 }
0x1760   :  { %v2432_v48 = vadd.f32 %v4937_v7, %v2418_v25  ;;  %v2579_v25 = vpop.f32.mrf.mxu0 }
0x1762   :  { %v2435_v30 = vadd.f32 %v2432_v48, %v3823_v5 }
0x1764   :  { %v2436_v61 = vmax.f32 %v2435_v30, 0.0 }
0x1766   :  { %v2437_v6 = vpack.c.bf16 %v2436_v61, %v2436_v61 }
0x1767   :  { %v2420_v9 = vpop.f32.mrf.mxu2 }
0x1768   :  { %3121 = vmatmul.msk.bf16.vlgmr.msra.gmra.mxu1 %vm115_vm0, %v2437_v6 }
0x1769   :  { %2986 = vmatpush.bf16.msra.mxu1 %v3324_v57 }
0x176d   :  { %2987 = vmatpush.bf16.msra.mxu1 %v3325_v39 }
0x17e5   :  { %v2463_v60 = vpop.f32.mrf.mxu1 }
0x17e6   :  { %v2464_v7 = vadd.f32 %v2463_v60, %v4683_v11 }
0x17e8   :  { %v2467_v22 = vadd.f32 %v2464_v7, %v3828_v34 }
0x17ea   :  { %2488 = vrot.lane.b32.xlu1 %v2467_v22, %s3327_s30  ;;  %v3122_v35 = vmul.f32 -1.442695, %v2467_v22 }
0x17ec   :  { %3198 = vpow2.f32 %v3122_v35 }
0x17ed   :  { %v2465_v29 = vpop.f32.mrf.mxu1 }
0x17f2   :  { %v3199_v15 = vpop.eup %3198 }
0x17f3   :  { %v2471_v38 = vadd.f32 1.0, %v3199_v15 }
0x17f5   :  { %3200 = vrcp.f32 %v2471_v38  ;;  %v2483_v21 = vand.u32 2147483648, %v2471_v38  ;;  %vm2477_vm13 = vweird.f32 %v2471_v38  ;;  %v2481_v43 = vand.u32 2147483647, %v2471_v38 }
0x17f7   :  { %v2484_v24 = vor.u32 1.1754944e-38, %v2483_v21  ;;  %vm2482_vm15 = vcmp.eq.f32.partialorder %v2481_v43, 8.507059e+37 }
0x17fb   :  { %v3201_v40 = vpop.eup %3200 }
0x17fc   :  { %v2473_v47 = vmul.f32 %v3201_v40, %v2471_v38  ;;  %vm2478_vm12 = vweird.f32 %v3201_v40 }
0x17fd   :  { %vm2479_vm14 = vmor %vm2477_vm13, %vm2478_vm12 }
0x17fe   :  { %v2474_v1 = vsub.f32 1.0, %v2473_v47 }
0x1800   :  { %v2475_v52 = vmul.f32 %v3201_v40, %v2474_v1 }
0x1802   :  { %v2476_v28 = vadd.f32 %v3201_v40, %v2475_v52 }
0x1804   :  { %v2480_v11 = vsel %vm2479_vm14, %v3201_v40, %v2476_v28 }
0x1805   :  { %v2485_v19 = vsel %vm2482_vm15, %v2484_v24, %v2480_v11 }
0x1806   :  { %v2498_v0 = vsub.f32 1.0, %v2485_v19  ;;  %v2504_v44 = vmul.f32 %v2485_v19, %v4654_v13 }
0x185c   :  { %v2489_v12 = vpop.permute.xlu1 %2488 }
0x185d   :  { %v2491_v23 = vmul.f32 %v2489_v12, %v2485_v19 }
0x185f   :  { %2493 = vrot.lane.b32.xlu2 %v2491_v23, %s3328_s12 }
0x18b9   :  { %v2494_v49 = vpop.permute.xlu2 %2493 }
0x18ba   :  { %v2496_v42 = vadd.f32 %v2494_v49, %v2467_v22 }
0x18bc   :  { %3202 = vtanh.f32 %v2496_v42 }
0x18c2   :  { %v3203_v16 = vpop.eup %3202 }
0x18c3   :  { %2500 = vrot.lane.b32.xlu0 %v3203_v16, %s3329_s13 }
0x1935   :  { %v2501_v18 = vpop.permute.xlu0 %2500 }
0x1936   :  { %v2503_v36 = vmul.f32 %v2501_v18, %v2498_v0 }
0x1938   :  { %v5010_v51 = vadd.f32 %v2504_v44, %v2503_v36 }
0x193a   :  { %v2506_v3 = vpack.c.bf16 %v5010_v51, %v5010_v51 }
0x193c   :  { %2508 = vrot.lane.b32.xlu0 %v2506_v3, %s3329_s13 }
0x19ae   :  { %v2509_v48 = vpop.permute.xlu0 %2508 }
0x19af   :  { %3123 = vmatmul.msk.bf16.vlgmr.msra.gmra.mxu2 %vm115_vm0, %v2509_v48  ;;  %3126 = vmatmul.msk.bf16.vlgmr.msra.gmra.mxu3 %vm115_vm0, %v2509_v48 }
0x19bf   :  { %3130 = vmatmul.msk.bf16.vlgmr.msrb.gmra.mxu3 %vm115_vm0, %v2509_v48  ;;  %3129 = vmatmul.msk.bf16.vlgmr.msrb.gmra.mxu2 %vm115_vm0, %v3125_v31 }
0x1a32   :  { %v5019_v30 = vpop.f32.mrf.mxu2  ;;  %v2561_v61 = vpop.f32.mrf.mxu3 }
0x1a33   :  { %v2578_v6 = vadd.f32 %v2577_v27, %v2561_v61 }
0x1a35   :  { %v2581_v9 = vadd.f32 %v2578_v6, %v3440_v8 }
0x1a37   :  { %v2582_v57 = vsel %vm162_vm1, %v2581_v9, -inf }
0x1a38   :  { %2583 = vmax.xlane.f32.xlu2 %v2582_v57 }
0x1a3a   :  { %v2524_v39 = vpop.f32.mrf.mxu2  ;;  %v2563_v60 = vpop.f32.mrf.mxu3 }
0x1a42   :  { %v5023_v7 = vpop.f32.mrf.mxu3 }
0x1a4a   :  { %v2916_v22 = vpop.f32.mrf.mxu3 }
0x1aab   :  { %v2584_v29 = vpop.xlane.xlu2 %2583 }
0x1aac   :  { %v2585_v35 = vsub.f32 %v2581_v9, %v2584_v29 }
0x1aae   :  { %v2586_v15 = vmul.f32 1.442695, %v2585_v35 }
0x1ab0   :  { %3204 = vpow2.f32 %v2586_v15 }
0x1ab6   :  { %v3205_v38 = vpop.eup %3204 }
0x1ab7   :  { %v2588_v40 = vsel %vm162_vm1, %v3205_v38, 0.0 }
0x1ab8   :  { %2589 = vadd.xlane.f32.xlu1 %v2588_v40  ;;  %v5462_v40 = vld [vmem:[#allocation12_spill] sm:$0xff] }
0x1b2b   :  { %v2590_v47 = vpop.xlane.xlu1 %2589 }
0x1b2c   :  { %3206 = vrcp.f32 %v2590_v47 }
0x1b32   :  { %v3207_v1 = vpop.eup %3206 }
0x1b33   :  { %v5026_v8 = vmul.f32 %v3207_v1, %v3205_v38  ;;  %v5463_v1 = vld [vmem:[#allocation7_spill] sm:$0xff] }
0x1b35   :  { %v2601_v52 = vperm.slane %v5026_v8, 0  ;;  %v2594_v28 = vrot.slane %v5026_v8, 1  ;;  %v2596_v25 = vrot.slane %v5026_v8, 3 }
0x1b37   :  { %v2620_v21 = vmul.f32 %v4693_v53, %v2601_v52  ;;  %v2618_v43 = vmul.f32 %v4699_v32, %v2601_v52  ;;  %v2617_v11 = vmul.f32 %v4705_v54, %v2601_v52  ;;  %v2602_v23 = vperm.slane %v2594_v28, 0 }
0x1b38   :  { %v2595_v53 = vrot.slane %v5026_v8, 2  ;;  %v2619_v32 = vmul.f32 %v4714_v46, %v2601_v52  ;;  %v2604_v48 = vperm.slane %v2596_v25, 0  ;;  %v5464_v52 = vld [vmem:[#allocation8_spill] sm:$0xff]  ;;  %v5471_v25 = vld [vmem:[#allocation21_spill] sm:$0xff] }
0x1b39   :  { %v2658_v24 = vsel %vm162_vm1, %v2620_v21, 0.0  ;;  %v2652_v12 = vsel %vm162_vm1, %v2618_v43, 0.0  ;;  %v2649_v19 = vsel %vm162_vm1, %v2617_v11, 0.0  ;;  %v2622_v49 = vmul.f32 %v4727_v37, %v2602_v23  ;;  %v5465_v43 = vld [vmem:[#allocation15_spill] sm:$0xff] }
0x1b3a   :  { %2659 = vadd.xlane.f32.xlu1 %v2658_v24  ;;  %2653 = vadd.xlane.f32.xlu2 %v2652_v12  ;;  %v2621_v42 = vmul.f32 %v4720_v50, %v2602_v23  ;;  %v2603_v31 = vperm.slane %v2595_v53, 0  ;;  %v2655_v0 = vsel %vm162_vm1, %v2619_v32, 0.0  ;;  %v2623_v18 = vmul.f32 %v4748_v62, %v2602_v23  ;;  %v5466_v24 = vld [vmem:[#allocation10_spill] sm:$0xff] }
0x1b3b   :  { %2650 = vadd.xlane.f32.xlu0 %v2649_v19  ;;  %v2664_v54 = vsel %vm162_vm1, %v2622_v49, 0.0  ;;  %v2624_v50 = vmul.f32 %v4736_v41, %v2602_v23  ;;  %v2629_v6 = vmul.f32 %v4792_v58, %v2604_v48  ;;  %v2630_v9 = vmul.f32 %v4779_v45, %v2604_v48  ;;  %v5467_v23 = vld [vmem:[#allocation11_spill] sm:$0xff] }
0x1b3c   :  { %v2661_v16 = vsel %vm162_vm1, %v2621_v42, 0.0  ;;  %v2625_v37 = vmul.f32 %v4742_v56, %v2603_v31  ;;  %v2667_v44 = vsel %vm162_vm1, %v2623_v18, 0.0  ;;  %v2626_v3 = vmul.f32 %v4770_v4, %v2603_v31 }
0x1b3d   :  { %v2670_v36 = vsel %vm162_vm1, %v2624_v50, 0.0  ;;  %v2628_v27 = vmul.f32 %v4763_v17, %v2603_v31  ;;  %v2627_v62 = vmul.f32 %v4757_v20, %v2603_v31  ;;  %v2631_v4 = vmul.f32 %v4785_v14, %v2604_v48  ;;  %v5470_v50 = vld [vmem:[#allocation14_spill] sm:$0xff] }
0x1b3e   :  { %v2673_v46 = vsel %vm162_vm1, %v2625_v37, 0.0  ;;  %v2676_v56 = vsel %vm162_vm1, %v2626_v3, 0.0  ;;  %v2597_v17 = vrot.slane %v5026_v8, 4  ;;  %v2685_v20 = vsel %vm162_vm1, %v2629_v6, 0.0 }
0x1b3f   :  { %v2682_v41 = vsel %vm162_vm1, %v2628_v27, 0.0  ;;  %v2679_v61 = vsel %vm162_vm1, %v2627_v62, 0.0  ;;  %v2691_v57 = vsel %vm162_vm1, %v2631_v4, 0.0  ;;  %v2688_v60 = vsel %vm162_vm1, %v2630_v9, 0.0  ;;  %v5474_v9 = vld [vmem:[#allocation19_spill] sm:$0xff] }
0x1b40   :  { %v2605_v39 = vperm.slane %v2597_v17, 0  ;;  %v2632_v22 = vmul.f32 %v4814_v55, %v2604_v48  ;;  %v2598_v14 = vrot.slane %v5026_v8, 5  ;;  %v2599_v19 = vrot.slane %v5026_v8, 6  ;;  %v5473_v48 = vld [vmem:[#allocation17_spill] sm:$0xff] }
0x1b41   :  { %v2600_v37 = vrot.slane %v5026_v8, 7 }
0x1b42   :  { %2665 = vadd.xlane.f32.xlu2 %v2664_v54  ;;  %2662 = vadd.xlane.f32.xlu1 %v2661_v16  ;;  %v2634_v58 = vmul.f32 %v4807_v2, %v2605_v39  ;;  %v2633_v29 = vmul.f32 %v4801_v59, %v2605_v39  ;;  %v2694_v45 = vsel %vm162_vm1, %v2632_v22, 0.0  ;;  %v2606_v15 = vperm.slane %v2598_v14, 0  ;;  %v5468_v16 = vld [vmem:[#allocation18_spill] sm:$0xff] }
0x1b43   :  { %2656 = vadd.xlane.f32.xlu0 %v2655_v0  ;;  %v2635_v47 = vmul.f32 %v5462_v40, %v2605_v39  ;;  %v2636_v2 = vmul.f32 %v5464_v52, %v2605_v39  ;;  %v2607_v32 = vperm.slane %v2599_v19, 0  ;;  %v5469_v0 = vld [vmem:[#allocation13_spill] sm:$0xff]  ;;  %v2608_v3 = vperm.slane %v2600_v37, 0 }
0x1b44   :  { %v2700_v35 = vsel %vm162_vm1, %v2634_v58, 0.0  ;;  %v2697_v38 = vsel %vm162_vm1, %v2633_v29, 0.0  ;;  %v2637_v55 = vmul.f32 %v5463_v1, %v2606_v15  ;;  %v2638_v11 = vmul.f32 %v5465_v43, %v2606_v15 }
0x1b45   :  { %v2703_v28 = vsel %vm162_vm1, %v2635_v47, 0.0  ;;  %v2706_v21 = vsel %vm162_vm1, %v2636_v2, 0.0  ;;  %v2640_v12 = vmul.f32 %v5466_v24, %v2606_v15  ;;  %v2639_v49 = vmul.f32 %v5467_v23, %v2606_v15 }
0x1b46   :  { %v2709_v59 = vsel %vm162_vm1, %v2637_v55, 0.0  ;;  %v2712_v42 = vsel %vm162_vm1, %v2638_v11, 0.0  ;;  %v2641_v31 = vmul.f32 %v5468_v16, %v2607_v32  ;;  %v2643_v18 = vmul.f32 %v5469_v0, %v2607_v32 }
0x1b47   :  { %v2718_v53 = vsel %vm162_vm1, %v2640_v12, 0.0  ;;  %v2715_v54 = vsel %vm162_vm1, %v2639_v49, 0.0  ;;  %v2644_v62 = vmul.f32 %v5471_v25, %v2607_v32 }
0x1b49   :  { %v2730_v6 = vsel %vm162_vm1, %v2644_v62, 0.0 }
0x1b4a   :  { %2668 = vadd.xlane.f32.xlu2 %v2667_v44  ;;  %2674 = vadd.xlane.f32.xlu1 %v2673_v46  ;;  %v2642_v44 = vmul.f32 %v5470_v50, %v2607_v32  ;;  %v2721_v46 = vsel %vm162_vm1, %v2641_v31, 0.0 }
0x1b4b   :  { %2671 = vadd.xlane.f32.xlu0 %v2670_v36  ;;  %v2727_v36 = vsel %vm162_vm1, %v2643_v18, 0.0 }
0x1b4c   :  { %v2724_v27 = vsel %vm162_vm1, %v2642_v44, 0.0 }
0x1b52   :  { %2677 = vadd.xlane.f32.xlu2 %v2676_v56  ;;  %2683 = vadd.xlane.f32.xlu1 %v2682_v41  ;;  %v5472_v56 = vld [vmem:[#allocation16_spill] sm:$0xff] }
0x1b53   :  { %2680 = vadd.xlane.f32.xlu0 %v2679_v61  ;;  %v2646_v41 = vmul.f32 %v5472_v56, %v2608_v3  ;;  %v2645_v61 = vmul.f32 %v5473_v48, %v2608_v3 }
0x1b55   :  { %v2736_v4 = vsel %vm162_vm1, %v2646_v41, 0.0  ;;  %v2733_v17 = vsel %vm162_vm1, %v2645_v61, 0.0 }
0x1b5a   :  { %2686 = vadd.xlane.f32.xlu2 %v2685_v20  ;;  %2692 = vadd.xlane.f32.xlu1 %v2691_v57  ;;  %v2647_v20 = vmul.f32 %v5474_v9, %v2608_v3  ;;  %v5475_v57 = vld [vmem:[#allocation20_spill] sm:$0xff] }
0x1b5b   :  { %2689 = vadd.xlane.f32.xlu0 %v2688_v60  ;;  %v2648_v39 = vmul.f32 %v5475_v57, %v2608_v3 }
0x1b5c   :  { %v2739_v60 = vsel %vm162_vm1, %v2647_v20, 0.0 }
0x1b5d   :  { %v2742_v22 = vsel %vm162_vm1, %v2648_v39, 0.0 }
0x1b62   :  { %2695 = vadd.xlane.f32.xlu2 %v2694_v45  ;;  %2701 = vadd.xlane.f32.xlu1 %v2700_v35 }
0x1b63   :  { %2698 = vadd.xlane.f32.xlu0 %v2697_v38 }
0x1b6a   :  { %2704 = vadd.xlane.f32.xlu2 %v2703_v28  ;;  %2710 = vadd.xlane.f32.xlu1 %v2709_v59 }
0x1b6b   :  { %2707 = vadd.xlane.f32.xlu0 %v2706_v21 }
0x1b72   :  { %2713 = vadd.xlane.f32.xlu2 %v2712_v42  ;;  %2719 = vadd.xlane.f32.xlu1 %v2718_v53 }
0x1b73   :  { %2716 = vadd.xlane.f32.xlu0 %v2715_v54 }
0x1b7a   :  { %2722 = vadd.xlane.f32.xlu2 %v2721_v46  ;;  %2728 = vadd.xlane.f32.xlu1 %v2727_v36 }
0x1b7b   :  { %2725 = vadd.xlane.f32.xlu0 %v2724_v27 }
0x1b82   :  { %2731 = vadd.xlane.f32.xlu2 %v2730_v6  ;;  %2737 = vadd.xlane.f32.xlu1 %v2736_v4 }
0x1b83   :  { %2734 = vadd.xlane.f32.xlu0 %v2733_v17 }
0x1b8a   :  { %2740 = vadd.xlane.f32.xlu2 %v2739_v60 }
0x1b8b   :  { %2743 = vadd.xlane.f32.xlu0 %v2742_v22  ;;  %v5117_v22 = vpop.f32.mrf.mxu2 }
0x1bad   :  { %v2660_v58 = vpop.xlane.xlu1 %2659  ;;  %v2654_v14 = vpop.xlane.xlu2 %2653 }
0x1bae   :  { %v2651_v29 = vpop.xlane.xlu0 %2650 }
0x1baf   :  { %v2745_v45 = vpack.c.bf16 %v2654_v14, %v2651_v29 }
0x1bb1   :  { %v2777_v35 = vunpack.c.l.b16 %v2745_v45  ;;  %v2778_v15 = vunpack.c.h.b16 %v2745_v45 }
0x1bb3   :  { %v2809_v55 = vperm.slane %v2777_v35, %v3689_v33  ;;  %v2810_v52 = vperm.slane %v2778_v15, %v3709_v10 }
0x1bb5   :  { %v2666_v38 = vpop.xlane.xlu2 %2665  ;;  %v2663_v40 = vpop.xlane.xlu1 %2662  ;;  %v2811_v11 = vsel %vm395_vm2, %v2810_v52, %v2809_v55 }
0x1bb6   :  { %v2657_v47 = vpop.xlane.xlu0 %2656  ;;  %v2747_v2 = vpack.c.bf16 %v2666_v38, %v2663_v40 }
0x1bb7   :  { %v2746_v1 = vpack.c.bf16 %v2660_v58, %v2657_v47 }
0x1bb8   :  { %v2781_v24 = vunpack.c.l.b16 %v2747_v2  ;;  %v2782_v12 = vunpack.c.h.b16 %v2747_v2 }
0x1bb9   :  { %v2779_v28 = vunpack.c.l.b16 %v2746_v1  ;;  %v2780_v59 = vunpack.c.h.b16 %v2746_v1 }
0x1bba   :  { %v2816_v54 = vperm.slane %v2781_v24, %v3689_v33  ;;  %v2817_v16 = vperm.slane %v2782_v12, %v3709_v10  ;;  %v2900_v24 = vpop.f32.mrf.mxu2 }
0x1bbb   :  { %v2812_v21 = vperm.slane %v2779_v28, %v3713_v63  ;;  %v2814_v43 = vperm.slane %v2780_v59, %v3724_v26 }
0x1bbc   :  { %v2818_v50 = vsel %vm395_vm2, %v2817_v16, %v2816_v54 }
0x1bbd   :  { %v2813_v19 = vsel %vm399_vm3, %v2812_v21, %v2811_v11  ;;  %v2669_v23 = vpop.xlane.xlu2 %2668  ;;  %v2675_v49 = vpop.xlane.xlu1 %2674 }
0x1bbe   :  { %v2815_v42 = vsel %vm403_vm4, %v2814_v43, %v2813_v19  ;;  %v2672_v53 = vpop.xlane.xlu0 %2671 }
0x1bbf   :  { %v2748_v32 = vpack.c.bf16 %v2672_v53, %v2669_v23 }
0x1bc1   :  { %v2783_v31 = vunpack.c.l.b16 %v2748_v32  ;;  %v2784_v0 = vunpack.c.h.b16 %v2748_v32 }
0x1bc3   :  { %v2819_v18 = vperm.slane %v2783_v31, %v3713_v63  ;;  %v2821_v37 = vperm.slane %v2784_v0, %v3724_v26 }
0x1bc5   :  { %v2820_v44 = vsel %vm399_vm3, %v2819_v18, %v2818_v50  ;;  %v2678_v46 = vpop.xlane.xlu2 %2677  ;;  %v2684_v36 = vpop.xlane.xlu1 %2683 }
0x1bc6   :  { %v2822_v3 = vsel %vm403_vm4, %v2821_v37, %v2820_v44  ;;  %v2681_v27 = vpop.xlane.xlu0 %2680  ;;  %v2749_v60 = vpack.c.bf16 %v2678_v46, %v2675_v49 }
0x1bc7   :  { %v5115_v25 = vsel %vm454_vm5, %v2822_v3, %v2815_v42  ;;  %v2750_v58 = vpack.c.bf16 %v2684_v36, %v2681_v27  ;;  %vm656_vm5 = vcmask 130048  }
0x1bc8   :  { %v2785_v14 = vunpack.c.l.b16 %v2749_v60  ;;  %v2786_v29 = vunpack.c.h.b16 %v2749_v60 }
0x1bc9   :  { %v2787_v47 = vunpack.c.l.b16 %v2750_v58  ;;  %v2788_v52 = vunpack.c.h.b16 %v2750_v58 }
0x1bca   :  { %v2823_v1 = vperm.slane %v2785_v14, %v3689_v33  ;;  %v2824_v55 = vperm.slane %v2786_v29, %v3709_v10 }
0x1bcb   :  { %v2826_v12 = vperm.slane %v2787_v47, %v3713_v63  ;;  %v2828_v42 = vperm.slane %v2788_v52, %v3724_v26 }
0x1bcc   :  { %v2825_v49 = vsel %vm395_vm2, %v2824_v55, %v2823_v1 }
0x1bcd   :  { %v2687_v62 = vpop.xlane.xlu2 %2686  ;;  %v2693_v56 = vpop.xlane.xlu1 %2692  ;;  %v2827_v27 = vsel %vm399_vm3, %v2826_v12, %v2825_v49 }
0x1bce   :  { %v2690_v41 = vpop.xlane.xlu0 %2689 }
0x1bcf   :  { %v2751_v45 = vpack.c.bf16 %v2690_v41, %v2687_v62 }
0x1bd1   :  { %v2789_v28 = vunpack.c.l.b16 %v2751_v45  ;;  %v2790_v59 = vunpack.c.h.b16 %v2751_v45 }
0x1bd3   :  { %v2830_v54 = vperm.slane %v2789_v28, %v3689_v33  ;;  %v2831_v16 = vperm.slane %v2790_v59, %v3709_v10  ;;  %v2829_v28 = vsel %vm403_vm4, %v2828_v42, %v2827_v27 }
0x1bd5   :  { %v2696_v48 = vpop.xlane.xlu2 %2695  ;;  %v2702_v61 = vpop.xlane.xlu1 %2701 }
0x1bd6   :  { %v2699_v6 = vpop.xlane.xlu0 %2698  ;;  %v2752_v38 = vpack.c.bf16 %v2696_v48, %v2693_v56 }
0x1bd7   :  { %v2753_v21 = vpack.c.bf16 %v2702_v61, %v2699_v6 }
0x1bd8   :  { %v2791_v43 = vunpack.c.l.b16 %v2752_v38  ;;  %v2792_v50 = vunpack.c.h.b16 %v2752_v38 }
0x1bd9   :  { %v2793_v31 = vunpack.c.l.b16 %v2753_v21  ;;  %v2794_v0 = vunpack.c.h.b16 %v2753_v21 }
0x1bda   :  { %v2833_v44 = vperm.slane %v2791_v43, %v3713_v63  ;;  %v2835_v60 = vperm.slane %v2792_v50, %v3724_v26 }
0x1bdd   :  { %v2705_v4 = vpop.xlane.xlu2 %2704  ;;  %v2711_v17 = vpop.xlane.xlu1 %2710 }
0x1bde   :  { %v2708_v9 = vpop.xlane.xlu0 %2707 }
0x1bdf   :  { %v2754_v11 = vpack.c.bf16 %v2708_v9, %v2705_v4  ;;  %v2837_v9 = vperm.slane %v2793_v31, %v3689_v33  ;;  %v2866_v31 = vsel %vm456_vm6, %v2829_v28, %v5115_v25  ;;  %vm679_vm6 = vcmask 474112  }
0x1be1   :  { %v2795_v46 = vunpack.c.l.b16 %v2754_v11 }
0x1be3   :  { %v2840_v58 = vperm.slane %v2795_v46, %v3713_v63 }
0x1be5   :  { %v2714_v20 = vpop.xlane.xlu2 %2713  ;;  %v2720_v57 = vpop.xlane.xlu1 %2719 }
0x1be6   :  { %v2717_v39 = vpop.xlane.xlu0 %2716  ;;  %v2755_v2 = vpack.c.bf16 %v2714_v20, %v2711_v17  ;;  %v2832_v17 = vsel %vm395_vm2, %v2831_v16, %v2830_v54  ;;  %v2838_v20 = vperm.slane %v2794_v0, %v3709_v10 }
0x1be7   :  { %v2756_v19 = vpack.c.bf16 %v2720_v57, %v2717_v39  ;;  %v2796_v57 = vunpack.c.h.b16 %v2754_v11  ;;  %v2834_v39 = vsel %vm399_vm3, %v2833_v44, %v2832_v17 }
0x1be8   :  { %v2797_v53 = vunpack.c.l.b16 %v2755_v2  ;;  %v2798_v32 = vunpack.c.h.b16 %v2755_v2  ;;  %v2839_v55 = vsel %vm395_vm2, %v2838_v20, %v2837_v9  ;;  %v2836_v59 = vsel %vm403_vm4, %v2835_v60, %v2834_v39 }
0x1be9   :  { %v2799_v62 = vunpack.c.l.b16 %v2756_v19  ;;  %v2800_v14 = vunpack.c.h.b16 %v2756_v19  ;;  %v2842_v52 = vperm.slane %v2796_v57, %v3724_v26  ;;  %v2841_v21 = vsel %vm399_vm3, %v2840_v58, %v2839_v55  ;;  %v3326_v55 = vld [vmem:[%s5271_s10] sm:$0xf]  ;;  %s3331_s10 = smov 48  }
0x1bea   :  { %v2844_v48 = vperm.slane %v2797_v53, %v3689_v33  ;;  %v2845_v61 = vperm.slane %v2798_v32, %v3709_v10 }
0x1beb   :  { %v2847_v29 = vperm.slane %v2799_v62, %v3713_v63  ;;  %v2843_v32 = vsel %vm403_vm4, %v2842_v52, %v2841_v21  ;;  %v5180_v52 = vperm.slane %v3326_v55, 2 }
0x1bec   :  { %v2846_v38 = vsel %vm395_vm2, %v2845_v61, %v2844_v48 }
0x1bed   :  { %v2723_v35 = vpop.xlane.xlu2 %2722  ;;  %v2729_v15 = vpop.xlane.xlu1 %2728  ;;  %v2848_v11 = vsel %vm399_vm3, %v2847_v29, %v2846_v38 }
0x1bee   :  { %v2726_v40 = vpop.xlane.xlu0 %2725 }
0x1bef   :  { %v2757_v23 = vpack.c.bf16 %v2726_v40, %v2723_v35 }
0x1bf1   :  { %v2801_v56 = vunpack.c.l.b16 %v2757_v23  ;;  %v2802_v41 = vunpack.c.h.b16 %v2757_v23  ;;  %v2849_v23 = vperm.slane %v2800_v14, %v3724_v26 }
0x1bf3   :  { %v2851_v45 = vperm.slane %v2801_v56, %v3689_v33  ;;  %v2852_v35 = vperm.slane %v2802_v41, %v3709_v10  ;;  %v2850_v0 = vsel %vm403_vm4, %v2849_v23, %v2848_v11  ;;  %v5477_v23 = vld [vmem:[#allocation23_spill] sm:$0xff] }
0x1bf5   :  { %v2732_v18 = vpop.xlane.xlu2 %2731  ;;  %v2738_v37 = vpop.xlane.xlu1 %2737  ;;  %v2853_v24 = vsel %vm395_vm2, %v2852_v35, %v2851_v45 }
0x1bf6   :  { %v2735_v36 = vpop.xlane.xlu0 %2734  ;;  %v2758_v3 = vpack.c.bf16 %v2732_v18, %v2729_v15  ;;  %v2867_v18 = vsel %vm458_vm7, %v2836_v59, %v2866_v31  ;;  %v5479_v31 = vld [vmem:[#allocation6_spill] sm:$0xff] }
0x1bf7   :  { %v2759_v4 = vpack.c.bf16 %v2738_v37, %v2735_v36 }
0x1bf8   :  { %v2803_v6 = vunpack.c.l.b16 %v2758_v3  ;;  %v2804_v15 = vunpack.c.h.b16 %v2758_v3 }
0x1bf9   :  { %v2805_v47 = vunpack.c.l.b16 %v2759_v4  ;;  %v2806_v1 = vunpack.c.h.b16 %v2759_v4 }
0x1bfa   :  { %v2854_v40 = vperm.slane %v2803_v6, %v3713_v63  ;;  %v2856_v12 = vperm.slane %v2804_v15, %v3724_v26 }
0x1bfb   :  { %v2858_v53 = vperm.slane %v2805_v47, %v3689_v33  ;;  %v2859_v42 = vperm.slane %v2806_v1, %v3709_v10  ;;  %v2868_v33 = vsel %vm460_vm8, %v2843_v32, %v2867_v18 }
0x1bfc   :  { %v2855_v49 = vsel %vm399_vm3, %v2854_v40, %v2853_v24  ;;  %v2869_v46 = vsel %vm462_vm9, %v2850_v0, %v2868_v33  ;;  %v1122_v0 = vadd.f32 %v5479_v31, %v5180_v52  ;;  %v5481_v33 = vld [vmem:[#allocation3_spill] sm:$0xff] }
0x1bfd   :  { %v2741_v2 = vpop.xlane.xlu2 %2740  ;;  %v2857_v37 = vsel %vm403_vm4, %v2856_v12, %v2855_v49  ;;  %v2860_v10 = vsel %vm395_vm2, %v2859_v42, %v2858_v53  ;;  %v5478_v49 = vld [vmem:[#allocation2_spill] sm:$0xff] }
0x1bfe   :  { %v2744_v43 = vpop.xlane.xlu0 %2743  ;;  %v2870_v25 = vsel %vm464_vm10, %v2857_v37, %v2869_v46  ;;  %v1125_v18 = vsel %vm656_vm5, %v1122_v0, -inf  ;;  %v5480_v37 = vld [vmem:[#allocation35_spill] sm:$0xff] }
0x1bff   :  { %v2760_v19 = vpack.c.bf16 %v2744_v43, %v2741_v2  ;;  %v5476_v2 = vld [vmem:[#allocation24_spill] sm:$0xff] }
0x1c00   :  { %v653_v28 = vadd.f32 %v5476_v2, %v5180_v52 }
0x1c01   :  { %v2807_v54 = vunpack.c.l.b16 %v2760_v19  ;;  %v2808_v16 = vunpack.c.h.b16 %v2760_v19 }
0x1c02   :  { %v657_v59 = vsel %vm656_vm5, %v653_v28, -inf }
0x1c03   :  { %v2861_v50 = vperm.slane %v2807_v54, %v3713_v63  ;;  %v2863_v44 = vperm.slane %v2808_v16, %v3724_v26 }
0x1c05   :  { %v2862_v36 = vsel %vm399_vm3, %v2861_v50, %v2860_v10  ;;  %v1589_v50 = vadd.f32 %v5480_v37, %v5180_v52  ;;  %v5482_v10 = vld [vmem:[#allocation4_spill] sm:$0xff] }
0x1c06   :  { %v2864_v3 = vsel %vm403_vm4, %v2863_v44, %v2862_v36  ;;  %v2056_v46 = vadd.f32 %v5482_v10, %v5180_v52 }
0x1c07   :  { %v2871_v27 = vsel %vm466_vm11, %v2864_v3, %v2870_v25  ;;  %v1592_v44 = vsel %vm656_vm5, %v1589_v50, -inf  ;;  %v5483_v3 = vld [vmem:[#allocation5_spill] sm:$0xff] }
0x1c08   :  { %v2872_v62 = vpack.c.b16 %v2871_v27, %v2871_v27  ;;  %v2059_v36 = vsel %vm656_vm5, %v2056_v46, -inf  ;;  %v5484_v27 = vld [vmem:[#allocation36_spill] sm:$0xff] }
0x1c0a   :  { %3128 = vmatmul.msk.bf16.vlgmr.msrb.gmra.mxu1 %vm115_vm0, %v2872_v62 }
0x1c87   :  { %v2885_v63 = vpop.f32.mrf.mxu1 }
0x1c88   :  { %v2899_v26 = vadd.f32 %v5117_v22, %v2885_v63 }
0x1c8a   :  { %v2902_v56 = vadd.f32 %v2899_v26, %v3823_v5 }
0x1c8c   :  { %v2903_v41 = vmax.f32 %v2902_v56, 0.0 }
0x1c8e   :  { %v2904_v48 = vpack.c.bf16 %v2903_v41, %v2903_v41 }
0x1c8f   :  { %v2887_v61 = vpop.f32.mrf.mxu1 }
0x1c90   :  { %3131 = vmatmul.msk.bf16.vlgmr.msra.gmra.mxu0 %vm115_vm0, %v2904_v48 }
0x1d0d   :  { %v2930_v6 = vpop.f32.mrf.mxu0 }
0x1d0e   :  { %v2931_v4 = vadd.f32 %v2930_v6, %v5023_v7 }
0x1d10   :  { %v2934_v17 = vadd.f32 %v2931_v4, %v3828_v34 }
0x1d12   :  { %2955 = vrot.lane.b32.xlu1 %v2934_v17, %s3327_s30  ;;  %v3132_v20 = vmul.f32 -1.442695, %v2934_v17 }
0x1d14   :  { %3208 = vpow2.f32 %v3132_v20 }
0x1d15   :  { %v2932_v9 = vpop.f32.mrf.mxu0 }
0x1d1a   :  { %v3209_v57 = vpop.eup %3208 }
0x1d1b   :  { %v2938_v39 = vadd.f32 1.0, %v3209_v57 }
0x1d1d   :  { %3210 = vrcp.f32 %v2938_v39  ;;  %v2950_v29 = vand.u32 2147483648, %v2938_v39  ;;  %vm2944_vm2 = vweird.f32 %v2938_v39  ;;  %v2948_v45 = vand.u32 2147483647, %v2938_v39 }
0x1d1f   :  { %v2951_v34 = vor.u32 1.1754944e-38, %v2950_v29  ;;  %vm2949_vm4 = vcmp.eq.f32.partialorder %v2948_v45, 8.507059e+37  ;;  %v5486_v29 = vld [vmem:[#allocation34_spill] sm:$0xff] }
0x1d23   :  { %v3211_v22 = vpop.eup %3210 }
0x1d24   :  { %v2940_v5 = vmul.f32 %v3211_v22, %v2938_v39  ;;  %vm2945_vm1 = vweird.f32 %v3211_v22 }
0x1d25   :  { %vm2946_vm3 = vmor %vm2944_vm2, %vm2945_vm1 }
0x1d26   :  { %v2941_v60 = vsub.f32 1.0, %v2940_v5 }
0x1d28   :  { %v2942_v58 = vmul.f32 %v3211_v22, %v2941_v60 }
0x1d2a   :  { %v2943_v14 = vadd.f32 %v3211_v22, %v2942_v58 }
0x1d2c   :  { %v2947_v7 = vsel %vm2946_vm3, %v3211_v22, %v2943_v14  ;;  %v5485_v14 = vld [vmem:[#allocation25_spill] sm:$0xff] }
0x1d2d   :  { %v2952_v15 = vsel %vm2949_vm4, %v2951_v34, %v2947_v7 }
0x1d2e   :  { %v2965_v21 = vsub.f32 1.0, %v2952_v15  ;;  %v2971_v11 = vmul.f32 %v2952_v15, %v5010_v51 }
0x1d84   :  { %v2956_v35 = vpop.permute.xlu1 %2955 }
0x1d85   :  { %v2958_v38 = vmul.f32 %v2956_v35, %v2952_v15 }
0x1d87   :  { %2960 = vrot.lane.b32.xlu2 %v2958_v38, %s3328_s12  ;;  %s3330_s12 = smov 112   ;;  %v2523_v38 = vadd.f32 %v5019_v30, %v5180_v52 }
0x1de1   :  { %v2961_v40 = vpop.permute.xlu2 %2960 }
0x1de2   :  { %v2963_v47 = vadd.f32 %v2961_v40, %v2934_v17  ;;  %v2526_v40 = vsel %vm656_vm5, %v2523_v38, -inf }
0x1de4   :  { %3212 = vtanh.f32 %v2963_v47 }
0x1dea   :  { %v3213_v1 = vpop.eup %3212 }
0x1deb   :  { %2967 = vrot.lane.b32.xlu0 %v3213_v1, %s3329_s13 }
0x1e15   :  { %658 = vmax.xlane.f32.xlu0 %v657_v59 }
0x1e5d   :  { %v2968_v43 = vpop.permute.xlu0 %2967 }
0x1e5e   :  { %v2970_v24 = vmul.f32 %v2968_v43, %v2965_v21 }
0x1e60   :  { %v2972_v12 = vadd.f32 %v2971_v11, %v2970_v24 }
0x1e62   :  { %v2973_v19 = vpack.c.bf16 %v2972_v12, %v2972_v12 }
0x1e64   :  { %2975 = vrot.lane.b32.xlu1 %v2973_v19, %s3329_s13 }
0x1e6c   :  { %670 = vrot.lane.b32.xlu1 %v5477_v23, %s3330_s12 }
0x1e74   :  { %673 = vrot.lane.b32.xlu1 %v5478_v49, %s3331_s10 }
0x1e88   :  { %v659_v53 = vpop.xlane.xlu0 %658 }
0x1e89   :  { %v660_v42 = vsub.f32 %v653_v28, %v659_v53 }
0x1e8b   :  { %v661_v32 = vmul.f32 1.442695, %v660_v42 }
0x1e8d   :  { %3214 = vpow2.f32 %v661_v32 }
0x1e93   :  { %v3215_v54 = vpop.eup %3214 }
0x1e94   :  { %v663_v16 = vsel %vm656_vm5, %v3215_v54, 0.0 }
0x1e95   :  { %664 = vadd.xlane.f32.xlu2 %v663_v16 }
0x1e9e   :  { %1126 = vmax.xlane.f32.xlu1 %v1125_v18 }
0x1ea6   :  { %1593 = vmax.xlane.f32.xlu1 %v1592_v44 }
0x1ead   :  { %1138 = vrot.lane.b32.xlu2 %v5481_v33, %s3330_s12 }
0x1ed6   :  { %v2976_v25 = vpop.permute.xlu1 %2975  ;;  %2060 = vmax.xlane.f32.xlu2 %v2059_v36 }
0x1ed7   :  { %3133 = vmatmul.msk.bf16.vlgmr.msra.gmra.mxu1 %vm115_vm0, %v2976_v25  ;;  %vm677_vm0 = vcmask 392192  }
0x1ede   :  { %v671_v62 = vpop.permute.xlu1 %670 }
0x1ee6   :  { %v674_v26 = vpop.permute.xlu1 %673 }
0x1eee   :  { %1608 = vrot.lane.b32.xlu2 %v5483_v3, %s3331_s10 }
0x1ef6   :  { %3006 = vrot.lane.b32.xlu2 %v2972_v12, %s3330_s12 }
0x1efe   :  { %2075 = vrot.lane.b32.xlu2 %v5484_v27, %s3331_s10 }
0x1f06   :  { %3009 = vrot.lane.b32.xlu2 %v5026_v8, %s3331_s10 }
0x1f08   :  { %v665_v63 = vpop.xlane.xlu2 %664 }
0x1f09   :  { %3216 = vlog2.f32 %v665_v63 }
0x1f0f   :  { %v3217_v56 = vpop.eup %3216 }
0x1f10   :  { %v667_v41 = vmul.f32 0.6931472, %v3217_v56  ;;  %v1139_v45 = vpop.permute.xlu2 %1138 }
0x1f11   :  { %v1127_v48 = vpop.xlane.xlu1 %1126 }
0x1f12   :  { %v668_v61 = vsub.f32 %v660_v42, %v667_v41  ;;  %v1128_v6 = vsub.f32 %v1122_v0, %v1127_v48 }
0x1f14   :  { %v676_v4 = vsel %vm656_vm5, %v668_v61, %v671_v62  ;;  %v1129_v17 = vmul.f32 1.442695, %v1128_v6 }
0x1f15   :  { %v678_v9 = vsel %vm677_vm0, %v676_v4, %v674_v26 }
0x1f16   :  { %3218 = vpow2.f32 %v1129_v17  ;;  %v680_v20 = vsel %vm679_vm6, %v678_v9, 0.0 }
0x1f17   :  { %681 = vst [vmem:[%s5278_s11] sm:$0xff] %v680_v20 }
0x1f19   :  { %v1594_v8 = vpop.xlane.xlu1 %1593 }
0x1f1a   :  { %v1595_v57 = vsub.f32 %v1589_v50, %v1594_v8 }
0x1f1c   :  { %v3219_v39 = vpop.eup %3218  ;;  %v1596_v22 = vmul.f32 1.442695, %v1595_v57 }
0x1f1d   :  { %v1131_v5 = vsel %vm656_vm5, %v3219_v39, 0.0 }
0x1f1e   :  { %3220 = vpow2.f32 %v1596_v22  ;;  %1132 = vadd.xlane.f32.xlu0 %v1131_v5 }
0x1f24   :  { %v3221_v60 = vpop.eup %3220 }
0x1f25   :  { %v1598_v58 = vsel %vm656_vm5, %v3221_v60, 0.0 }
0x1f26   :  { %1599 = vadd.xlane.f32.xlu1 %v1598_v58 }
0x1f32   :  { %1141 = vrot.lane.b32.xlu0 %v5485_v14, %s3331_s10 }
0x1f3f   :  { %1605 = vrot.lane.b32.xlu1 %v5486_v29, %s3330_s12 }
0x1f49   :  { %v2061_v7 = vpop.xlane.xlu2 %2060 }
0x1f4a   :  { %v2062_v34 = vsub.f32 %v2056_v46, %v2061_v7 }
0x1f4c   :  { %v2063_v15 = vmul.f32 1.442695, %v2062_v34 }
0x1f4e   :  { %3222 = vpow2.f32 %v2063_v15 }
0x1f51   :  { %v1609_v42 = vpop.permute.xlu2 %1608 }
0x1f54   :  { %v2989_v35 = vpop.f32.mrf.mxu1  ;;  %v3223_v1 = vpop.eup %3222 }
0x1f55   :  { %v2065_v55 = vsel %vm656_vm5, %v3223_v1, 0.0  ;;  %v2990_v2 = vadd.f32 %v2989_v35, %v5180_v52 }
0x1f57   :  { %v2993_v28 = vsel %vm656_vm5, %v2990_v2, -inf }
0x1f59   :  { %v3007_v3 = vpop.permute.xlu2 %3006 }
0x1f5c   :  { %v2991_v47 = vpop.f32.mrf.mxu1  ;;  %2527 = vmax.xlane.f32.xlu0 %v2526_v40 }
0x1f61   :  { %v2076_v56 = vpop.permute.xlu2 %2075 }
0x1f64   :  { %2066 = vadd.xlane.f32.xlu0 %v2065_v55 }
0x1f69   :  { %2994 = vmax.xlane.f32.xlu1 %v2993_v28  ;;  %v3010_v22 = vpop.permute.xlu2 %3009 }
0x1f82   :  { %2072 = vrot.lane.b32.xlu1 %v4654_v13, %s3330_s12 }
0x1f91   :  { %v1133_v59 = vpop.xlane.xlu0 %1132 }
0x1f92   :  { %3224 = vlog2.f32 %v1133_v59 }
0x1f98   :  { %v3225_v30 = vpop.eup %3224 }
0x1f99   :  { %v1135_v21 = vmul.f32 0.6931472, %v3225_v30  ;;  %v1600_v11 = vpop.xlane.xlu1 %1599 }
0x1f9a   :  { %3226 = vlog2.f32 %v1600_v11 }
0x1f9b   :  { %v1136_v43 = vsub.f32 %v1128_v6, %v1135_v21  ;;  %v5487_v6 = vld [vmem:[#allocation9_spill] sm:$0xff] }
0x1f9d   :  { %v1144_v24 = vsel %vm656_vm5, %v1136_v43, %v1139_v45 }
0x1fa0   :  { %v3227_v23 = vpop.eup %3226 }
0x1fa1   :  { %v1602_v13 = vmul.f32 0.6931472, %v3227_v23 }
0x1fa3   :  { %v1603_v49 = vsub.f32 %v1595_v57, %v1602_v13 }
0x1fa4   :  { %v1142_v12 = vpop.permute.xlu0 %1141 }
0x1fa5   :  { %v1145_v19 = vsel %vm677_vm0, %v1144_v24, %v1142_v12 }
0x1fa6   :  { %v1146_v52 = vsel %vm679_vm6, %v1145_v19, 0.0 }
0x1fa7   :  { %3094 = vst [vmem:[%s5278_s11 + $0x8] sm:$0xff] %v1146_v52 }
0x1fb1   :  { %v1606_v53 = vpop.permute.xlu1 %1605 }
0x1fb2   :  { %v1611_v32 = vsel %vm656_vm5, %v1603_v49, %v1606_v53 }
0x1fb3   :  { %v1612_v54 = vsel %vm677_vm0, %v1611_v32, %v1609_v42 }
0x1fb4   :  { %v1613_v16 = vsel %vm679_vm6, %v1612_v54, 0.0 }
0x1fb5   :  { %3104 = vst [vmem:[%s5278_s11 + $0x10] sm:$0xff] %v1613_v16 }
0x1fcf   :  { %v2528_v31 = vpop.xlane.xlu0 %2527 }
0x1fd0   :  { %v2529_v0 = vsub.f32 %v2523_v38, %v2528_v31 }
0x1fd2   :  { %v2530_v18 = vmul.f32 1.442695, %v2529_v0 }
0x1fd4   :  { %3228 = vpow2.f32 %v2530_v18 }
0x1fd7   :  { %v2067_v46 = vpop.xlane.xlu0 %2066 }
0x1fda   :  { %v3229_v37 = vpop.eup %3228 }
0x1fdb   :  { %v2532_v50 = vsel %vm656_vm5, %v3229_v37, 0.0 }
0x1fdc   :  { %v2995_v44 = vpop.xlane.xlu1 %2994  ;;  %2533 = vadd.xlane.f32.xlu0 %v2532_v50 }
0x1fdd   :  { %v2996_v33 = vsub.f32 %v2990_v2, %v2995_v44 }
0x1fdf   :  { %v2997_v10 = vmul.f32 1.442695, %v2996_v33 }
0x1fe1   :  { %3230 = vpow2.f32 %v2997_v10 }
0x1fe2   :  { %3232 = vlog2.f32 %v2067_v46 }
0x1fe7   :  { %v3231_v36 = vpop.eup %3230 }
0x1fe8   :  { %v2999_v25 = vsel %vm656_vm5, %v3231_v36, 0.0  ;;  %v3233_v27 = vpop.eup %3232 }
0x1fe9   :  { %3000 = vadd.xlane.f32.xlu1 %v2999_v25  ;;  %v2069_v62 = vmul.f32 0.6931472, %v3233_v27 }
0x1feb   :  { %v2070_v63 = vsub.f32 %v2062_v34, %v2069_v62 }
0x1ff0   :  { %2539 = vrot.lane.b32.xlu0 %v5010_v51, %s3330_s12 }
0x1ff4   :  { %v2073_v26 = vpop.permute.xlu1 %2072 }
0x1ff5   :  { %v2078_v41 = vsel %vm656_vm5, %v2070_v63, %v2073_v26 }
0x1ff6   :  { %v2079_v48 = vsel %vm677_vm0, %v2078_v41, %v2076_v56 }
0x1ff7   :  { %v2080_v61 = vsel %vm679_vm6, %v2079_v48, 0.0 }
0x1ff8   :  { %3114 = vst [vmem:[%s5278_s11 + $0x18] sm:$0xff] %v2080_v61  ;;  %2542 = vrot.lane.b32.xlu0 %v5487_v6, %s3331_s10 }
0x204f   :  { %v2534_v4 = vpop.xlane.xlu0 %2533 }
0x2050   :  { %3234 = vlog2.f32 %v2534_v4 }
0x2056   :  { %v3235_v51 = vpop.eup %3234 }
0x2057   :  { %v2536_v8 = vmul.f32 0.6931472, %v3235_v51 }
0x2059   :  { %v2537_v5 = vsub.f32 %v2529_v0, %v2536_v8 }
0x205c   :  { %v3001_v17 = vpop.xlane.xlu1 %3000 }
0x205d   :  { %3236 = vlog2.f32 %v3001_v17 }
0x2062   :  { %v2540_v9 = vpop.permute.xlu0 %2539 }
0x2063   :  { %v3237_v20 = vpop.eup %3236  ;;  %v2545_v29 = vsel %vm656_vm5, %v2537_v5, %v2540_v9 }
0x2064   :  { %v3003_v57 = vmul.f32 0.6931472, %v3237_v20 }
0x2066   :  { %v3004_v39 = vsub.f32 %v2996_v33, %v3003_v57 }
0x2068   :  { %v3012_v60 = vsel %vm656_vm5, %v3004_v39, %v3007_v3 }
0x2069   :  { %v3013_v58 = vsel %vm677_vm0, %v3012_v60, %v3010_v22 }
0x206a   :  { %v3014_v14 = vsel %vm679_vm6, %v3013_v58, 0.0  ;;  %v2543_v45 = vpop.permute.xlu0 %2542 }
0x206b   :  { %3134 = vst [vmem:[%s5278_s11 + $0x28] sm:$0xff] %v3014_v14  ;;  %v2546_v7 = vsel %vm677_vm0, %v2545_v29, %v2543_v45 }
0x206c   :  { %v2547_v34 = vsel %vm679_vm6, %v2546_v7, 0.0 }
0x206d   :  { %3124 = vst [vmem:[%s5278_s11 + $0x20] sm:$0xff] %v2547_v34 }

</bundles_post_ra>
